<compile_context>
chip_gen: v7x
topology: tpu7x:2x2x1
jax: 0.10.0
libtpu: 0.0.40
codegen_flags: <defaults>
</compile_context>

<pallas_src>
import functools

import jax
import jax.numpy as jnp
from jax import lax
from jax.experimental import pallas as pl
from jax.experimental.pallas import tpu as pltpu

# Slot indices in the stacked [12, Hp, Hp] bf16 weight tensor.
(EW1A, EW1B, EW1C, EW2, PW1A, PW1B, PW2, GW1A, GW1B, GW2, BW1, BW2) = range(12)
# Slot indices in the stacked [8, Hp] f32 bias tensor.
(EB1, EB2, PB1, PB2, GB1, GB2, BB1, BB2) = range(8)

# Contract the (leading) edge dim of both operands:  result = lhs^T @ rhs.
_SCATTER_DIMS = (((0,), (0,)), ((), ()))


def _mm(a, w):
    """bf16 MXU matmul with explicit f32 accumulation."""
    return jnp.dot(a.astype(jnp.bfloat16), w.astype(jnp.bfloat16),
                   preferred_element_type=jnp.float32)


def _onehot_bf16(mask):
    return jnp.where(mask, 1.0, 0.0).astype(jnp.bfloat16)


def graphnet_kernel(E,
                    row_ref, col_ref, ea_ref, x_ref, invdeg_ref, w_ref, b_ref,
                    x_out_ref, e_out_ref,
                    agg_ref):
    t = pl.program_id(0)
    TE, Hp = ea_ref.shape
    Np = x_ref.shape[0]
    base = t * TE

    @pl.when(t == 0)
    def _init():
        agg_ref[...] = jnp.zeros_like(agg_ref)

    # ---- vectorized gather of x[row], x[col] via one-hot MXU matmuls ----------
    ridx = row_ref[...]                                     # [TE, 1] int32
    cidx = col_ref[...]                                     # [TE, 1] int32
    node_ids = lax.broadcasted_iota(jnp.int32, (TE, Np), 1)
    eq_r = node_ids == ridx                                 # [TE, Np] bool
    eq_c = node_ids == cidx
    xv = x_ref[...]                                         # [Np, Hp] bf16
    # one-hot @ x == exact gather of the bf16-cast node rows.
    xr = jnp.dot(_onehot_bf16(eq_r), xv, preferred_element_type=jnp.float32)
    xc = jnp.dot(_onehot_bf16(eq_c), xv, preferred_element_type=jnp.float32)

    ea = ea_ref[...]                                        # [TE, Hp] bf16
    b = b_ref[...]                                          # [8, Hp]  f32

    # ---- edge_mlp: Linear(3H->H) -> ReLU -> Linear(H->H) ----
    # cat([xr, xc, ea]) @ W1 == xr@W1a + xc@W1b + ea@W1c  (split matmuls, K=Hp)
    h = (_mm(xr, w_ref[EW1A]) + _mm(xc, w_ref[EW1B]) + _mm(ea, w_ref[EW1C])
         + b[EB1:EB1 + 1, :])
    h = jnp.maximum(h, 0.0)
    e_new = _mm(h, w_ref[EW2]) + b[EB2:EB2 + 1, :]          # [TE, Hp] f32
    e_out_ref[...] = e_new.astype(e_out_ref.dtype)          # bf16 lane-dense store

    # ---- node_mlp_phi on cat([x[col], e_new]) ----
    h2 = jnp.maximum(_mm(xc, w_ref[PW1A]) + _mm(e_new, w_ref[PW1B]) + b[PB1:PB1 + 1, :],
                     0.0)
    msg = _mm(h2, w_ref[PW2]) + b[PB2:PB2 + 1, :]           # [TE, Hp] f32 messages

    # ---- segment-sum (scatter-add) via a masked one-hot^T @ msg MXU matmul ----
    if E % TE == 0:
        n_valid = TE
    else:
        n_valid = jnp.minimum(TE, E - base)
    edge_ids = lax.broadcasted_iota(jnp.int32, (TE, 1), 0)
    scat_onehot = _onehot_bf16(eq_r & (edge_ids < n_valid))   # [TE, Np]
    # hi/lo bf16 split keeps the f32 message sum (one-hot entries are exact).
    msg_hi = msg.astype(jnp.bfloat16)
    msg_lo = (msg - msg_hi.astype(jnp.float32)).astype(jnp.bfloat16)
    agg_ref[...] += (
        lax.dot_general(scat_onehot, msg_hi, _SCATTER_DIMS,
                        preferred_element_type=jnp.float32)
        + lax.dot_general(scat_onehot, msg_lo, _SCATTER_DIMS,
                          preferred_element_type=jnp.float32))

    # ---- node-side MLPs once aggregation over all edge tiles is complete ----
    @pl.when(t == pl.num_programs(0) - 1)
    def _finalize():
        agg = agg_ref[...] * invdeg_ref[...]                # scatter_mean (f32)
        # node_mlp_gamma on cat([x, agg])
        h3 = jnp.maximum(_mm(xv, w_ref[GW1A]) + _mm(agg, w_ref[GW1B]) + b[GB1:GB1 + 1, :],
                         0.0)
        xg = _mm(h3, w_ref[GW2]) + b[GB2:GB2 + 1, :]
        # node_mlp_beta + residual:  x = xg + beta(xg)
        h4 = jnp.maximum(_mm(xg, w_ref[BW1]) + b[BB1:BB1 + 1, :], 0.0)
        xb = _mm(h4, w_ref[BW2]) + b[BB2:BB2 + 1, :]
        x_out_ref[...] = xg + xb


def _round_up(v, m):
    return ((v + m - 1) // m) * m


def _linear_params(key, fan_in, fan_out):
    # Deterministic init mimicking PyTorch nn.Linear default (U(-1/sqrt(fan_in), ...)).
    kw, kb = jax.random.split(key)
    bound = 1.0 / (fan_in ** 0.5)
    W = jax.random.uniform(kw, (fan_in, fan_out), jnp.float32, -bound, bound)
    b = jax.random.uniform(kb, (1, fan_out), jnp.float32, -bound, bound)
    return W, b


def init_params(key, H):
    keys = jax.random.split(key, 8)
    p = {}
    p["eW1"], p["eb1"] = _linear_params(keys[0], 3 * H, H)
    p["eW2"], p["eb2"] = _linear_params(keys[1], H, H)
    p["pW1"], p["pb1"] = _linear_params(keys[2], 2 * H, H)
    p["pW2"], p["pb2"] = _linear_params(keys[3], H, H)
    p["gW1"], p["gb1"] = _linear_params(keys[4], 2 * H, H)
    p["gW2"], p["gb2"] = _linear_params(keys[5], H, H)
    p["bW1"], p["bb1"] = _linear_params(keys[6], H, H)
    p["bW2"], p["bb2"] = _linear_params(keys[7], H, H)
    return p


def graphnet_block(x, edge_index, edge_attr, p, *, tile_e=512):
    N, H = x.shape
    E = edge_attr.shape[0]
    assert tile_e % 128 == 0, "edge tile must be a multiple of 128"
    Hp = _round_up(H, 128)          # lane-dense hidden size
    Np = _round_up(N, 128)          # full-width one-hot contraction dim
    TE = tile_e
    Ep = _round_up(E, TE)
    n_tiles = Ep // TE

    row = edge_index[0].astype(jnp.int32)
    col = edge_index[1].astype(jnp.int32)
    row_p = jnp.zeros((Ep, 1), jnp.int32).at[:E, 0].set(row)
    col_p = jnp.zeros((Ep, 1), jnp.int32).at[:E, 0].set(col)

    # Precompute 1/deg (scatter_mean denominator) in plain JAX.
    counts = jax.ops.segment_sum(jnp.ones((E,), jnp.float32), row, num_segments=N)
    inv_deg = (1.0 / jnp.maximum(counts, 1.0)).reshape(N, 1)
    inv_deg_p = jnp.zeros((Np, 1), jnp.float32).at[:N].set(inv_deg)

    # Zero-pad node / edge features to lane-dense shapes.  Both are bf16 (they are
    # only ever bf16 MXU operands); all accumulation inside the kernel is f32.
    x_p = jnp.zeros((Np, Hp), jnp.bfloat16).at[:N, :H].set(x.astype(jnp.bfloat16))
    ea_p = jnp.zeros((Ep, Hp), jnp.bfloat16).at[:E, :H].set(edge_attr.astype(jnp.bfloat16))

    def pad_w(w):  # [h_in, H] -> [Hp, Hp] bf16, zero padded
        return (jnp.zeros((Hp, Hp), jnp.bfloat16)
                .at[:w.shape[0], :w.shape[1]].set(w.astype(jnp.bfloat16)))

    def pad_b(bias):  # [1, H] -> [Hp] f32, zero padded
        return jnp.zeros((Hp,), jnp.float32).at[:H].set(
            bias.reshape(-1).astype(jnp.float32))

    # Stack all (zero-padded, "x @ W"-oriented) weights / biases.
    w_stack = jnp.stack([
        pad_w(p["eW1"][:H]), pad_w(p["eW1"][H:2 * H]), pad_w(p["eW1"][2 * H:]),
        pad_w(p["eW2"]),
        pad_w(p["pW1"][:H]), pad_w(p["pW1"][H:]),
        pad_w(p["pW2"]),
        pad_w(p["gW1"][:H]), pad_w(p["gW1"][H:]),
        pad_w(p["gW2"]),
        pad_w(p["bW1"]), pad_w(p["bW2"]),
    ])
    b_stack = jnp.stack([
        pad_b(p["eb1"]), pad_b(p["eb2"]), pad_b(p["pb1"]), pad_b(p["pb2"]),
        pad_b(p["gb1"]), pad_b(p["gb2"]), pad_b(p["bb1"]), pad_b(p["bb2"]),
    ])

    grid_spec = pltpu.PrefetchScalarGridSpec(
        num_scalar_prefetch=0,
        grid=(n_tiles,),
        in_specs=[
            pl.BlockSpec((TE, 1), lambda t: (t, 0)),          # row idx tile (VMEM)
            pl.BlockSpec((TE, 1), lambda t: (t, 0)),          # col idx tile (VMEM)
            pl.BlockSpec((TE, Hp), lambda t: (t, 0)),         # edge_attr tile (bf16)
            pl.BlockSpec((Np, Hp), lambda t: (0, 0)),         # x (VMEM resident, bf16)
            pl.BlockSpec((Np, 1), lambda t: (0, 0)),          # 1/deg (f32)
            pl.BlockSpec((12, Hp, Hp), lambda t: (0, 0, 0)),  # weights (bf16)
            pl.BlockSpec((8, Hp), lambda t: (0, 0)),          # biases (f32)
        ],
        out_specs=[
            pl.BlockSpec((Np, Hp), lambda t: (0, 0)),         # x_out (f32)
            pl.BlockSpec((TE, Hp), lambda t: (t, 0)),         # edge_attr_out (bf16)
        ],
        scratch_shapes=[
            pltpu.VMEM((Np, Hp), jnp.float32),                # aggregation accumulator
        ],
    )

    # Advisory cost estimate: per-edge-tile matmuls (2 gathers + 7 MLP + 2 scatter)
    # plus 5 node-side matmuls.
    flops = 2 * Hp * (Ep * (7 * Hp + 4 * Np) + 5 * Np * Hp)
    bytes_accessed = (Ep * Hp * 2 * 2            # edge_attr in + out (bf16)
                      + Np * Hp * 2 + Np * Hp * 4  # x in (bf16) + x_out (f32)
                      + 12 * Hp * Hp * 2 + 8 * Hp * 4
                      + Np * 4 + 2 * Ep * 4)

    fn = pl.pallas_call(
        functools.partial(graphnet_kernel, E),
        grid_spec=grid_spec,
        out_shape=(
            jax.ShapeDtypeStruct((Np, Hp), jnp.float32),
            jax.ShapeDtypeStruct((Ep, Hp), jnp.bfloat16),
        ),
        compiler_params=pltpu.CompilerParams(
            dimension_semantics=("arbitrary",),    # accumulator carried over edge tiles
            # 48 MiB: safely under the v7x 64 MiB physical VMEM; raise toward 96 MiB
            # on v5e/v6e for larger tiles / larger node counts.
            vmem_limit_bytes=48 * 1024 * 1024,
        ),
        cost_estimate=pl.CostEstimate(
            flops=int(flops), transcendentals=0, bytes_accessed=int(bytes_accessed)),
    )
    x_out_p, e_out_p = fn(row_p, col_p, ea_p, x_p, inv_deg_p, w_stack, b_stack)
    return x_out_p[:N, :H], e_out_p[:E, :H]


def graphnet_block_reference(x, edge_index, edge_attr, p, *, matmul_dtype=jnp.float32):
    """Pure-JAX reference mirroring the PyTorch forward (matmul operands cast to
    `matmul_dtype`, f32 accumulation — matching the kernel's MXU path)."""
    row, col = edge_index[0], edge_index[1]
    N = x.shape[0]
    md = matmul_dtype

    def lin(z, W, b):
        return (jnp.dot(z.astype(md), W.astype(md), preferred_element_type=jnp.float32)
                + b.astype(jnp.float32))

    def mlp(z, W1, b1, W2, b2):
        return lin(jnp.maximum(lin(z, W1, b1), 0.0), W2, b2)

    ef = jnp.concatenate([x[row], x[col], edge_attr], axis=1)
    e_new = mlp(ef, p["eW1"], p["eb1"], p["eW2"], p["eb2"])
    msg = mlp(jnp.concatenate([x[col], e_new], axis=1),
              p["pW1"], p["pb1"], p["pW2"], p["pb2"])
    sums = jax.ops.segment_sum(msg, row, num_segments=N)
    counts = jax.ops.segment_sum(jnp.ones((msg.shape[0], 1), jnp.float32), row,
                                 num_segments=N)
    agg = sums * (1.0 / jnp.maximum(counts, 1.0))
    xg = mlp(jnp.concatenate([x, agg], axis=1),
             p["gW1"], p["gb1"], p["gW2"], p["gb2"])
    xb = mlp(xg, p["bW1"], p["bb1"], p["bW2"], p["bb2"])
    return xg + xb, e_new


if __name__ == "__main__":
    key = jax.random.PRNGKey(0)
    # E spans multiple 512-edge tiles with a ragged tail to exercise masking.
    H, N, E = 32, 48, 1200
    ks = jax.random.split(key, 5)
    x = jax.random.normal(ks[0], (N, H), jnp.float32)
    edge_attr = jax.random.normal(ks[1], (E, H), jnp.float32)
    row = jax.random.randint(ks[2], (E,), 0, N, dtype=jnp.int32)
    col = jax.random.randint(ks[3], (E,), 0, N, dtype=jnp.int32)
    edge_index = jnp.stack([row, col])
    params = init_params(ks[4], H)

    x_out, e_out = graphnet_block(x, edge_index, edge_attr, params, tile_e=512)
    jax.block_until_ready((x_out, e_out))

    # Compare against a reference using the same bf16-operand / f32-accumulate matmuls.
    x_ref, e_ref = graphnet_block_reference(x, edge_index, edge_attr, params,
                                            matmul_dtype=jnp.bfloat16)
    assert jnp.allclose(x_out, x_ref, atol=5e-3, rtol=5e-3), "node output mismatch"
    # e_out is emitted in bf16 -> compare with bf16-level tolerance.
    assert jnp.allclose(e_out.astype(jnp.float32), e_ref, atol=2e-2, rtol=2e-2), \
        "edge output mismatch"
    print("KERNEL_OK")
</pallas_src>

<mosaic_0001>
module attributes {stable_mosaic.version = 11 : i64} {
  func.func @graphnet_kernel(%arg0: i32, %arg1: memref<512x1xi32, #tpu.memory_space<vmem>>, %arg2: memref<512x1xi32, #tpu.memory_space<vmem>>, %arg3: memref<512x128xbf16, #tpu.memory_space<vmem>>, %arg4: memref<128x128xbf16, #tpu.memory_space<vmem>>, %arg5: memref<128x1xf32, #tpu.memory_space<vmem>>, %arg6: memref<12x128x128xbf16, #tpu.memory_space<vmem>>, %arg7: memref<8x128xf32, #tpu.memory_space<vmem>>, %arg8: memref<128x128xf32, #tpu.memory_space<vmem>>, %arg9: memref<512x128xbf16, #tpu.memory_space<vmem>>, %arg10: memref<128x128xf32, #tpu.memory_space<vmem>>) attributes {dimension_semantics = [#tpu.dimension_semantics<arbitrary>], iteration_bounds = array<i64: 3>, scalar_prefetch = 0 : i64, scratch_operands = 1 : i64, tpu.core_type = #tpu.core_type<tc>, window_params = [{transform_indices = @transform_0, window_bounds = array<i64: 512, 1>}, {transform_indices = @transform_1, window_bounds = array<i64: 512, 1>}, {transform_indices = @transform_2, window_bounds = array<i64: 512, 128>}, {pipeline_mode = #tpu.pipeline_mode<synchronous>, transform_indices = @transform_3, window_bounds = array<i64: 128, 128>}, {pipeline_mode = #tpu.pipeline_mode<synchronous>, transform_indices = @transform_4, window_bounds = array<i64: 128, 1>}, {pipeline_mode = #tpu.pipeline_mode<synchronous>, transform_indices = @transform_5, window_bounds = array<i64: 12, 128, 128>}, {pipeline_mode = #tpu.pipeline_mode<synchronous>, transform_indices = @transform_6, window_bounds = array<i64: 8, 128>}, {pipeline_mode = #tpu.pipeline_mode<synchronous>, transform_indices = @transform_7, window_bounds = array<i64: 128, 128>}, {transform_indices = @transform_8, window_bounds = array<i64: 512, 128>}]} {
    %c512_i32 = arith.constant 512 : i32
    %0 = arith.muli %arg0, %c512_i32 : i32
    %c0_i32 = arith.constant 0 : i32
    %1 = arith.cmpi eq, %arg0, %c0_i32 : i32
    %2 = arith.extui %1 : i1 to i32
    %c0_i32_0 = arith.constant 0 : i32
    %3 = arith.cmpi ne, %2, %c0_i32_0 : i32
    scf.if %3 {
      %cst_51 = arith.constant 0.000000e+00 : f32
      %96 = vector.broadcast %cst_51 : f32 to vector<128x128xf32>
      %c0_52 = arith.constant 0 : index
      %c0_53 = arith.constant 0 : index
      %97 = vector.load %arg10[%c0_52, %c0_53] : memref<128x128xf32, #tpu.memory_space<vmem>>, vector<128x128xf32>
      tpu.vector_store %arg10[%c0_52, %c0_53], %96 {strides = array<i32>} : memref<128x128xf32, #tpu.memory_space<vmem>>, vector<128x128xf32>,
    } else {
    }
    %c0 = arith.constant 0 : index
    %c0_1 = arith.constant 0 : index
    %4 = vector.load %arg1[%c0, %c0_1] : memref<512x1xi32, #tpu.memory_space<vmem>>, vector<512x1xi32>
    %c0_2 = arith.constant 0 : index
    %c0_3 = arith.constant 0 : index
    %5 = vector.load %arg2[%c0_2, %c0_3] : memref<512x1xi32, #tpu.memory_space<vmem>>, vector<512x1xi32>
    %6 = tpu.iota {dimensions = array<i32: 1>} : vector<512x128xi32>
    %7 = vector.broadcast %4 : vector<512x1xi32> to vector<512x128xi32>
    %8 = arith.cmpi eq, %6, %7 : vector<512x128xi32>
    %9 = vector.broadcast %5 : vector<512x1xi32> to vector<512x128xi32>
    %10 = arith.cmpi eq, %6, %9 : vector<512x128xi32>
    %c0_4 = arith.constant 0 : index
    %c0_5 = arith.constant 0 : index
    %11 = vector.load %arg4[%c0_4, %c0_5] : memref<128x128xbf16, #tpu.memory_space<vmem>>, vector<128x128xbf16>
    %cst = arith.constant 1.000000e+00 : f32
    %cst_6 = arith.constant 0.000000e+00 : f32
    %12 = vector.broadcast %cst : f32 to vector<512x128xf32>
    %13 = vector.broadcast %cst_6 : f32 to vector<512x128xf32>
    %14 = arith.select %8, %12, %13 : vector<512x128xi1>, vector<512x128xf32>
    %15 = arith.truncf %14 : vector<512x128xf32> to vector<512x128xbf16>
    %cst_7 = arith.constant dense<0.000000e+00> : vector<512x128xf32>
    %16 = tpu.matmul %15, %11, %cst_7 {dimension_numbers = #tpu.dot_dimension_numbers<[1], [0], [0], [1], [0, 0, 1, 1], [], []>} : vector<512x128xbf16>, vector<128x128xbf16>, vector<512x128xf32> -> vector<512x128xf32>
    %cst_8 = arith.constant 1.000000e+00 : f32
    %cst_9 = arith.constant 0.000000e+00 : f32
    %17 = vector.broadcast %cst_8 : f32 to vector<512x128xf32>
    %18 = vector.broadcast %cst_9 : f32 to vector<512x128xf32>
    %19 = arith.select %10, %17, %18 : vector<512x128xi1>, vector<512x128xf32>
    %20 = arith.truncf %19 : vector<512x128xf32> to vector<512x128xbf16>
    %cst_10 = arith.constant dense<0.000000e+00> : vector<512x128xf32>
    %21 = tpu.matmul %20, %11, %cst_10 {dimension_numbers = #tpu.dot_dimension_numbers<[1], [0], [0], [1], [0, 0, 1, 1], [], []>} : vector<512x128xbf16>, vector<128x128xbf16>, vector<512x128xf32> -> vector<512x128xf32>
    %c0_11 = arith.constant 0 : index
    %c0_12 = arith.constant 0 : index
    %22 = vector.load %arg3[%c0_11, %c0_12] : memref<512x128xbf16, #tpu.memory_space<vmem>>, vector<512x128xbf16>
    %c0_13 = arith.constant 0 : index
    %c0_14 = arith.constant 0 : index
    %23 = vector.load %arg7[%c0_13, %c0_14] : memref<8x128xf32, #tpu.memory_space<vmem>>, vector<8x128xf32>
    %c0_15 = arith.constant 0 : index
    %c0_16 = arith.constant 0 : index
    %c0_17 = arith.constant 0 : index
    %24 = vector.load %arg6[%c0_15, %c0_16, %c0_17] : memref<12x128x128xbf16, #tpu.memory_space<vmem>>, vector<1x128x128xbf16>
    %25 = vector.shape_cast %24 : vector<1x128x128xbf16> to vector<128x128xbf16>
    %26 = arith.truncf %16 : vector<512x128xf32> to vector<512x128xbf16>
    %cst_18 = arith.constant dense<0.000000e+00> : vector<512x128xf32>
    %27 = tpu.matmul %26, %25, %cst_18 {dimension_numbers = #tpu.dot_dimension_numbers<[1], [0], [0], [1], [0, 0, 1, 1], [], []>} : vector<512x128xbf16>, vector<128x128xbf16>, vector<512x128xf32> -> vector<512x128xf32>
    %c1 = arith.constant 1 : index
    %c0_19 = arith.constant 0 : index
    %c0_20 = arith.constant 0 : index
    %28 = vector.load %arg6[%c1, %c0_19, %c0_20] : memref<12x128x128xbf16, #tpu.memory_space<vmem>>, vector<1x128x128xbf16>
    %29 = vector.shape_cast %28 : vector<1x128x128xbf16> to vector<128x128xbf16>
    %30 = arith.truncf %21 : vector<512x128xf32> to vector<512x128xbf16>
    %cst_21 = arith.constant dense<0.000000e+00> : vector<512x128xf32>
    %31 = tpu.matmul %30, %29, %cst_21 {dimension_numbers = #tpu.dot_dimension_numbers<[1], [0], [0], [1], [0, 0, 1, 1], [], []>} : vector<512x128xbf16>, vector<128x128xbf16>, vector<512x128xf32> -> vector<512x128xf32>
    %32 = arith.addf %27, %31 : vector<512x128xf32>
    %c2 = arith.constant 2 : index
    %c0_22 = arith.constant 0 : index
    %c0_23 = arith.constant 0 : index
    %33 = vector.load %arg6[%c2, %c0_22, %c0_23] : memref<12x128x128xbf16, #tpu.memory_space<vmem>>, vector<1x128x128xbf16>
    %34 = vector.shape_cast %33 : vector<1x128x128xbf16> to vector<128x128xbf16>
    %cst_24 = arith.constant dense<0.000000e+00> : vector<512x128xf32>
    %35 = tpu.matmul %22, %34, %cst_24 {dimension_numbers = #tpu.dot_dimension_numbers<[1], [0], [0], [1], [0, 0, 1, 1], [], []>} : vector<512x128xbf16>, vector<128x128xbf16>, vector<512x128xf32> -> vector<512x128xf32>
    %36 = arith.addf %32, %35 : vector<512x128xf32>
    %37 = vector.extract_strided_slice %23 {offsets = [0, 0], sizes = [1, 128], strides = [1, 1]} : vector<8x128xf32> to vector<1x128xf32>
    %38 = vector.broadcast %37 : vector<1x128xf32> to vector<512x128xf32>
    %39 = arith.addf %36, %38 : vector<512x128xf32>
    %cst_25 = arith.constant 0.000000e+00 : f32
    %40 = vector.broadcast %cst_25 : f32 to vector<512x128xf32>
    %41 = arith.maximumf %39, %40 : vector<512x128xf32>
    %c3 = arith.constant 3 : index
    %c0_26 = arith.constant 0 : index
    %c0_27 = arith.constant 0 : index
    %42 = vector.load %arg6[%c3, %c0_26, %c0_27] : memref<12x128x128xbf16, #tpu.memory_space<vmem>>, vector<1x128x128xbf16>
    %43 = vector.shape_cast %42 : vector<1x128x128xbf16> to vector<128x128xbf16>
    %44 = arith.truncf %41 : vector<512x128xf32> to vector<512x128xbf16>
    %cst_28 = arith.constant dense<0.000000e+00> : vector<512x128xf32>
    %45 = tpu.matmul %44, %43, %cst_28 {dimension_numbers = #tpu.dot_dimension_numbers<[1], [0], [0], [1], [0, 0, 1, 1], [], []>} : vector<512x128xbf16>, vector<128x128xbf16>, vector<512x128xf32> -> vector<512x128xf32>
    %46 = vector.extract_strided_slice %23 {offsets = [1, 0], sizes = [1, 128], strides = [1, 1]} : vector<8x128xf32> to vector<1x128xf32>
    %47 = vector.broadcast %46 : vector<1x128xf32> to vector<512x128xf32>
    %48 = arith.addf %45, %47 : vector<512x128xf32>
    %49 = arith.truncf %48 : vector<512x128xf32> to vector<512x128xbf16>
    %c0_29 = arith.constant 0 : index
    %c0_30 = arith.constant 0 : index
    %50 = vector.load %arg9[%c0_29, %c0_30] : memref<512x128xbf16, #tpu.memory_space<vmem>>, vector<512x128xbf16>
    tpu.vector_store %arg9[%c0_29, %c0_30], %49 {strides = array<i32>} : memref<512x128xbf16, #tpu.memory_space<vmem>>, vector<512x128xbf16>,
    %c4 = arith.constant 4 : index
    %c0_31 = arith.constant 0 : index
    %c0_32 = arith.constant 0 : index
    %51 = vector.load %arg6[%c4, %c0_31, %c0_32] : memref<12x128x128xbf16, #tpu.memory_space<vmem>>, vector<1x128x128xbf16>
    %52 = vector.shape_cast %51 : vector<1x128x128xbf16> to vector<128x128xbf16>
    %53 = arith.truncf %21 : vector<512x128xf32> to vector<512x128xbf16>
    %cst_33 = arith.constant dense<0.000000e+00> : vector<512x128xf32>
    %54 = tpu.matmul %53, %52, %cst_33 {dimension_numbers = #tpu.dot_dimension_numbers<[1], [0], [0], [1], [0, 0, 1, 1], [], []>} : vector<512x128xbf16>, vector<128x128xbf16>, vector<512x128xf32> -> vector<512x128xf32>
    %c5 = arith.constant 5 : index
    %c0_34 = arith.constant 0 : index
    %c0_35 = arith.constant 0 : index
    %55 = vector.load %arg6[%c5, %c0_34, %c0_35] : memref<12x128x128xbf16, #tpu.memory_space<vmem>>, vector<1x128x128xbf16>
    %56 = vector.shape_cast %55 : vector<1x128x128xbf16> to vector<128x128xbf16>
    %57 = arith.truncf %48 : vector<512x128xf32> to vector<512x128xbf16>
    %cst_36 = arith.constant dense<0.000000e+00> : vector<512x128xf32>
    %58 = tpu.matmul %57, %56, %cst_36 {dimension_numbers = #tpu.dot_dimension_numbers<[1], [0], [0], [1], [0, 0, 1, 1], [], []>} : vector<512x128xbf16>, vector<128x128xbf16>, vector<512x128xf32> -> vector<512x128xf32>
    %59 = arith.addf %54, %58 : vector<512x128xf32>
    %60 = vector.extract_strided_slice %23 {offsets = [2, 0], sizes = [1, 128], strides = [1, 1]} : vector<8x128xf32> to vector<1x128xf32>
    %61 = vector.broadcast %60 : vector<1x128xf32> to vector<512x128xf32>
    %62 = arith.addf %59, %61 : vector<512x128xf32>
    %cst_37 = arith.constant 0.000000e+00 : f32
    %63 = vector.broadcast %cst_37 : f32 to vector<512x128xf32>
    %64 = arith.maximumf %62, %63 : vector<512x128xf32>
    %c6 = arith.constant 6 : index
    %c0_38 = arith.constant 0 : index
    %c0_39 = arith.constant 0 : index
    %65 = vector.load %arg6[%c6, %c0_38, %c0_39] : memref<12x128x128xbf16, #tpu.memory_space<vmem>>, vector<1x128x128xbf16>
    %66 = vector.shape_cast %65 : vector<1x128x128xbf16> to vector<128x128xbf16>
    %67 = arith.truncf %64 : vector<512x128xf32> to vector<512x128xbf16>
    %cst_40 = arith.constant dense<0.000000e+00> : vector<512x128xf32>
    %68 = tpu.matmul %67, %66, %cst_40 {dimension_numbers = #tpu.dot_dimension_numbers<[1], [0], [0], [1], [0, 0, 1, 1], [], []>} : vector<512x128xbf16>, vector<128x128xbf16>, vector<512x128xf32> -> vector<512x128xf32>
    %69 = vector.extract_strided_slice %23 {offsets = [3, 0], sizes = [1, 128], strides = [1, 1]} : vector<8x128xf32> to vector<1x128xf32>
    %70 = vector.broadcast %69 : vector<1x128xf32> to vector<512x128xf32>
    %71 = arith.addf %68, %70 : vector<512x128xf32>
    %c1200_i32 = arith.constant 1200 : i32
    %72 = arith.subi %c1200_i32, %0 : i32
    %c512_i32_41 = arith.constant 512 : i32
    %73 = arith.minsi %c512_i32_41, %72 : i32
    %74 = tpu.iota {dimensions = array<i32: 0>} : vector<512x1xi32>
    %75 = vector.broadcast %73 : i32 to vector<512x1xi32>
    %76 = arith.cmpi slt, %74, %75 : vector<512x1xi32>
    %77 = vector.broadcast %76 : vector<512x1xi1> to vector<512x128xi1>
    %78 = arith.andi %8, %77 : vector<512x128xi1>
    %cst_42 = arith.constant 1.000000e+00 : f32
    %cst_43 = arith.constant 0.000000e+00 : f32
    %79 = vector.broadcast %cst_42 : f32 to vector<512x128xf32>
    %80 = vector.broadcast %cst_43 : f32 to vector<512x128xf32>
    %81 = arith.select %78, %79, %80 : vector<512x128xi1>, vector<512x128xf32>
    %82 = arith.truncf %81 : vector<512x128xf32> to vector<512x128xbf16>
    %83 = arith.truncf %71 : vector<512x128xf32> to vector<512x128xbf16>
    %84 = arith.extf %83 : vector<512x128xbf16> to vector<512x128xf32>
    %85 = arith.subf %71, %84 : vector<512x128xf32>
    %86 = arith.truncf %85 : vector<512x128xf32> to vector<512x128xbf16>
    %c0_44 = arith.constant 0 : index
    %c0_45 = arith.constant 0 : index
    %87 = vector.load %arg10[%c0_44, %c0_45] : memref<128x128xf32, #tpu.memory_space<vmem>>, vector<128x128xf32>
    %cst_46 = arith.constant dense<0.000000e+00> : vector<128x128xf32>
    %88 = tpu.matmul %82, %83, %cst_46 {dimension_numbers = #tpu.dot_dimension_numbers<[0], [0], [1], [1], [0, 1, 1, 1], [], []>} : vector<512x128xbf16>, vector<512x128xbf16>, vector<128x128xf32> -> vector<128x128xf32>
    %cst_47 = arith.constant dense<0.000000e+00> : vector<128x128xf32>
    %89 = tpu.matmul %82, %86, %cst_47 {dimension_numbers = #tpu.dot_dimension_numbers<[0], [0], [1], [1], [0, 1, 1, 1], [], []>} : vector<512x128xbf16>, vector<512x128xbf16>, vector<128x128xf32> -> vector<128x128xf32>
    %90 = arith.addf %88, %89 : vector<128x128xf32>
    %91 = arith.addf %87, %90 : vector<128x128xf32>
    %c0_48 = arith.constant 0 : index
    %c0_49 = arith.constant 0 : index
    %92 = vector.load %arg10[%c0_48, %c0_49] : memref<128x128xf32, #tpu.memory_space<vmem>>, vector<128x128xf32>
    tpu.vector_store %arg10[%c0_48, %c0_49], %91 {strides = array<i32>} : memref<128x128xf32, #tpu.memory_space<vmem>>, vector<128x128xf32>,
    %c2_i32 = arith.constant 2 : i32
    %93 = arith.cmpi eq, %arg0, %c2_i32 : i32
    %94 = arith.extui %93 : i1 to i32
    %c0_i32_50 = arith.constant 0 : i32
    %95 = arith.cmpi ne, %94, %c0_i32_50 : i32
    scf.if %95 {
      %c0_51 = arith.constant 0 : index
      %c0_52 = arith.constant 0 : index
      %96 = vector.load %arg10[%c0_51, %c0_52] : memref<128x128xf32, #tpu.memory_space<vmem>>, vector<128x128xf32>
      %c0_53 = arith.constant 0 : index
      %c0_54 = arith.constant 0 : index
      %97 = vector.load %arg5[%c0_53, %c0_54] : memref<128x1xf32, #tpu.memory_space<vmem>>, vector<128x1xf32>
      %98 = vector.broadcast %97 : vector<128x1xf32> to vector<128x128xf32>
      %99 = arith.mulf %96, %98 : vector<128x128xf32>
      %c7 = arith.constant 7 : index
      %c0_55 = arith.constant 0 : index
      %c0_56 = arith.constant 0 : index
      %100 = vector.load %arg6[%c7, %c0_55, %c0_56] : memref<12x128x128xbf16, #tpu.memory_space<vmem>>, vector<1x128x128xbf16>
      %101 = vector.shape_cast %100 : vector<1x128x128xbf16> to vector<128x128xbf16>
      %cst_57 = arith.constant dense<0.000000e+00> : vector<128x128xf32>
      %102 = tpu.matmul %11, %101, %cst_57 {dimension_numbers = #tpu.dot_dimension_numbers<[1], [0], [0], [1], [0, 0, 1, 1], [], []>} : vector<128x128xbf16>, vector<128x128xbf16>, vector<128x128xf32> -> vector<128x128xf32>
      %c8 = arith.constant 8 : index
      %c0_58 = arith.constant 0 : index
      %c0_59 = arith.constant 0 : index
      %103 = vector.load %arg6[%c8, %c0_58, %c0_59] : memref<12x128x128xbf16, #tpu.memory_space<vmem>>, vector<1x128x128xbf16>
      %104 = vector.shape_cast %103 : vector<1x128x128xbf16> to vector<128x128xbf16>
      %105 = arith.truncf %99 : vector<128x128xf32> to vector<128x128xbf16>
      %cst_60 = arith.constant dense<0.000000e+00> : vector<128x128xf32>
      %106 = tpu.matmul %105, %104, %cst_60 {dimension_numbers = #tpu.dot_dimension_numbers<[1], [0], [0], [1], [0, 0, 1, 1], [], []>} : vector<128x128xbf16>, vector<128x128xbf16>, vector<128x128xf32> -> vector<128x128xf32>
      %107 = arith.addf %102, %106 : vector<128x128xf32>
      %108 = vector.extract_strided_slice %23 {offsets = [4, 0], sizes = [1, 128], strides = [1, 1]} : vector<8x128xf32> to vector<1x128xf32>
      %109 = vector.broadcast %108 : vector<1x128xf32> to vector<128x128xf32>
      %110 = arith.addf %107, %109 : vector<128x128xf32>
      %cst_61 = arith.constant 0.000000e+00 : f32
      %111 = vector.broadcast %cst_61 : f32 to vector<128x128xf32>
      %112 = arith.maximumf %110, %111 : vector<128x128xf32>
      %c9 = arith.constant 9 : index
      %c0_62 = arith.constant 0 : index
      %c0_63 = arith.constant 0 : index
      %113 = vector.load %arg6[%c9, %c0_62, %c0_63] : memref<12x128x128xbf16, #tpu.memory_space<vmem>>, vector<1x128x128xbf16>
      %114 = vector.shape_cast %113 : vector<1x128x128xbf16> to vector<128x128xbf16>
      %115 = arith.truncf %112 : vector<128x128xf32> to vector<128x128xbf16>
      %cst_64 = arith.constant dense<0.000000e+00> : vector<128x128xf32>
      %116 = tpu.matmul %115, %114, %cst_64 {dimension_numbers = #tpu.dot_dimension_numbers<[1], [0], [0], [1], [0, 0, 1, 1], [], []>} : vector<128x128xbf16>, vector<128x128xbf16>, vector<128x128xf32> -> vector<128x128xf32>
      %117 = vector.extract_strided_slice %23 {offsets = [5, 0], sizes = [1, 128], strides = [1, 1]} : vector<8x128xf32> to vector<1x128xf32>
      %118 = vector.broadcast %117 : vector<1x128xf32> to vector<128x128xf32>
      %119 = arith.addf %116, %118 : vector<128x128xf32>
      %c10 = arith.constant 10 : index
      %c0_65 = arith.constant 0 : index
      %c0_66 = arith.constant 0 : index
      %120 = vector.load %arg6[%c10, %c0_65, %c0_66] : memref<12x128x128xbf16, #tpu.memory_space<vmem>>, vector<1x128x128xbf16>
      %121 = vector.shape_cast %120 : vector<1x128x128xbf16> to vector<128x128xbf16>
      %122 = arith.truncf %119 : vector<128x128xf32> to vector<128x128xbf16>
      %cst_67 = arith.constant dense<0.000000e+00> : vector<128x128xf32>
      %123 = tpu.matmul %122, %121, %cst_67 {dimension_numbers = #tpu.dot_dimension_numbers<[1], [0], [0], [1], [0, 0, 1, 1], [], []>} : vector<128x128xbf16>, vector<128x128xbf16>, vector<128x128xf32> -> vector<128x128xf32>
      %124 = vector.extract_strided_slice %23 {offsets = [6, 0], sizes = [1, 128], strides = [1, 1]} : vector<8x128xf32> to vector<1x128xf32>
      %125 = vector.broadcast %124 : vector<1x128xf32> to vector<128x128xf32>
      %126 = arith.addf %123, %125 : vector<128x128xf32>
      %cst_68 = arith.constant 0.000000e+00 : f32
      %127 = vector.broadcast %cst_68 : f32 to vector<128x128xf32>
      %128 = arith.maximumf %126, %127 : vector<128x128xf32>
      %c11 = arith.constant 11 : index
      %c0_69 = arith.constant 0 : index
      %c0_70 = arith.constant 0 : index
      %129 = vector.load %arg6[%c11, %c0_69, %c0_70] : memref<12x128x128xbf16, #tpu.memory_space<vmem>>, vector<1x128x128xbf16>
      %130 = vector.shape_cast %129 : vector<1x128x128xbf16> to vector<128x128xbf16>
      %131 = arith.truncf %128 : vector<128x128xf32> to vector<128x128xbf16>
      %cst_71 = arith.constant dense<0.000000e+00> : vector<128x128xf32>
      %132 = tpu.matmul %131, %130, %cst_71 {dimension_numbers = #tpu.dot_dimension_numbers<[1], [0], [0], [1], [0, 0, 1, 1], [], []>} : vector<128x128xbf16>, vector<128x128xbf16>, vector<128x128xf32> -> vector<128x128xf32>
      %133 = vector.extract_strided_slice %23 {offsets = [7, 0], sizes = [1, 128], strides = [1, 1]} : vector<8x128xf32> to vector<1x128xf32>
      %134 = vector.broadcast %133 : vector<1x128xf32> to vector<128x128xf32>
      %135 = arith.addf %132, %134 : vector<128x128xf32>
      %136 = arith.addf %119, %135 : vector<128x128xf32>
      %c0_72 = arith.constant 0 : index
      %c0_73 = arith.constant 0 : index
      %137 = vector.load %arg8[%c0_72, %c0_73] : memref<128x128xf32, #tpu.memory_space<vmem>>, vector<128x128xf32>
      tpu.vector_store %arg8[%c0_72, %c0_73], %136 {strides = array<i32>} : memref<128x128xf32, #tpu.memory_space<vmem>>, vector<128x128xf32>,
    } else {
    }
    return
  }
  func.func @transform_0(%arg0: i32) -> (i32, i32) {
    %c0_i32 = arith.constant 0 : i32
    %c0_i32_0 = arith.constant 0 : i32
    return %arg0, %c0_i32 : i32, i32
  }
  func.func @transform_1(%arg0: i32) -> (i32, i32) {
    %c0_i32 = arith.constant 0 : i32
    %c0_i32_0 = arith.constant 0 : i32
    return %arg0, %c0_i32 : i32, i32
  }
  func.func @transform_2(%arg0: i32) -> (i32, i32) {
    %c0_i32 = arith.constant 0 : i32
    %c0_i32_0 = arith.constant 0 : i32
    return %arg0, %c0_i32 : i32, i32
  }
  func.func @transform_3(%arg0: i32) -> (i32, i32) {
    %c0_i32 = arith.constant 0 : i32
    %c0_i32_0 = arith.constant 0 : i32
    %c0_i32_1 = arith.constant 0 : i32
    return %c0_i32, %c0_i32_0 : i32, i32
  }
  func.func @transform_4(%arg0: i32) -> (i32, i32) {
    %c0_i32 = arith.constant 0 : i32
    %c0_i32_0 = arith.constant 0 : i32
    %c0_i32_1 = arith.constant 0 : i32
    return %c0_i32, %c0_i32_0 : i32, i32
  }
  func.func @transform_5(%arg0: i32) -> (i32, i32, i32) {
    %c0_i32 = arith.constant 0 : i32
    %c0_i32_0 = arith.constant 0 : i32
    %c0_i32_1 = arith.constant 0 : i32
    %c0_i32_2 = arith.constant 0 : i32
    return %c0_i32, %c0_i32_0, %c0_i32_1 : i32, i32, i32
  }
  func.func @transform_6(%arg0: i32) -> (i32, i32) {
    %c0_i32 = arith.constant 0 : i32
    %c0_i32_0 = arith.constant 0 : i32
    %c0_i32_1 = arith.constant 0 : i32
    return %c0_i32, %c0_i32_0 : i32, i32
  }
  func.func @transform_7(%arg0: i32) -> (i32, i32) {
    %c0_i32 = arith.constant 0 : i32
    %c0_i32_0 = arith.constant 0 : i32
    %c0_i32_1 = arith.constant 0 : i32
    return %c0_i32, %c0_i32_0 : i32, i32
  }
  func.func @transform_8(%arg0: i32) -> (i32, i32) {
    %c0_i32 = arith.constant 0 : i32
    %c0_i32_0 = arith.constant 0 : i32
    return %arg0, %c0_i32 : i32, i32
  }
}

</mosaic_0001>

<bundles_post_ra>
// kernel: tpu_custom_call.1
= control target key start
LH: loop header
LB: loop body
LE: loop exit
PB: predicated region body
PF: predicated region fallthrough
CT: control target
= control target key end

     0   :  { %14 = vsyncpa [#allocation4], 0  ;;  %s12998_s0 = inlined_call_operand.vmem [shape: s32[1536,1], index: 0, kind: input, shape index: {}]   ;;  %s12999_s1 = inlined_call_operand.vmem [shape: s32[1536,1], index: 1, kind: input, shape index: {}]   ;;  %s13000_s2 = inlined_call_operand.vmem [shape: bf16[1536,128], index: 2, kind: input, shape index: {}]   ;;  %s13001_s3 = inlined_call_operand.vmem [shape: bf16[128,128], index: 3, kind: input, shape index: {}]   ;;  %s13002_s4 = inlined_call_operand.vmem [shape: f32[128,1], index: 4, kind: input, shape index: {}]   ;;  %s13003_s5 = inlined_call_operand.vmem [shape: bf16[12,128,128], index: 5, kind: input, shape index: {}]   ;;  %s13004_s6 = inlined_call_operand.vmem [shape: f32[8,128], index: 6, kind: input, shape index: {}]   ;;  %s13005_s7 = inlined_call_operand.hbm [shape: f32[128,128], index: 7, kind: output, shape index: {0}]   ;;  %s13006_s8 = inlined_call_operand.hbm [shape: bf16[1536,128], index: 8, kind: output, shape index: {1}]  }
   0x1   :  { %15 = vsyncpa [#allocation6], 0 }
   0x2   :  { %17 = vsyncpa [#allocation6 + $0x1], 0  ;;  %s10602_s27 = smov 0   ;;  %s10604_s28 = smov 0  }
   0x3   :  { %s10606_s29 = smov 0   ;;  %s10608_s30 = smov 0  }
   0x4 LB: > { %13023 = sst [smem:[#allocation9_spill]] %s10540_s29  ;;  %s10623_s9 = sadd.s32 4294967295, %s10544_s30   ;;  %s10544_s30 = sphi %s10608_s30, %s13089_s30   ;;  %s10540_s29 = sphi %s10606_s29, %s13086_s29   ;;  %s10536_s28 = sphi %s10604_s28, %s13088_s28   ;;  %s10532_s27 = sphi %s10602_s27, %s13087_s27  }
   0x5   : > { %s7675_s10 = sadd.s32 4294967294, %s10544_s30   ;;  %s10627_s11 = sadd.s32 1, %s10544_s30  }
   0x6   : > { %s213_s12 = sadd.s32 1, %s10540_s29  ;;  %s210_s13 = ssub.s32 %s10544_s30, %s10627_s11 }
   0x7   : > { %p223_p0 = scmp.ne.s32.totalorder %s10540_s29, %s10536_s28  ;;  %p211_p1 = scmp.eq.s32.totalorder %s210_s13, 0 }
   0x8   : > { %p224_p2 = scmp.eq.s32.totalorder %s10623_s9, 2  ;;  %p229_p3 = scmp.ne.s32.totalorder %s10536_s28, %s10532_s27 }
   0x9   : > { %p230_p4 = scmp.eq.s32.totalorder %s7675_s10, 2  ;;  %p7678_p7 = scmp.ge.s32.totalorder %s10544_s30, 1 }
   0xa   : > { %s10638_s14 = scalar_select %p211_p1, %s10540_s29, %s213_s12  }
   0xb   : > { %p10642_p5 = por %p224_p2, %p223_p0  ;;  %p10646_p6 = por %p230_p4, %p229_p3 }
   0xc   : > { %13024 = sst [smem:[#allocation10_spill]] %s10638_s14  ;;  %p287_p8 = scmp.lt.s32.totalorder %s10544_s30, 4 }
   0xe   : > { %p288_p9 = pnand %p7678_p7, %p287_p8 }
  0x10   : > { %291 = sbr.rel (%p288_p9) target bundleno = 3296 (0xce0), region = 48 }
  0x17   : > { %s13008_s17 = sand.u32 1, %s10536_s28   ;;  %s7680_s18 = sshll.u32 %s10623_s9, 6 }
  0x18   : > { %s7679_s19 = sshll.u32 %s13008_s17, 8  ;;  %p332_p10 = scmp.lt.s32.totalorder %s7680_s18, 191 }
  0x19   : > { %s7686_s20 = sshll.u32 %s10623_s9, 9  ;;  %s10672_s17 = scalar_lea.vmem [#allocation5], %s7679_s19 }
  0x1a   : > { %s13091_s18 = smov (!%p332_p10, %s7680_s18), 191  ;;  %p7687_p11 = scmp.ne.s32.totalorder %s10623_s9, 0 }
  0x1b   : > { %s7681_s21 = sshll.u32 %s13091_s18, 3  ;;  %s7685_s22 = sshll.u32 %s13091_s18, 2  ;;  %v10546_v0 = vmov (!%p7687_p11), 0.0  }
  0x1c   : > { %s10660_s25 = scalar_lea.vmem %s12998_s0, %s7681_s21  ;;  %s10665_s12 = scalar_lea.vmem %s12999_s1, %s7681_s21  ;;  %356 = vst [vmem:[#allocation2] sm:$0xff] (!%p7687_p11), %v10546_v0  ;;  %357 = vst [vmem:[#allocation2 + $0x8] sm:$0xff] (!%p7687_p11), %v10546_v0 }
  0x1d   : > { %s10670_s29 = scalar_lea.vmem %s13000_s2, %s7685_s22  ;;  %355 = sbr.rel (%p7687_p11) target bundleno = 36 (0x24), region = 52  ;;  %358 = vst [vmem:[#allocation2 + $0x10] sm:$0xff] (!%p7687_p11), %v10546_v0  ;;  %359 = vst [vmem:[#allocation2 + $0x18] sm:$0xff] (!%p7687_p11), %v10546_v0 }
  0x1e   : > { %360 = vst [vmem:[#allocation2 + $0x20] sm:$0xff] (!%p7687_p11), %v10546_v0  ;;  %361 = vst [vmem:[#allocation2 + $0x28] sm:$0xff] (!%p7687_p11), %v10546_v0 }
  0x1f   : > { %362 = vst [vmem:[#allocation2 + $0x30] sm:$0xff] (!%p7687_p11), %v10546_v0  ;;  %363 = vst [vmem:[#allocation2 + $0x38] sm:$0xff] (!%p7687_p11), %v10546_v0 }
  0x20   : > { %364 = vst [vmem:[#allocation2 + $0x40] sm:$0xff] (!%p7687_p11), %v10546_v0  ;;  %365 = vst [vmem:[#allocation2 + $0x48] sm:$0xff] (!%p7687_p11), %v10546_v0 }
  0x21   : > { %366 = vst [vmem:[#allocation2 + $0x50] sm:$0xff] (!%p7687_p11), %v10546_v0  ;;  %367 = vst [vmem:[#allocation2 + $0x58] sm:$0xff] (!%p7687_p11), %v10546_v0 }
  0x22   : > { %368 = vst [vmem:[#allocation2 + $0x60] sm:$0xff] (!%p7687_p11), %v10546_v0  ;;  %369 = vst [vmem:[#allocation2 + $0x68] sm:$0xff] (!%p7687_p11), %v10546_v0 }
  0x23   : > { %370 = vst [vmem:[#allocation2 + $0x70] sm:$0xff] (!%p7687_p11), %v10546_v0  ;;  %371 = vst [vmem:[#allocation2 + $0x78] sm:$0xff] (!%p7687_p11), %v10546_v0 }
  0x24 PF: > { %v438_v1 = vld [vmem:[%s10665_s12 + $0x10] sm:$0xff]  ;;  %v436_v2 = vld [vmem:[%s10665_s12] sm:$0xff]  ;;  %v10547_v3 = vmov 0   ;;  %v439_v4 = vld [vmem:[%s10665_s12 + $0x18] sm:$0xff]  ;;  %s5366_s13 = ssub.s32 1200, %s7686_s20  ;;  %p8072_p13 = scmp.ne.s32.totalorder %s10623_s9, 2 }
  0x25   : > { %10312 = vset.pattern.permute.xlu1 %v10547_v3  ;;  %10311 = vset.pattern.permute.xlu0 %v10547_v3  ;;  %v437_v5 = vld [vmem:[%s10665_s12 + $0x8] sm:$0xff]  ;;  %v440_v7 = vld [vmem:[%s10665_s12 + $0x20] sm:$0xff]  ;;  %v443_v8 = vld [vmem:[%s10665_s12 + $0x38] sm:$0xff]  ;;  %p5367_p12 = scmp.lt.s32.totalorder %s5366_s13, 512 }
  0x26   : > { %765 = vperm.xlu1 %10312, %v438_v1   ;;  %759 = vperm.xlu0 %10311, %v436_v2   ;;  %v441_v6 = vld [vmem:[%s10665_s12 + $0x28] sm:$0xff]  ;;  %v442_v9 = vld [vmem:[%s10665_s12 + $0x30] sm:$0xff]  ;;  %v444_v11 = vld [vmem:[%s10665_s12 + $0x40] sm:$0xff] }
  0x27   : > { %v445_v10 = vld [vmem:[%s10665_s12 + $0x48] sm:$0xff]  ;;  %v447_v12 = vld [vmem:[%s10665_s12 + $0x58] sm:$0xff]  ;;  %v446_v13 = vld [vmem:[%s10665_s12 + $0x50] sm:$0xff]  ;;  %s13093_s13 = smov (!%p5367_p12, %s5366_s13), 512 }
  0x28   : > { %v10690_v14 = vld [vmem:[%s13001_s3] sm:$0xff]   ;;  %v10695_v15 = vld [vmem:[%s13001_s3 + $0x8] sm:$0xff]   ;;  %v10707_v18 = vld [vmem:[%s13001_s3 + $0x10] sm:$0xff]  }
  0x29   : > { %9232 = vmatprep.subr.bf16.mxu1 %v10690_v14  ;;  %9152 = vmatprep.subr.bf16.mxu0 %v10690_v14  ;;  %v449_v16 = vld [vmem:[%s10665_s12 + $0x68] sm:$0xff]  ;;  %v448_v17 = vld [vmem:[%s10665_s12 + $0x60] sm:$0xff]  ;;  %v451_v19 = vld [vmem:[%s10665_s12 + $0x78] sm:$0xff] }
  0x2a   : > { %768 = vperm.xlu1 %10312, %v439_v4   ;;  %762 = vperm.xlu0 %10311, %v437_v5   ;;  %v450_v20 = vld [vmem:[%s10665_s12 + $0x70] sm:$0xff]  ;;  %v10718_v21 = vld [vmem:[%s13001_s3 + $0x18] sm:$0xff]   ;;  %v453_v22 = vld [vmem:[%s10665_s12 + $0x88] sm:$0xff] }
  0x2b   : > { %9233 = vmatpush3.bf16.msra.mxu1 %v10690_v14  ;;  %9153 = vmatpush3.bf16.msra.mxu0 %v10690_v14  ;;  %13027 = vst [vmem:[#allocation11_spill] sm:$0xff] %v10718_v21  ;;  %v452_v23 = vld [vmem:[%s10665_s12 + $0x80] sm:$0xff]  ;;  %v455_v25 = vld [vmem:[%s10665_s12 + $0x98] sm:$0xff]  ;;  %v454_v26 = vld [vmem:[%s10665_s12 + $0x90] sm:$0xff] }
  0x2c   : > { %9234 = vmatprep.subr.bf16.mxu1 %v10695_v15  ;;  %9154 = vmatprep.subr.bf16.mxu0 %v10695_v15  ;;  %v10729_v24 = vld [vmem:[%s13001_s3 + $0x20] sm:$0xff]   ;;  %v10740_v27 = vld [vmem:[%s13001_s3 + $0x28] sm:$0xff]   ;;  %v10750_v30 = vld [vmem:[%s13001_s3 + $0x30] sm:$0xff]  }
  0x2d   : > { %13028 = vst [vmem:[#allocation12_spill] sm:$0xff] %v10729_v24  ;;  %13029 = vst [vmem:[#allocation13_spill] sm:$0xff] %v10740_v27  ;;  %v457_v28 = vld [vmem:[%s10665_s12 + $0xa8] sm:$0xff]  ;;  %v456_v29 = vld [vmem:[%s10665_s12 + $0xa0] sm:$0xff] }
  0x2e   : > { %774 = vperm.xlu1 %10312, %v441_v6   ;;  %771 = vperm.xlu0 %10311, %v440_v7   ;;  %13030 = vst [vmem:[#allocation14_spill] sm:$0xff] %v10750_v30  ;;  %v459_v31 = vld [vmem:[%s10665_s12 + $0xb8] sm:$0xff]  ;;  %v458_v32 = vld [vmem:[%s10665_s12 + $0xb0] sm:$0xff]  ;;  %v461_v34 = vld [vmem:[%s10665_s12 + $0xc8] sm:$0xff] }
  0x2f   : > { %9235 = vmatpush3.bf16.msra.mxu1 %v10695_v15  ;;  %9155 = vmatpush3.bf16.msra.mxu0 %v10695_v15  ;;  %v10761_v33 = vld [vmem:[%s13001_s3 + $0x38] sm:$0xff]   ;;  %v460_v35 = vld [vmem:[%s10665_s12 + $0xc0] sm:$0xff]  ;;  %v462_v37 = vld [vmem:[%s10665_s12 + $0xd0] sm:$0xff] }
  0x30   : > { %9236 = vmatprep.subr.bf16.mxu1 %v10707_v18  ;;  %9156 = vmatprep.subr.bf16.mxu0 %v10707_v18  ;;  %13031 = vst [vmem:[#allocation15_spill] sm:$0xff] %v10761_v33  ;;  %v463_v36 = vld [vmem:[%s10665_s12 + $0xd8] sm:$0xff]  ;;  %v465_v38 = vld [vmem:[%s10665_s12 + $0xe8] sm:$0xff]  ;;  %v464_v39 = vld [vmem:[%s10665_s12 + $0xe0] sm:$0xff] }
  0x31   : > { %v467_v40 = vld [vmem:[%s10665_s12 + $0xf8] sm:$0xff]  ;;  %v466_v41 = vld [vmem:[%s10665_s12 + $0xf0] sm:$0xff]  ;;  %v469_v42 = vld [vmem:[%s10665_s12 + $0x108] sm:$0xff] }
  0x32   : > { %780 = vperm.xlu1 %10312, %v443_v8   ;;  %777 = vperm.xlu0 %10311, %v442_v9   ;;  %v468_v43 = vld [vmem:[%s10665_s12 + $0x100] sm:$0xff]  ;;  %v471_v44 = vld [vmem:[%s10665_s12 + $0x118] sm:$0xff]  ;;  %v470_v45 = vld [vmem:[%s10665_s12 + $0x110] sm:$0xff] }
  0x33   : > { %9237 = vmatpush3.bf16.msra.mxu1 %v10707_v18  ;;  %9157 = vmatpush3.bf16.msra.mxu0 %v10707_v18  ;;  %v473_v46 = vld [vmem:[%s10665_s12 + $0x128] sm:$0xff]  ;;  %v472_v47 = vld [vmem:[%s10665_s12 + $0x120] sm:$0xff]  ;;  %v475_v48 = vld [vmem:[%s10665_s12 + $0x138] sm:$0xff] }
  0x34   : > { %9238 = vmatprep.subr.bf16.mxu1 %v10718_v21  ;;  %9158 = vmatprep.subr.bf16.mxu0 %v10718_v21  ;;  %v474_v49 = vld [vmem:[%s10665_s12 + $0x130] sm:$0xff]  ;;  %v477_v50 = vld [vmem:[%s10665_s12 + $0x148] sm:$0xff]  ;;  %v476_v51 = vld [vmem:[%s10665_s12 + $0x140] sm:$0xff] }
  0x35   : > { %v479_v52 = vld [vmem:[%s10665_s12 + $0x158] sm:$0xff]  ;;  %v478_v53 = vld [vmem:[%s10665_s12 + $0x150] sm:$0xff]  ;;  %v481_v54 = vld [vmem:[%s10665_s12 + $0x168] sm:$0xff] }
  0x36   : > { %786 = vperm.xlu1 %10312, %v445_v10   ;;  %783 = vperm.xlu0 %10311, %v444_v11   ;;  %v480_v55 = vld [vmem:[%s10665_s12 + $0x160] sm:$0xff]  ;;  %v483_v56 = vld [vmem:[%s10665_s12 + $0x178] sm:$0xff]  ;;  %v482_v57 = vld [vmem:[%s10665_s12 + $0x170] sm:$0xff]  ;;  %v500_v10 = vlaneseq }
  0x37   : > { %9239 = vmatpush3.bf16.msra.mxu1 %v10718_v21  ;;  %9159 = vmatpush3.bf16.msra.mxu0 %v10718_v21  ;;  %v373_v58 = vld [vmem:[%s10660_s25 + $0x8] sm:$0xff]  ;;  %v372_v59 = vld [vmem:[%s10660_s25] sm:$0xff]  ;;  %v375_v60 = vld [vmem:[%s10660_s25 + $0x18] sm:$0xff] }
  0x38   : > { %9240 = vmatprep.subr.bf16.mxu1 %v10729_v24  ;;  %9160 = vmatprep.subr.bf16.mxu0 %v10729_v24  ;;  %v374_v61 = vld [vmem:[%s10660_s25 + $0x10] sm:$0xff]  ;;  %v485_v62 = vld [vmem:[%s10665_s12 + $0x188] sm:$0xff]  ;;  %v484_v63 = vld [vmem:[%s10665_s12 + $0x180] sm:$0xff] }
  0x39   : > { %v487_v0 = vld [vmem:[%s10665_s12 + $0x198] sm:$0xff]  ;;  %v486_v1 = vld [vmem:[%s10665_s12 + $0x190] sm:$0xff]  ;;  %v377_v2 = vld [vmem:[%s10660_s25 + $0x28] sm:$0xff] }
  0x3a   : > { %792 = vperm.xlu1 %10312, %v447_v12   ;;  %789 = vperm.xlu0 %10311, %v446_v13   ;;  %v376_v3 = vld [vmem:[%s10660_s25 + $0x20] sm:$0xff]  ;;  %v379_v4 = vld [vmem:[%s10660_s25 + $0x38] sm:$0xff]  ;;  %v378_v5 = vld [vmem:[%s10660_s25 + $0x30] sm:$0xff] }
  0x3b   : > { %9241 = vmatpush3.bf16.msra.mxu1 %v10729_v24  ;;  %9161 = vmatpush3.bf16.msra.mxu0 %v10729_v24  ;;  %v489_v6 = vld [vmem:[%s10665_s12 + $0x1a8] sm:$0xff]  ;;  %v488_v7 = vld [vmem:[%s10665_s12 + $0x1a0] sm:$0xff]  ;;  %v491_v8 = vld [vmem:[%s10665_s12 + $0x1b8] sm:$0xff] }
  0x3c   : > { %9242 = vmatprep.subr.bf16.mxu1 %v10740_v27  ;;  %9162 = vmatprep.subr.bf16.mxu0 %v10740_v27  ;;  %v490_v9 = vld [vmem:[%s10665_s12 + $0x1b0] sm:$0xff]  ;;  %v381_v11 = vld [vmem:[%s10660_s25 + $0x48] sm:$0xff]  ;;  %v380_v12 = vld [vmem:[%s10660_s25 + $0x40] sm:$0xff] }
  0x3e   : > { %798 = vperm.xlu1 %10312, %v449_v16   ;;  %795 = vperm.xlu0 %10311, %v448_v17   ;;  %v10814_v17 = vand.u32 127, %v500_v10 }
  0x3f   : > { %9243 = vmatpush3.bf16.msra.mxu1 %v10740_v27  ;;  %9163 = vmatpush3.bf16.msra.mxu0 %v10740_v27 }
  0x40   : > { %9244 = vmatprep.subr.bf16.mxu1 %v10750_v30  ;;  %9164 = vmatprep.subr.bf16.mxu0 %v10750_v30 }
  0x42   : > { %804 = vperm.xlu1 %10312, %v451_v19   ;;  %801 = vperm.xlu0 %10311, %v450_v20   ;;  %v383_v19 = vld [vmem:[%s10660_s25 + $0x58] sm:$0xff]  ;;  %v382_v20 = vld [vmem:[%s10660_s25 + $0x50] sm:$0xff] }
  0x43   : > { %9245 = vmatpush3.bf16.msra.mxu1 %v10750_v30  ;;  %9165 = vmatpush3.bf16.msra.mxu0 %v10750_v30 }
  0x44   : > { %9246 = vmatprep.subr.bf16.mxu1 %v10761_v33  ;;  %9166 = vmatprep.subr.bf16.mxu0 %v10761_v33 }
  0x46   : > { %810 = vperm.xlu1 %10312, %v453_v22   ;;  %807 = vperm.xlu0 %10311, %v452_v23  }
  0x47   : > { %9247 = vmatpush3.bf16.msra.mxu1 %v10761_v33  ;;  %9167 = vmatpush3.bf16.msra.mxu0 %v10761_v33 }
  0x4a   : > { %816 = vperm.xlu1 %10312, %v455_v25   ;;  %813 = vperm.xlu0 %10311, %v454_v26   ;;  %v493_v25 = vld [vmem:[%s10665_s12 + $0x1c8] sm:$0xff]  ;;  %v492_v26 = vld [vmem:[%s10665_s12 + $0x1c0] sm:$0xff] }
  0x4e   : > { %822 = vperm.xlu1 %10312, %v457_v28   ;;  %819 = vperm.xlu0 %10311, %v456_v29   ;;  %v10548_v28 = vmov 1.0|1.0  }
  0x52   : > { %828 = vperm.xlu1 %10312, %v459_v31   ;;  %825 = vperm.xlu0 %10311, %v458_v32   ;;  %v495_v32 = vld [vmem:[%s10665_s12 + $0x1d8] sm:$0xff] }
  0x56   : > { %834 = vperm.xlu1 %10312, %v461_v34   ;;  %831 = vperm.xlu0 %10311, %v460_v35   ;;  %v494_v34 = vld [vmem:[%s10665_s12 + $0x1d0] sm:$0xff] }
  0x5a   : > { %840 = vperm.xlu1 %10312, %v463_v36   ;;  %837 = vperm.xlu0 %10311, %v462_v37   ;;  %v385_v37 = vld [vmem:[%s10660_s25 + $0x68] sm:$0xff] }
  0x5e   : > { %846 = vperm.xlu1 %10312, %v465_v38   ;;  %843 = vperm.xlu0 %10311, %v464_v39   ;;  %v384_v38 = vld [vmem:[%s10660_s25 + $0x60] sm:$0xff] }
  0x62   : > { %852 = vperm.xlu1 %10312, %v467_v40   ;;  %849 = vperm.xlu0 %10311, %v466_v41   ;;  %v387_v41 = vld [vmem:[%s10660_s25 + $0x78] sm:$0xff] }
  0x66   : > { %858 = vperm.xlu1 %10312, %v469_v42   ;;  %855 = vperm.xlu0 %10311, %v468_v43   ;;  %v386_v42 = vld [vmem:[%s10660_s25 + $0x70] sm:$0xff] }
  0x6a   : > { %864 = vperm.xlu1 %10312, %v471_v44   ;;  %861 = vperm.xlu0 %10311, %v470_v45   ;;  %v497_v45 = vld [vmem:[%s10665_s12 + $0x1e8] sm:$0xff] }
  0x6e   : > { %870 = vperm.xlu1 %10312, %v473_v46   ;;  %867 = vperm.xlu0 %10311, %v472_v47   ;;  %v496_v46 = vld [vmem:[%s10665_s12 + $0x1e0] sm:$0xff] }
  0x72   : > { %876 = vperm.xlu1 %10312, %v475_v48   ;;  %873 = vperm.xlu0 %10311, %v474_v49   ;;  %v499_v49 = vld [vmem:[%s10665_s12 + $0x1f8] sm:$0xff] }
  0x76   : > { %882 = vperm.xlu1 %10312, %v477_v50   ;;  %879 = vperm.xlu0 %10311, %v476_v51   ;;  %v498_v50 = vld [vmem:[%s10665_s12 + $0x1f0] sm:$0xff] }
  0x7a   : > { %888 = vperm.xlu1 %10312, %v479_v52   ;;  %885 = vperm.xlu0 %10311, %v478_v53   ;;  %v389_v53 = vld [vmem:[%s10660_s25 + $0x88] sm:$0xff] }
  0x7e   : > { %894 = vperm.xlu1 %10312, %v481_v54   ;;  %891 = vperm.xlu0 %10311, %v480_v55   ;;  %v388_v54 = vld [vmem:[%s10660_s25 + $0x80] sm:$0xff] }
  0x82   : > { %900 = vperm.xlu1 %10312, %v483_v56   ;;  %897 = vperm.xlu0 %10311, %v482_v57   ;;  %v391_v57 = vld [vmem:[%s10660_s25 + $0x98] sm:$0xff] }
  0x86   : > { %506 = vperm.xlu1 %10312, %v373_v58   ;;  %503 = vperm.xlu0 %10311, %v372_v59   ;;  %v390_v58 = vld [vmem:[%s10660_s25 + $0x90] sm:$0xff] }
  0x8a   : > { %512 = vperm.xlu1 %10312, %v375_v60   ;;  %509 = vperm.xlu0 %10311, %v374_v61   ;;  %v393_v61 = vld [vmem:[%s10660_s25 + $0xa8] sm:$0xff] }
  0x8e   : > { %906 = vperm.xlu1 %10312, %v485_v62   ;;  %903 = vperm.xlu0 %10311, %v484_v63   ;;  %v392_v62 = vld [vmem:[%s10660_s25 + $0xa0] sm:$0xff] }
  0x92   : > { %912 = vperm.xlu1 %10312, %v487_v0   ;;  %909 = vperm.xlu0 %10311, %v486_v1   ;;  %v395_v1 = vld [vmem:[%s10660_s25 + $0xb8] sm:$0xff] }
  0x96   : > { %518 = vperm.xlu1 %10312, %v377_v2   ;;  %515 = vperm.xlu0 %10311, %v376_v3   ;;  %v394_v2 = vld [vmem:[%s10660_s25 + $0xb0] sm:$0xff] }
  0x9a   : > { %524 = vperm.xlu1 %10312, %v379_v4   ;;  %521 = vperm.xlu0 %10311, %v378_v5   ;;  %v397_v5 = vld [vmem:[%s10660_s25 + $0xc8] sm:$0xff] }
  0x9e   : > { %918 = vperm.xlu1 %10312, %v489_v6   ;;  %915 = vperm.xlu0 %10311, %v488_v7   ;;  %v396_v6 = vld [vmem:[%s10660_s25 + $0xc0] sm:$0xff] }
  0xa2   : > { %924 = vperm.xlu1 %10312, %v491_v8   ;;  %921 = vperm.xlu0 %10311, %v490_v9   ;;  %v399_v9 = vld [vmem:[%s10660_s25 + $0xd8] sm:$0xff] }
  0xa5   : > { %v766_v13 = vpop.permute.xlu1 %765  ;;  %v760_v16 = vpop.permute.xlu0 %759 }
  0xa6   : > { %530 = vperm.xlu1 %10312, %v381_v11   ;;  %527 = vperm.xlu0 %10311, %v380_v12   ;;  %vm952_vm0 = vcmp.eq.s32.totalorder %v10814_v17, %v766_v13  ;;  %vm950_vm4 = vcmp.eq.s32.totalorder %v10814_v17, %v760_v16  ;;  %v398_v11 = vld [vmem:[%s10660_s25 + $0xd0] sm:$0xff]  ;;  %v401_v16 = vld [vmem:[%s10660_s25 + $0xe8] sm:$0xff] }
  0xa9   : > { %v769_v22 = vpop.permute.xlu1 %768  ;;  %v763_v23 = vpop.permute.xlu0 %762 }
  0xaa   : > { %vm953_vm1 = vcmp.eq.s32.totalorder %v10814_v17, %v769_v22  ;;  %536 = vperm.xlu1 %10312, %v383_v19   ;;  %533 = vperm.xlu0 %10311, %v382_v20   ;;  %vm951_vm2 = vcmp.eq.s32.totalorder %v10814_v17, %v763_v23  ;;  %v400_v19 = vld [vmem:[%s10660_s25 + $0xe0] sm:$0xff]  ;;  %v403_v23 = vld [vmem:[%s10660_s25 + $0xf8] sm:$0xff] }
  0xab   : > { %vm7762_vm3 = vmpackc.low %vm953_vm1, %vm952_vm0 }
  0xac   : > { %vm7760_vm5 = vmpackc.low %vm951_vm2, %vm950_vm4 }
  0xad   : > { %9248 = vmatprep.mubr.msk.bf16.mxu1 %vm7760_vm5, %v10548_v28  ;;  %v775_v29 = vpop.permute.xlu1 %774  ;;  %v772_v31 = vpop.permute.xlu0 %771 }
  0xae   : > { %vm955_vm6 = vcmp.eq.s32.totalorder %v10814_v17, %v775_v29  ;;  %9249 = vmatmul.mubr.msk.bf16.vlgmr.msra.gmra.mrb[0].mxu1 %vm7762_vm3, %v10548_v28  ;;  %vm954_vm7 = vcmp.eq.s32.totalorder %v10814_v17, %v772_v31  ;;  %930 = vperm.xlu1 %10312, %v493_v25   ;;  %v402_v25 = vld [vmem:[%s10660_s25 + $0xf0] sm:$0xff]  ;;  %v405_v31 = vld [vmem:[%s10660_s25 + $0x108] sm:$0xff] }
  0xaf   : > { %vm7764_vm8 = vmpackc.low %vm955_vm6, %vm954_vm7  ;;  %927 = vperm.xlu0 %10311, %v492_v26  }
  0xb0   : > { %9252 = vmatprep.mubr.msk.bf16.mxu1 %vm7764_vm8, %v10548_v28 }
  0xb1   : > { %v781_v35 = vpop.permute.xlu1 %780  ;;  %v778_v36 = vpop.permute.xlu0 %777 }
  0xb2   : > { %vm957_vm9 = vcmp.eq.s32.totalorder %v10814_v17, %v781_v35  ;;  %vm956_vm10 = vcmp.eq.s32.totalorder %v10814_v17, %v778_v36  ;;  %936 = vperm.xlu1 %10312, %v495_v32   ;;  %v404_v32 = vld [vmem:[%s10660_s25 + $0x100] sm:$0xff]  ;;  %v407_v36 = vld [vmem:[%s10660_s25 + $0x118] sm:$0xff] }
  0xb3   : > { %vm7766_vm11 = vmpackc.low %vm957_vm9, %vm956_vm10  ;;  %933 = vperm.xlu0 %10311, %v494_v34  }
  0xb5   : > { %v787_v39 = vpop.permute.xlu1 %786  ;;  %v784_v40 = vpop.permute.xlu0 %783 }
  0xb6   : > { %vm959_vm12 = vcmp.eq.s32.totalorder %v10814_v17, %v787_v39  ;;  %9253 = vmatmul.mubr.msk.bf16.gmra.mrb[4].mxu1 %vm7766_vm11, %v10548_v28  ;;  %vm958_vm13 = vcmp.eq.s32.totalorder %v10814_v17, %v784_v40  ;;  %542 = vperm.xlu1 %10312, %v385_v37   ;;  %v406_v37 = vld [vmem:[%s10660_s25 + $0x110] sm:$0xff]  ;;  %v409_v40 = vld [vmem:[%s10660_s25 + $0x128] sm:$0xff] }
  0xb7   : > { %vm7768_vm14 = vmpackc.low %vm959_vm12, %vm958_vm13  ;;  %539 = vperm.xlu0 %10311, %v384_v38  }
  0xb8   : > { %9256 = vmatprep.mubr.msk.bf16.mxu1 %vm7768_vm14, %v10548_v28 }
  0xb9   : > { %v793_v43 = vpop.permute.xlu1 %792  ;;  %v790_v44 = vpop.permute.xlu0 %789 }
  0xba   : > { %vm961_vm15 = vcmp.eq.s32.totalorder %v10814_v17, %v793_v43  ;;  %vm960_vm0 = vcmp.eq.s32.totalorder %v10814_v17, %v790_v44  ;;  %548 = vperm.xlu1 %10312, %v387_v41   ;;  %v408_v41 = vld [vmem:[%s10660_s25 + $0x120] sm:$0xff]  ;;  %v411_v44 = vld [vmem:[%s10660_s25 + $0x138] sm:$0xff] }
  0xbb   : > { %vm7770_vm1 = vmpackc.low %vm961_vm15, %vm960_vm0  ;;  %545 = vperm.xlu0 %10311, %v386_v42  }
  0xbd   : > { %v799_v47 = vpop.permute.xlu1 %798  ;;  %v796_v48 = vpop.permute.xlu0 %795 }
  0xbe   : > { %vm963_vm2 = vcmp.eq.s32.totalorder %v10814_v17, %v799_v47  ;;  %9257 = vmatmul.mubr.msk.bf16.gmra.mrb[8].mxu1 %vm7770_vm1, %v10548_v28  ;;  %vm962_vm3 = vcmp.eq.s32.totalorder %v10814_v17, %v796_v48  ;;  %942 = vperm.xlu1 %10312, %v497_v45   ;;  %v410_v45 = vld [vmem:[%s10660_s25 + $0x130] sm:$0xff]  ;;  %v413_v48 = vld [vmem:[%s10660_s25 + $0x148] sm:$0xff] }
  0xbf   : > { %vm7772_vm4 = vmpackc.low %vm963_vm2, %vm962_vm3  ;;  %939 = vperm.xlu0 %10311, %v496_v46  }
  0xc0   : > { %9260 = vmatprep.mubr.msk.bf16.mxu1 %vm7772_vm4, %v10548_v28 }
  0xc1   : > { %v805_v51 = vpop.permute.xlu1 %804  ;;  %v802_v52 = vpop.permute.xlu0 %801 }
  0xc2   : > { %vm965_vm5 = vcmp.eq.s32.totalorder %v10814_v17, %v805_v51  ;;  %vm964_vm6 = vcmp.eq.s32.totalorder %v10814_v17, %v802_v52  ;;  %948 = vperm.xlu1 %10312, %v499_v49   ;;  %v412_v49 = vld [vmem:[%s10660_s25 + $0x140] sm:$0xff]  ;;  %v415_v52 = vld [vmem:[%s10660_s25 + $0x158] sm:$0xff] }
  0xc3   : > { %vm7774_vm7 = vmpackc.low %vm965_vm5, %vm964_vm6  ;;  %945 = vperm.xlu0 %10311, %v498_v50  }
  0xc5   : > { %v811_v55 = vpop.permute.xlu1 %810  ;;  %v808_v56 = vpop.permute.xlu0 %807 }
  0xc6   : > { %vm967_vm8 = vcmp.eq.s32.totalorder %v10814_v17, %v811_v55  ;;  %9261 = vmatmul.mubr.msk.bf16.gmra.mrb[12].mxu1 %vm7774_vm7, %v10548_v28  ;;  %vm966_vm9 = vcmp.eq.s32.totalorder %v10814_v17, %v808_v56  ;;  %554 = vperm.xlu1 %10312, %v389_v53   ;;  %v414_v53 = vld [vmem:[%s10660_s25 + $0x150] sm:$0xff]  ;;  %v417_v56 = vld [vmem:[%s10660_s25 + $0x168] sm:$0xff] }
  0xc7   : > { %vm7776_vm10 = vmpackc.low %vm967_vm8, %vm966_vm9  ;;  %551 = vperm.xlu0 %10311, %v388_v54  }
  0xc8   : > { %9264 = vmatprep.mubr.msk.bf16.mxu1 %vm7776_vm10, %v10548_v28 }
  0xc9   : > { %v817_v59 = vpop.permute.xlu1 %816  ;;  %v814_v60 = vpop.permute.xlu0 %813 }
  0xca   : > { %vm969_vm11 = vcmp.eq.s32.totalorder %v10814_v17, %v817_v59  ;;  %vm968_vm12 = vcmp.eq.s32.totalorder %v10814_v17, %v814_v60  ;;  %560 = vperm.xlu1 %10312, %v391_v57   ;;  %v416_v57 = vld [vmem:[%s10660_s25 + $0x160] sm:$0xff]  ;;  %v419_v60 = vld [vmem:[%s10660_s25 + $0x178] sm:$0xff] }
  0xcb   : > { %vm7778_vm13 = vmpackc.low %vm969_vm11, %vm968_vm12  ;;  %557 = vperm.xlu0 %10311, %v390_v58  }
  0xcd   : > { %v823_v63 = vpop.permute.xlu1 %822  ;;  %v820_v0 = vpop.permute.xlu0 %819 }
  0xce   : > { %vm971_vm14 = vcmp.eq.s32.totalorder %v10814_v17, %v823_v63  ;;  %9265 = vmatmul.mubr.msk.bf16.gmra.mrb[16].mxu1 %vm7778_vm13, %v10548_v28  ;;  %vm970_vm15 = vcmp.eq.s32.totalorder %v10814_v17, %v820_v0  ;;  %566 = vperm.xlu1 %10312, %v393_v61   ;;  %v418_v61 = vld [vmem:[%s10660_s25 + $0x170] sm:$0xff]  ;;  %v421_v0 = vld [vmem:[%s10660_s25 + $0x188] sm:$0xff] }
  0xcf   : > { %vm7780_vm0 = vmpackc.low %vm971_vm14, %vm970_vm15  ;;  %563 = vperm.xlu0 %10311, %v392_v62  }
  0xd0   : > { %9268 = vmatprep.mubr.msk.bf16.mxu1 %vm7780_vm0, %v10548_v28 }
  0xd1   : > { %v829_v3 = vpop.permute.xlu1 %828  ;;  %v826_v4 = vpop.permute.xlu0 %825 }
  0xd2   : > { %vm973_vm1 = vcmp.eq.s32.totalorder %v10814_v17, %v829_v3  ;;  %vm972_vm2 = vcmp.eq.s32.totalorder %v10814_v17, %v826_v4  ;;  %572 = vperm.xlu1 %10312, %v395_v1   ;;  %v420_v1 = vld [vmem:[%s10660_s25 + $0x180] sm:$0xff]  ;;  %v423_v4 = vld [vmem:[%s10660_s25 + $0x198] sm:$0xff] }
  0xd3   : > { %vm7782_vm3 = vmpackc.low %vm973_vm1, %vm972_vm2  ;;  %569 = vperm.xlu0 %10311, %v394_v2  }
  0xd5   : > { %v835_v7 = vpop.permute.xlu1 %834  ;;  %v832_v8 = vpop.permute.xlu0 %831 }
  0xd6   : > { %vm975_vm4 = vcmp.eq.s32.totalorder %v10814_v17, %v835_v7  ;;  %9269 = vmatmul.mubr.msk.bf16.gmra.mrb[20].mxu1 %vm7782_vm3, %v10548_v28  ;;  %vm974_vm5 = vcmp.eq.s32.totalorder %v10814_v17, %v832_v8  ;;  %578 = vperm.xlu1 %10312, %v397_v5   ;;  %v422_v5 = vld [vmem:[%s10660_s25 + $0x190] sm:$0xff]  ;;  %v425_v8 = vld [vmem:[%s10660_s25 + $0x1a8] sm:$0xff] }
  0xd7   : > { %vm7784_vm6 = vmpackc.low %vm975_vm4, %vm974_vm5  ;;  %575 = vperm.xlu0 %10311, %v396_v6  }
  0xd8   : > { %9272 = vmatprep.mubr.msk.bf16.mxu1 %vm7784_vm6, %v10548_v28 }
  0xd9   : > { %v841_v12 = vpop.permute.xlu1 %840  ;;  %v838_v13 = vpop.permute.xlu0 %837 }
  0xda   : > { %vm977_vm7 = vcmp.eq.s32.totalorder %v10814_v17, %v841_v12  ;;  %vm976_vm8 = vcmp.eq.s32.totalorder %v10814_v17, %v838_v13  ;;  %584 = vperm.xlu1 %10312, %v399_v9   ;;  %v424_v9 = vld [vmem:[%s10660_s25 + $0x1a0] sm:$0xff] }
  0xdb   : > { %vm7786_vm9 = vmpackc.low %vm977_vm7, %vm976_vm8  ;;  %581 = vperm.xlu0 %10311, %v398_v11   ;;  %v10321_v11 = vld [vmem:[%s13003_s5 + $0x40] sm:$0xff]  }
  0xdc   : > { %9312 = vmatprep.subr.bf16.mxu0 %v10321_v11 }
  0xdd   : > { %v847_v20 = vpop.permute.xlu1 %846  ;;  %v844_v22 = vpop.permute.xlu0 %843 }
  0xde   : > { %vm979_vm10 = vcmp.eq.s32.totalorder %v10814_v17, %v847_v20  ;;  %9273 = vmatmul.mubr.msk.bf16.gmra.mrb[24].mxu1 %vm7786_vm9, %v10548_v28  ;;  %vm978_vm11 = vcmp.eq.s32.totalorder %v10814_v17, %v844_v22  ;;  %590 = vperm.xlu1 %10312, %v401_v16   ;;  %v427_v16 = vld [vmem:[%s10660_s25 + $0x1b8] sm:$0xff]  ;;  %v10322_v20 = vld [vmem:[%s13003_s5 + $0x48] sm:$0xff]  }
  0xdf   : > { %vm7788_vm12 = vmpackc.low %vm979_vm10, %vm978_vm11  ;;  %587 = vperm.xlu0 %10311, %v400_v19   ;;  %v426_v19 = vld [vmem:[%s10660_s25 + $0x1b0] sm:$0xff] }
  0xe0   : > { %9276 = vmatprep.mubr.msk.bf16.mxu1 %vm7788_vm12, %v10548_v28 }
  0xe1   : > { %v853_v26 = vpop.permute.xlu1 %852  ;;  %v850_v29 = vpop.permute.xlu0 %849 }
  0xe2   : > { %vm981_vm13 = vcmp.eq.s32.totalorder %v10814_v17, %v853_v26  ;;  %vm980_vm14 = vcmp.eq.s32.totalorder %v10814_v17, %v850_v29  ;;  %596 = vperm.xlu1 %10312, %v403_v23   ;;  %v428_v26 = vld [vmem:[%s10660_s25 + $0x1c0] sm:$0xff]  ;;  %v10323_v29 = vld [vmem:[%s13003_s5 + $0x50] sm:$0xff]  }
  0xe3   : > { %vm7790_vm15 = vmpackc.low %vm981_vm13, %vm980_vm14  ;;  %593 = vperm.xlu0 %10311, %v402_v25   ;;  %v429_v25 = vld [vmem:[%s10660_s25 + $0x1c8] sm:$0xff] }
  0xe5   : > { %v859_v34 = vpop.permute.xlu1 %858  ;;  %v856_v35 = vpop.permute.xlu0 %855 }
  0xe6   : > { %vm983_vm0 = vcmp.eq.s32.totalorder %v10814_v17, %v859_v34  ;;  %9277 = vmatmul.mubr.msk.bf16.gmra.mrb[28].mxu1 %vm7790_vm15, %v10548_v28  ;;  %vm982_vm1 = vcmp.eq.s32.totalorder %v10814_v17, %v856_v35  ;;  %602 = vperm.xlu1 %10312, %v405_v31   ;;  %v431_v34 = vld [vmem:[%s10660_s25 + $0x1d8] sm:$0xff]  ;;  %v430_v35 = vld [vmem:[%s10660_s25 + $0x1d0] sm:$0xff] }
  0xe7   : > { %vm7792_vm2 = vmpackc.low %vm983_vm0, %vm982_vm1  ;;  %599 = vperm.xlu0 %10311, %v404_v32  }
  0xe8   : > { %9280 = vmatprep.mubr.msk.bf16.mxu1 %vm7792_vm2, %v10548_v28 }
  0xe9   : > { %v865_v38 = vpop.permute.xlu1 %864  ;;  %v862_v39 = vpop.permute.xlu0 %861 }
  0xea   : > { %vm985_vm3 = vcmp.eq.s32.totalorder %v10814_v17, %v865_v38  ;;  %vm984_vm4 = vcmp.eq.s32.totalorder %v10814_v17, %v862_v39  ;;  %608 = vperm.xlu1 %10312, %v407_v36   ;;  %v10324_v36 = vld [vmem:[%s13003_s5 + $0x58] sm:$0xff]   ;;  %v433_v39 = vld [vmem:[%s10660_s25 + $0x1e8] sm:$0xff] }
  0xeb   : > { %vm7794_vm5 = vmpackc.low %vm985_vm3, %vm984_vm4  ;;  %605 = vperm.xlu0 %10311, %v406_v37  }
  0xed   : > { %v871_v42 = vpop.permute.xlu1 %870  ;;  %v868_v43 = vpop.permute.xlu0 %867 }
  0xee   : > { %vm987_vm6 = vcmp.eq.s32.totalorder %v10814_v17, %v871_v42  ;;  %9281 = vmatmul.mubr.msk.bf16.gmra.mrb[32].mxu1 %vm7794_vm5, %v10548_v28  ;;  %vm986_vm7 = vcmp.eq.s32.totalorder %v10814_v17, %v868_v43  ;;  %614 = vperm.xlu1 %10312, %v409_v40   ;;  %v432_v40 = vld [vmem:[%s10660_s25 + $0x1e0] sm:$0xff] }
  0xef   : > { %vm7796_vm8 = vmpackc.low %vm987_vm6, %vm986_vm7  ;;  %611 = vperm.xlu0 %10311, %v408_v41   ;;  %v10325_v41 = vld [vmem:[%s13003_s5 + $0x60] sm:$0xff]  }
  0xf0   : > { %9284 = vmatprep.mubr.msk.bf16.mxu1 %vm7796_vm8, %v10548_v28 }
  0xf1   : > { %v877_v46 = vpop.permute.xlu1 %876  ;;  %v874_v47 = vpop.permute.xlu0 %873 }
  0xf2   : > { %vm989_vm9 = vcmp.eq.s32.totalorder %v10814_v17, %v877_v46  ;;  %vm988_vm10 = vcmp.eq.s32.totalorder %v10814_v17, %v874_v47  ;;  %620 = vperm.xlu1 %10312, %v411_v44   ;;  %v435_v44 = vld [vmem:[%s10660_s25 + $0x1f8] sm:$0xff]  ;;  %v10326_v46 = vld [vmem:[%s13003_s5 + $0x68] sm:$0xff]  }
  0xf3   : > { %vm7798_vm11 = vmpackc.low %vm989_vm9, %vm988_vm10  ;;  %617 = vperm.xlu0 %10311, %v410_v45   ;;  %v434_v45 = vld [vmem:[%s10660_s25 + $0x1f0] sm:$0xff] }
  0xf5   : > { %v883_v50 = vpop.permute.xlu1 %882  ;;  %v880_v51 = vpop.permute.xlu0 %879 }
  0xf6   : > { %vm991_vm12 = vcmp.eq.s32.totalorder %v10814_v17, %v883_v50  ;;  %9285 = vmatmul.mubr.msk.bf16.gmra.mrb[36].mxu1 %vm7798_vm11, %v10548_v28  ;;  %vm990_vm13 = vcmp.eq.s32.totalorder %v10814_v17, %v880_v51  ;;  %626 = vperm.xlu1 %10312, %v413_v48  }
  0xf7   : > { %vm7800_vm14 = vmpackc.low %vm991_vm12, %vm990_vm13  ;;  %623 = vperm.xlu0 %10311, %v412_v49   ;;  %v10327_v49 = vld [vmem:[%s13003_s5 + $0x70] sm:$0xff]  }
  0xf8   : > { %9288 = vmatprep.mubr.msk.bf16.mxu1 %vm7800_vm14, %v10548_v28 }
  0xf9   : > { %v889_v54 = vpop.permute.xlu1 %888  ;;  %v886_v55 = vpop.permute.xlu0 %885 }
  0xfa   : > { %vm993_vm15 = vcmp.eq.s32.totalorder %v10814_v17, %v889_v54  ;;  %vm992_vm0 = vcmp.eq.s32.totalorder %v10814_v17, %v886_v55  ;;  %632 = vperm.xlu1 %10312, %v415_v52   ;;  %v10328_v52 = vld [vmem:[%s13003_s5 + $0x78] sm:$0xff]  }
  0xfb   : > { %vm7802_vm1 = vmpackc.low %vm993_vm15, %vm992_vm0  ;;  %629 = vperm.xlu0 %10311, %v414_v53  }
  0xfd   : > { %v895_v58 = vpop.permute.xlu1 %894  ;;  %v892_v59 = vpop.permute.xlu0 %891 }
  0xfe   : > { %vm995_vm2 = vcmp.eq.s32.totalorder %v10814_v17, %v895_v58  ;;  %9289 = vmatmul.mubr.msk.bf16.gmra.mrb[40].mxu1 %vm7802_vm1, %v10548_v28  ;;  %vm994_vm3 = vcmp.eq.s32.totalorder %v10814_v17, %v892_v59  ;;  %638 = vperm.xlu1 %10312, %v417_v56  }
  0xff   : > { %vm7804_vm4 = vmpackc.low %vm995_vm2, %vm994_vm3  ;;  %635 = vperm.xlu0 %10311, %v416_v57   ;;  %v11081_v57 = vshrl.u32 %v500_v10, 7 }
 0x100   : > { %9292 = vmatprep.mubr.msk.bf16.mxu1 %vm7804_vm4, %v10548_v28 }
 0x101   : > { %v901_v62 = vpop.permute.xlu1 %900  ;;  %v898_v63 = vpop.permute.xlu0 %897 }
 0x102   : > { %vm997_vm5 = vcmp.eq.s32.totalorder %v10814_v17, %v901_v62  ;;  %vm996_vm6 = vcmp.eq.s32.totalorder %v10814_v17, %v898_v63  ;;  %644 = vperm.xlu1 %10312, %v419_v60   ;;  %v5371_v60 = vadd.s32 8, %v11081_v57  ;;  %v5373_v63 = vadd.s32 24, %v11081_v57 }
 0x103   : > { %vm7806_vm7 = vmpackc.low %vm997_vm5, %vm996_vm6  ;;  %641 = vperm.xlu0 %10311, %v418_v61   ;;  %v11087_v61 = vstv %s13093_s13 }
 0x105   : > { %v10935_v2 = vpop.permute.xlu1 %506  ;;  %v10937_v3 = vpop.permute.xlu0 %503 }
 0x106   : > { %9293 = vmatmul.mubr.msk.bf16.gmra.mrb[44].mxu1 %vm7806_vm7, %v10548_v28  ;;  %vm695_vm8 = vcmp.eq.s32.totalorder %v10814_v17, %v10935_v2  ;;  %vm694_vm9 = vcmp.eq.s32.totalorder %v10814_v17, %v10937_v3  ;;  %650 = vperm.xlu1 %10312, %v421_v0   ;;  %v5372_v0 = vadd.s32 16, %v11081_v57  ;;  %v5376_v2 = vadd.s32 48, %v11081_v57 }
 0x107   : > { %647 = vperm.xlu0 %10311, %v420_v1   ;;  %vm7696_vm10 = vmpackc.low %vm695_vm8, %vm694_vm9 }
 0x108   : > { %9168 = vmatprep.mubr.msk.bf16.mxu0 %vm7696_vm10, %v10548_v28 }
 0x109   : > { %v10952_v6 = vpop.permute.xlu1 %512  ;;  %v10954_v7 = vpop.permute.xlu0 %509 }
 0x10a   : > { %vm697_vm11 = vcmp.eq.s32.totalorder %v10814_v17, %v10952_v6  ;;  %vm696_vm12 = vcmp.eq.s32.totalorder %v10814_v17, %v10954_v7  ;;  %656 = vperm.xlu1 %10312, %v423_v4   ;;  %v5375_v4 = vadd.s32 40, %v11081_v57  ;;  %v5378_v6 = vadd.s32 64, %v11081_v57 }
 0x10b   : > { %653 = vperm.xlu0 %10311, %v422_v5   ;;  %vm7698_vm13 = vmpackc.low %vm697_vm11, %vm696_vm12  ;;  %v5387_v7 = vadd.s32 136, %v11081_v57 }
 0x10c   : > { %9169 = vmatmul.mubr.msk.bf16.vlgmr.msra.gmra.mrb[0].mxu0 %vm7698_vm13, %v10548_v28 }
 0x10d   : > { %v907_v12 = vpop.permute.xlu1 %906  ;;  %v904_v13 = vpop.permute.xlu0 %903  ;;  %9313 = vmatpush3.bf16.msra.mxu0 %v10321_v11  ;;  %v5377_v11 = vadd.s32 56, %v11081_v57 }
 0x10e   : > { %vm999_vm14 = vcmp.eq.s32.totalorder %v10814_v17, %v907_v12  ;;  %vm998_vm15 = vcmp.eq.s32.totalorder %v10814_v17, %v904_v13  ;;  %662 = vperm.xlu1 %10312, %v425_v8   ;;  %9314 = vmatprep.subr.bf16.mxu0 %v10322_v20  ;;  %v5393_v8 = vadd.s32 184, %v11081_v57 }
 0x10f   : > { %vm7808_vm0 = vmpackc.low %vm999_vm14, %vm998_vm15  ;;  %659 = vperm.xlu0 %10311, %v424_v9   ;;  %v5374_v9 = vadd.s32 32, %v11081_v57 }
 0x110   : > { %9296 = vmatprep.mubr.msk.bf16.mxu1 %vm7808_vm0, %v10548_v28 }
 0x111   : > { %v913_v22 = vpop.permute.xlu1 %912  ;;  %v910_v23 = vpop.permute.xlu0 %909  ;;  %9315 = vmatpush3.bf16.msra.mxu0 %v10322_v20  ;;  %v10549_v20 = vmov 0.0  }
 0x112   : > { %vm1001_vm1 = vcmp.eq.s32.totalorder %v10814_v17, %v913_v22  ;;  %vm1000_vm2 = vcmp.eq.s32.totalorder %v10814_v17, %v910_v23  ;;  %668 = vperm.xlu1 %10312, %v427_v16   ;;  %9316 = vmatprep.subr.bf16.mxu0 %v10323_v29  ;;  %v5379_v16 = vadd.s32 72, %v11081_v57 }
 0x113   : > { %vm7810_vm3 = vmpackc.low %vm1001_vm1, %vm1000_vm2  ;;  %665 = vperm.xlu0 %10311, %v426_v19   ;;  %v5385_v19 = vadd.s32 120, %v11081_v57 }
 0x114   : > { %9297 = vmatmul.mubr.msk.bf16.gmra.mrb[48].mxu1 %vm7810_vm3, %v10548_v28 }
 0x115   : > { %v10989_v31 = vpop.permute.xlu1 %518  ;;  %v10991_v32 = vpop.permute.xlu0 %515  ;;  %9317 = vmatpush3.bf16.msra.mxu0 %v10323_v29  ;;  %v5404_v29 = vadd.s32 272, %v11081_v57 }
 0x116   : > { %vm699_vm4 = vcmp.eq.s32.totalorder %v10814_v17, %v10989_v31  ;;  %vm698_vm5 = vcmp.eq.s32.totalorder %v10814_v17, %v10991_v32  ;;  %674 = vperm.xlu1 %10312, %v429_v25   ;;  %9318 = vmatprep.subr.bf16.mxu0 %v10324_v36  ;;  %v5381_v31 = vadd.s32 88, %v11081_v57  ;;  %v5380_v32 = vadd.s32 80, %v11081_v57 }
 0x117   : > { %671 = vperm.xlu0 %10311, %v428_v26   ;;  %vm7700_vm6 = vmpackc.low %vm699_vm4, %vm698_vm5 }
 0x118   : > { %9172 = vmatprep.mubr.msk.bf16.mxu0 %vm7700_vm6, %v10548_v28 }
 0x119   : > { %v11009_v37 = vpop.permute.xlu1 %524  ;;  %v11011_v38 = vpop.permute.xlu0 %521  ;;  %9319 = vmatpush3.bf16.msra.mxu0 %v10324_v36 }
 0x11a   : > { %vm701_vm7 = vcmp.eq.s32.totalorder %v10814_v17, %v11009_v37  ;;  %vm13015_vm10 = vcmp.eq.s32.totalorder %v10814_v17, %v11011_v38  ;;  %680 = vperm.xlu1 %10312, %v431_v34   ;;  %9320 = vmatprep.subr.bf16.mxu0 %v10325_v41  ;;  %v5389_v37 = vadd.s32 152, %v11081_v57 }
 0x11b   : > { %677 = vperm.xlu0 %10311, %v430_v35   ;;  %vm7702_vm13 = vmpackc.low %vm701_vm7, %vm13015_vm10  ;;  %vm5440_vm10 = vcmp.lt.s32.totalorder %v5375_v4, %v11087_v61  ;;  %v5386_v35 = vadd.s32 128, %v11081_v57 }
 0x11c   : > { %9173 = vmatmul.mubr.msk.bf16.gmra.mrb[4].mxu0 %vm7702_vm13, %v10548_v28 }
 0x11d   : > { %v919_v42 = vpop.permute.xlu1 %918  ;;  %v916_v43 = vpop.permute.xlu0 %915  ;;  %9321 = vmatpush3.bf16.msra.mxu0 %v10325_v41 }
 0x11e   : > { %vm1003_vm14 = vcmp.eq.s32.totalorder %v10814_v17, %v919_v42  ;;  %vm1002_vm15 = vcmp.eq.s32.totalorder %v10814_v17, %v916_v43  ;;  %686 = vperm.xlu1 %10312, %v433_v39   ;;  %9322 = vmatprep.subr.bf16.mxu0 %v10326_v46 }
 0x11f   : > { %vm7812_vm0 = vmpackc.low %vm1003_vm14, %vm1002_vm15  ;;  %683 = vperm.xlu0 %10311, %v432_v40  }
 0x120   : > { %9300 = vmatprep.mubr.msk.bf16.mxu1 %vm7812_vm0, %v10548_v28 }
 0x121   : > { %v925_v47 = vpop.permute.xlu1 %924  ;;  %v922_v48 = vpop.permute.xlu0 %921  ;;  %9323 = vmatpush3.bf16.msra.mxu0 %v10326_v46  ;;  %v5388_v46 = vadd.s32 144, %v11081_v57 }
 0x122   : > { %vm1005_vm1 = vcmp.eq.s32.totalorder %v10814_v17, %v925_v47  ;;  %vm1004_vm2 = vcmp.eq.s32.totalorder %v10814_v17, %v922_v48  ;;  %692 = vperm.xlu1 %10312, %v435_v44   ;;  %9324 = vmatprep.subr.bf16.mxu0 %v10327_v49  ;;  %v5383_v48 = vadd.s32 104, %v11081_v57 }
 0x123   : > { %vm7814_vm3 = vmpackc.low %vm1005_vm1, %vm1004_vm2  ;;  %689 = vperm.xlu0 %10311, %v434_v45  }
 0x124   : > { %9301 = vmatmul.mubr.msk.bf16.gmra.mrb[52].mxu1 %vm7814_vm3, %v10548_v28 }
 0x125   : > { %v11043_v50 = vpop.permute.xlu1 %530  ;;  %v11045_v51 = vpop.permute.xlu0 %527  ;;  %9325 = vmatpush3.bf16.msra.mxu0 %v10327_v49 }
 0x126   : > { %vm13014_vm6 = vcmp.eq.s32.totalorder %v10814_v17, %v11043_v50  ;;  %vm13009_vm13 = vcmp.eq.s32.totalorder %v10814_v17, %v11045_v51  ;;  %9326 = vmatprep.subr.bf16.mxu0 %v10328_v52 }
 0x127   : > { %vm7704_vm14 = vmpackc.low %vm13014_vm6, %vm13009_vm13 }
 0x128   : > { %9176 = vmatprep.mubr.msk.bf16.mxu0 %vm7704_vm14, %v10548_v28 }
 0x129   : > { %v11061_v53 = vpop.permute.xlu1 %536  ;;  %v11063_v54 = vpop.permute.xlu0 %533  ;;  %9327 = vmatpush3.bf16.msra.mxu0 %v10328_v52 }
 0x12a   : > { %vm13011_vm15 = vcmp.eq.s32.totalorder %v10814_v17, %v11061_v53  ;;  %vm13010_vm0 = vcmp.eq.s32.totalorder %v10814_v17, %v11063_v54 }
 0x12b   : > { %vm7706_vm1 = vmpackc.low %vm13011_vm15, %vm13010_vm0 }
 0x12c   : > { %9177 = vmatmul.mubr.msk.bf16.gmra.mrb[8].mxu0 %vm7706_vm1, %v10548_v28 }
 0x12d   : > { %v931_v55 = vpop.permute.xlu1 %930 }
 0x12e   : > { %vm1007_vm2 = vcmp.eq.s32.totalorder %v10814_v17, %v931_v55  ;;  %v928_v56 = vpop.permute.xlu0 %927 }
 0x12f   : > { %vm1006_vm3 = vcmp.eq.s32.totalorder %v10814_v17, %v928_v56 }
 0x130   : > { %vm7816_vm14 = vmpackc.low %vm1007_vm2, %vm1006_vm3 }
 0x131   : > { %9304 = vmatprep.mubr.msk.bf16.mxu1 %vm7816_vm14, %v10548_v28  ;;  %v937_v58 = vpop.permute.xlu1 %936  ;;  %vm5436_vm14 = vcmp.lt.s32.totalorder %v5371_v60, %v11087_v61  ;;  %v5390_v60 = vadd.s32 160, %v11081_v57 }
 0x132   : > { %vm1009_vm13 = vcmp.eq.s32.totalorder %v10814_v17, %v937_v58  ;;  %v934_v59 = vpop.permute.xlu0 %933  ;;  %vm11120_vm15 = vmand %vm695_vm8, %vm5436_vm14  ;;  %v5398_v58 = vadd.s32 224, %v11081_v57 }
 0x133   : > { %vm1008_vm0 = vcmp.eq.s32.totalorder %v10814_v17, %v934_v59  ;;  %v5692_v22 = vsel %vm11120_vm15, 1.0, %v10549_v20 }
 0x134   : > { %vm7818_vm1 = vmpackc.low %vm1009_vm13, %vm1008_vm0  ;;  %vm5435_vm0 = vcmp.lt.s32.totalorder %v11081_v57, %v11087_v61 }
 0x135   : > { %9305 = vmatmul.mubr.msk.bf16.gmra.mrb[56].mxu1 %vm7818_vm1, %v10548_v28  ;;  %v11090_v62 = vpop.permute.xlu1 %542  ;;  %vm5627_vm14 = vmand %vm694_vm9, %vm5435_vm0  ;;  %vm5439_vm0 = vcmp.lt.s32.totalorder %v5374_v9, %v11087_v61 }
 0x136   : > { %vm13013_vm2 = vcmp.eq.s32.totalorder %v10814_v17, %v11090_v62  ;;  %v11094_v10 = vpop.permute.xlu0 %539  ;;  %v5691_v23 = vsel %vm5627_vm14, 1.0, %v10549_v20  ;;  %vm11179_vm15 = vmand %vm698_vm5, %vm5439_vm0  ;;  %vm5443_vm5 = vcmp.lt.s32.totalorder %v5378_v6, %v11087_v61 }
 0x137   : > { %vm13012_vm3 = vcmp.eq.s32.totalorder %v10814_v17, %v11094_v10  ;;  %v5755_v36 = vpack.c.bf16 %v5692_v22, %v5691_v23  ;;  %v5695_v52 = vsel %vm11179_vm15, 1.0, %v10549_v20  ;;  %v5395_v23 = vadd.s32 200, %v11081_v57 }
 0x138   : > { %vm7708_vm13 = vmpackc.low %vm13013_vm2, %vm13012_vm3  ;;  %vm5437_vm2 = vcmp.lt.s32.totalorder %v5372_v0, %v11087_v61 }
 0x139   : > { %9180 = vmatprep.mubr.msk.bf16.mxu0 %vm7708_vm13, %v10548_v28  ;;  %v11108_v1 = vpop.permute.xlu1 %548  ;;  %vm5438_vm13 = vcmp.lt.s32.totalorder %v5373_v63, %v11087_v61  ;;  %vm11154_vm9 = vmand %vm696_vm12, %vm5437_vm2  ;;  %vm5441_vm2 = vcmp.lt.s32.totalorder %v5376_v2, %v11087_v61  ;;  %v5382_v63 = vadd.s32 96, %v11081_v57 }
 0x13a   : > { %vm13017_vm1 = vcmp.eq.s32.totalorder %v10814_v17, %v11108_v1  ;;  %v11115_v5 = vpop.permute.xlu0 %545  ;;  %vm11144_vm6 = vmand %vm697_vm11, %vm5438_vm13  ;;  %vm5442_vm13 = vcmp.lt.s32.totalorder %v5377_v11, %v11087_v61  ;;  %v5693_v41 = vsel %vm11154_vm9, 1.0, %v10549_v20 }
 0x13b   : > { %vm13016_vm3 = vcmp.eq.s32.totalorder %v10814_v17, %v11115_v5  ;;  %vm11170_vm12 = vmand %vm699_vm4, %vm5440_vm10  ;;  %v5694_v40 = vsel %vm11144_vm6, 1.0, %v10549_v20  ;;  %vm13047_vm6 = vcmp.eq.s32.totalorder %v10814_v17, %v11043_v50  ;;  %v5391_v50 = vadd.s32 168, %v11081_v57 }
 0x13c   : > { %vm7710_vm8 = vmpackc.low %vm13017_vm1, %vm13016_vm3  ;;  %v5756_v47 = vpack.c.bf16 %v5694_v40, %v5693_v41  ;;  %v5397_v40 = vadd.s32 216, %v11081_v57 }
 0x13d   : > { %9181 = vmatmul.mubr.msk.bf16.gmra.mrb[12].mxu0 %vm7710_vm8, %v10548_v28  ;;  %v943_v12 = vpop.permute.xlu1 %942  ;;  %vm11190_vm10 = vmand %vm701_vm7, %vm5442_vm13  ;;  %vm5452_vm7 = vcmp.lt.s32.totalorder %v5387_v7, %v11087_v61 }
 0x13e   : > { %vm1011_vm3 = vcmp.eq.s32.totalorder %v10814_v17, %v943_v12  ;;  %v940_v3 = vpop.permute.xlu0 %939  ;;  %v5698_v9 = vsel %vm11190_vm10, 1.0, %v10549_v20 }
 0x13f   : > { %vm1010_vm11 = vcmp.eq.s32.totalorder %v10814_v17, %v940_v3  ;;  %v5392_v3 = vadd.s32 176, %v11081_v57 }
 0x140   : > { %vm7820_vm8 = vmpackc.low %vm1011_vm3, %vm1010_vm11  ;;  %vm5444_vm3 = vcmp.lt.s32.totalorder %v5379_v16, %v11087_v61  ;;  %vm13044_vm11 = vcmp.eq.s32.totalorder %v10814_v17, %v11011_v38 }
 0x141   : > { %9308 = vmatprep.mubr.msk.bf16.mxu1 %vm7820_vm8, %v10548_v28  ;;  %v949_v26 = vpop.permute.xlu1 %948  ;;  %vm11210_vm13 = vmand %vm13044_vm11, %vm5441_vm2  ;;  %vm13050_vm8 = vcmp.eq.s32.totalorder %v10814_v17, %v11045_v51  ;;  %v5696_v51 = vsel %vm11170_vm12, 1.0, %v10549_v20  ;;  %vm13056_vm12 = vcmp.eq.s32.totalorder %v10814_v17, %v11063_v54 }
 0x142   : > { %vm1013_vm4 = vcmp.eq.s32.totalorder %v10814_v17, %v949_v26  ;;  %v946_v34 = vpop.permute.xlu0 %945  ;;  %vm11220_vm9 = vmand %vm13047_vm6, %vm5444_vm3  ;;  %vm5445_vm3 = vcmp.lt.s32.totalorder %v5380_v32, %v11087_v61  ;;  %v5757_v54 = vpack.c.bf16 %v5696_v51, %v5695_v52  ;;  %v5697_v11 = vsel %vm11210_vm13, 1.0, %v10549_v20 }
 0x143   : > { %vm1012_vm14 = vcmp.eq.s32.totalorder %v10814_v17, %v946_v34  ;;  %vm11227_vm2 = vmand %vm13050_vm8, %vm5443_vm5  ;;  %vm5454_vm8 = vcmp.lt.s32.totalorder %v5389_v37, %v11087_v61  ;;  %vm5455_vm13 = vcmp.lt.s32.totalorder %v5390_v60, %v11087_v61  ;;  %v5700_v7 = vsel %vm11220_vm9, 1.0, %v10549_v20 }
 0x144   : > { %vm7822_vm0 = vmpackc.low %vm1013_vm4, %vm1012_vm14  ;;  %vm5446_vm4 = vcmp.lt.s32.totalorder %v5381_v31, %v11087_v61  ;;  %v5699_v25 = vsel %vm11227_vm2, 1.0, %v10549_v20  ;;  %vm5457_vm2 = vcmp.lt.s32.totalorder %v5392_v3, %v11087_v61  ;;  %v5401_v60 = vadd.s32 248, %v11081_v57 }
 0x145   : > { %9309 = vmatmul.mubr.msk.bf16.gmra.mrb[60].mxu1 %vm7822_vm0, %v10548_v28  ;;  %v555_v43 = vpop.permute.xlu1 %554  ;;  %5995 = vxpose.xlu1.c.b16.start [1/8] %v5755_v36, 128  ;;  %vm5451_vm0 = vcmp.lt.s32.totalorder %v5386_v35, %v11087_v61  ;;  %vm11264_vm15 = vmand %vm13056_vm12, %vm5445_vm3  ;;  %v5394_v35 = vadd.s32 192, %v11081_v57  ;;  %v5384_v36 = vadd.s32 112, %v11081_v57 }
 0x146   : > { %vm711_vm14 = vcmp.eq.s32.totalorder %v10814_v17, %v555_v43  ;;  %v552_v45 = vpop.permute.xlu0 %551  ;;  %v5701_v37 = vsel %vm11264_vm15, 1.0, %v10549_v20 }
 0x147   : > { %vm5644_vm5 = vmand %vm711_vm14, %vm5452_vm7  ;;  %vm710_vm11 = vcmp.eq.s32.totalorder %v10814_v17, %v552_v45  ;;  %vm13053_vm7 = vcmp.eq.s32.totalorder %v10814_v17, %v11061_v53  ;;  %vm5459_vm15 = vcmp.lt.s32.totalorder %v5394_v35, %v11087_v61  ;;  %v5396_v45 = vadd.s32 208, %v11081_v57 }
 0x148   : > { %v5708_v49 = vsel %vm5644_vm5, 1.0, %v10549_v20  ;;  %vm7712_vm6 = vmpackc.low %vm711_vm14, %vm710_vm11  ;;  %vm5453_vm5 = vcmp.lt.s32.totalorder %v5388_v46, %v11087_v61  ;;  %v5407_v35 = vadd.s32 296, %v11081_v57 }
 0x149   : > { %vm5643_vm1 = vmand %vm710_vm11, %vm5451_vm0  ;;  %9184 = vmatprep.mubr.msk.bf16.mxu0 %vm7712_vm6, %v10548_v28  ;;  %v561_v55 = vpop.permute.xlu1 %560  ;;  %5996 = vxpose.xlu1.c.b16.cont [2/8] %v5756_v47, 128  ;;  %vm5456_vm6 = vcmp.lt.s32.totalorder %v5391_v50, %v11087_v61 }
 0x14a   : > { %vm11255_vm14 = vmand %vm13053_vm7, %vm5446_vm4  ;;  %v5707_v59 = vsel %vm5643_vm1, 1.0, %v10549_v20  ;;  %vm713_vm0 = vcmp.eq.s32.totalorder %v10814_v17, %v561_v55  ;;  %v558_v53 = vpop.permute.xlu0 %557  ;;  %vm5448_vm4 = vcmp.lt.s32.totalorder %v5383_v48, %v11087_v61  ;;  %vm13059_vm7 = vcmp.eq.s32.totalorder %v10814_v17, %v11090_v62 }
 0x14b   : > { %v5763_v0 = vpack.c.bf16 %v5708_v49, %v5707_v59  ;;  %vm5646_vm3 = vmand %vm713_vm0, %vm5454_vm8  ;;  %vm712_vm11 = vcmp.eq.s32.totalorder %v10814_v17, %v558_v53  ;;  %v5758_v62 = vpack.c.bf16 %v5698_v9, %v5697_v11  ;;  %v5702_v41 = vsel %vm11255_vm14, 1.0, %v10549_v20 }
 0x14c   : > { %v5710_v4 = vsel %vm5646_vm3, 1.0, %v10549_v20  ;;  %vm7714_vm1 = vmpackc.low %vm713_vm0, %vm712_vm11  ;;  %vm5447_vm0 = vcmp.lt.s32.totalorder %v5382_v63, %v11087_v61  ;;  %v5399_v48 = vadd.s32 232, %v11081_v57  ;;  %v5400_v9 = vadd.s32 240, %v11081_v57 }
 0x14d   : > { %vm5645_vm8 = vmand %vm712_vm11, %vm5453_vm5  ;;  %6011 = vxpose.xlu0.c.b16.start [1/8] %v5763_v0, 128  ;;  %9185 = vmatmul.mubr.msk.bf16.gmra.mrb[16].mxu0 %vm7714_vm1, %v10548_v28  ;;  %v567_v2 = vpop.permute.xlu1 %566  ;;  %vm5458_vm11 = vcmp.lt.s32.totalorder %v5393_v8, %v11087_v61 }
 0x14e   : > { %vm11294_vm12 = vmand %vm13059_vm7, %vm5448_vm4  ;;  %v5709_v13 = vsel %vm5645_vm8, 1.0, %v10549_v20  ;;  %vm715_vm10 = vcmp.eq.s32.totalorder %v10814_v17, %v567_v2  ;;  %5997 = vxpose.xlu1.c.b16.cont [3/8] %v5757_v54, 128  ;;  %v564_v16 = vpop.permute.xlu0 %563  ;;  %vm5450_vm7 = vcmp.lt.s32.totalorder %v5385_v19, %v11087_v61 }
 0x14f   : > { %v5764_v6 = vpack.c.bf16 %v5710_v4, %v5709_v13  ;;  %vm5648_vm5 = vmand %vm715_vm10, %vm5456_vm6  ;;  %vm714_vm4 = vcmp.eq.s32.totalorder %v10814_v17, %v564_v16  ;;  %vm13062_vm6 = vcmp.eq.s32.totalorder %v10814_v17, %v11094_v10  ;;  %v5759_v10 = vpack.c.bf16 %v5700_v7, %v5699_v25 }
 0x150   : > { %v5712_v22 = vsel %vm5648_vm5, 1.0, %v10549_v20  ;;  %vm7716_vm3 = vmpackc.low %vm715_vm10, %vm714_vm4  ;;  %vm5460_vm5 = vcmp.lt.s32.totalorder %v5395_v23, %v11087_v61  ;;  %v5704_v49 = vsel %vm11294_vm12, 1.0, %v10549_v20  ;;  %v5403_v13 = vadd.s32 264, %v11081_v57 }
 0x151   : > { %vm5647_vm1 = vmand %vm714_vm4, %vm5455_vm13  ;;  %6012 = vxpose.xlu0.c.b16.cont [2/8] %v5764_v6, 128  ;;  %9188 = vmatprep.mubr.msk.bf16.mxu0 %vm7716_vm3, %v10548_v28  ;;  %v573_v26 = vpop.permute.xlu1 %572  ;;  %vm13065_vm3 = vcmp.eq.s32.totalorder %v10814_v17, %v11108_v1  ;;  %v5760_v1 = vpack.c.bf16 %v5702_v41, %v5701_v37  ;;  %v5402_v6 = vadd.s32 256, %v11081_v57  ;;  %v5405_v23 = vadd.s32 280, %v11081_v57 }
 0x152   : > { %vm11324_vm8 = vmand %vm13062_vm6, %vm5447_vm0  ;;  %v5711_v31 = vsel %vm5647_vm1, 1.0, %v10549_v20  ;;  %vm717_vm9 = vcmp.eq.s32.totalorder %v10814_v17, %v573_v26  ;;  %5998 = vxpose.xlu1.c.b16.cont [4/8] %v5758_v62, 128  ;;  %v570_v34 = vpop.permute.xlu0 %569  ;;  %vm5449_vm1 = vcmp.lt.s32.totalorder %v5384_v36, %v11087_v61  ;;  %v5409_v37 = vadd.s32 312, %v11081_v57 }
 0x153   : > { %v5765_v39 = vpack.c.bf16 %v5712_v22, %v5711_v31  ;;  %vm5650_vm10 = vmand %vm717_vm9, %vm5458_vm11  ;;  %vm716_vm13 = vcmp.eq.s32.totalorder %v10814_v17, %v570_v34  ;;  %v5703_v50 = vsel %vm11324_vm8, 1.0, %v10549_v20  ;;  %vm5461_vm8 = vcmp.lt.s32.totalorder %v5396_v45, %v11087_v61 }
 0x154   : > { %v5714_v32 = vsel %vm5650_vm10, 1.0, %v10549_v20  ;;  %vm7718_vm0 = vmpackc.low %vm717_vm9, %vm716_vm13 }
 0x155   : > { %vm5649_vm4 = vmand %vm716_vm13, %vm5457_vm2  ;;  %6013 = vxpose.xlu0.c.b16.cont [3/8] %v5765_v39, 128  ;;  %9189 = vmatmul.mubr.msk.bf16.gmra.mrb[20].mxu0 %vm7718_vm0, %v10548_v28  ;;  %v579_v42 = vpop.permute.xlu1 %578  ;;  %vm13068_vm13 = vcmp.eq.s32.totalorder %v10814_v17, %v11115_v5  ;;  %v5761_v5 = vpack.c.bf16 %v5704_v49, %v5703_v50  ;;  %v5410_v50 = vadd.s32 320, %v11081_v57 }
 0x156   : > { %vm11354_vm11 = vmand %vm13065_vm3, %vm5450_vm7  ;;  %v5713_v44 = vsel %vm5649_vm4, 1.0, %v10549_v20  ;;  %vm719_vm14 = vcmp.eq.s32.totalorder %v10814_v17, %v579_v42  ;;  %5999 = vxpose.xlu1.c.b16.cont [5/8] %v5759_v10, 128  ;;  %v576_v38 = vpop.permute.xlu0 %575  ;;  %vm5462_vm7 = vcmp.lt.s32.totalorder %v5397_v40, %v11087_v61 }
 0x157   : > { %v5766_v46 = vpack.c.bf16 %v5714_v32, %v5713_v44  ;;  %vm5652_vm6 = vmand %vm719_vm14, %vm5460_vm5  ;;  %vm718_vm9 = vcmp.eq.s32.totalorder %v10814_v17, %v576_v38  ;;  %v5706_v63 = vsel %vm11354_vm11, 1.0, %v10549_v20  ;;  %v5406_v32 = vadd.s32 288, %v11081_v57 }
 0x158   : > { %v5716_v47 = vsel %vm5652_vm6, 1.0, %v10549_v20  ;;  %vm7720_vm2 = vmpackc.low %vm719_vm14, %vm718_vm9  ;;  %vm5464_vm14 = vcmp.lt.s32.totalorder %v5399_v48, %v11087_v61  ;;  %vm5463_vm6 = vcmp.lt.s32.totalorder %v5398_v58, %v11087_v61  ;;  %v5408_v38 = vadd.s32 304, %v11081_v57 }
 0x159   : > { %vm5651_vm10 = vmand %vm718_vm9, %vm5459_vm15  ;;  %6014 = vxpose.xlu0.c.b16.cont [4/8] %v5766_v46, 128  ;;  %9192 = vmatprep.mubr.msk.bf16.mxu0 %vm7720_vm2, %v10548_v28  ;;  %v585_v51 = vpop.permute.xlu1 %584 }
 0x15a   : > { %vm11381_vm0 = vmand %vm13068_vm13, %vm5449_vm1  ;;  %v5715_v55 = vsel %vm5651_vm10, 1.0, %v10549_v20  ;;  %vm721_vm12 = vcmp.eq.s32.totalorder %v10814_v17, %v585_v51  ;;  %6000 = vxpose.xlu1.c.b16.cont [6/8] %v5760_v1, 128  ;;  %v582_v56 = vpop.permute.xlu0 %581  ;;  %v5411_v1 = vadd.s32 328, %v11081_v57 }
 0x15b   : > { %v5767_v59 = vpack.c.bf16 %v5716_v47, %v5715_v55  ;;  %vm5654_vm5 = vmand %vm721_vm12, %vm5462_vm7  ;;  %vm720_vm4 = vcmp.eq.s32.totalorder %v10814_v17, %v582_v56  ;;  %v5705_v0 = vsel %vm11381_vm0, 1.0, %v10549_v20  ;;  %vm5466_vm7 = vcmp.lt.s32.totalorder %v5401_v60, %v11087_v61 }
 0x15c   : > { %v5718_v53 = vsel %vm5654_vm5, 1.0, %v10549_v20  ;;  %vm7722_vm3 = vmpackc.low %vm721_vm12, %vm720_vm4  ;;  %v5762_v2 = vpack.c.bf16 %v5706_v63, %v5705_v0  ;;  %vm5465_vm0 = vcmp.lt.s32.totalorder %v5400_v9, %v11087_v61  ;;  %v5413_v55 = vadd.s32 344, %v11081_v57 }
 0x15d   : > { %vm5653_vm15 = vmand %vm720_vm4, %vm5461_vm8  ;;  %6015 = vxpose.xlu0.c.b16.cont [5/8] %v5767_v59, 128  ;;  %9193 = vmatmul.mubr.msk.bf16.gmra.mrb[24].mxu0 %vm7722_vm3, %v10548_v28  ;;  %v591_v54 = vpop.permute.xlu1 %590  ;;  %vm5468_vm4 = vcmp.lt.s32.totalorder %v5403_v13, %v11087_v61  ;;  %v5415_v63 = vadd.s32 360, %v11081_v57 }
 0x15e   : > { %v5717_v4 = vsel %vm5653_vm15, 1.0, %v10549_v20  ;;  %vm723_vm1 = vcmp.eq.s32.totalorder %v10814_v17, %v591_v54  ;;  %6001 = vxpose.xlu1.c.b16.cont [7/8] %v5761_v5, 128  ;;  %v588_v8 = vpop.permute.xlu0 %587  ;;  %vm5467_vm15 = vcmp.lt.s32.totalorder %v5402_v6, %v11087_v61  ;;  %v5412_v5 = vadd.s32 336, %v11081_v57 }
 0x15f   : > { %v5768_v11 = vpack.c.bf16 %v5718_v53, %v5717_v4  ;;  %vm5656_vm11 = vmand %vm723_vm1, %vm5464_vm14  ;;  %vm722_vm9 = vcmp.eq.s32.totalorder %v10814_v17, %v588_v8  ;;  %v5414_v8 = vadd.s32 352, %v11081_v57 }
 0x160   : > { %v5720_v12 = vsel %vm5656_vm11, 1.0, %v10549_v20  ;;  %vm7724_vm2 = vmpackc.low %vm723_vm1, %vm722_vm9 }
 0x161   : > { %vm5655_vm10 = vmand %vm722_vm9, %vm5463_vm6  ;;  %6016 = vxpose.xlu0.c.b16.cont [6/8] %v5768_v11, 128  ;;  %9196 = vmatprep.mubr.msk.bf16.mxu0 %vm7724_vm2, %v10548_v28  ;;  %v597_v16 = vpop.permute.xlu1 %596  ;;  %vm5470_vm9 = vcmp.lt.s32.totalorder %v5405_v23, %v11087_v61 }
 0x162   : > { %v5719_v3 = vsel %vm5655_vm10, 1.0, %v10549_v20  ;;  %vm725_vm13 = vcmp.eq.s32.totalorder %v10814_v17, %v597_v16  ;;  %6002 = vxpose.xlu1.c.b16.end [8/8] %v5762_v2, 128  ;;  %v594_v19 = vpop.permute.xlu0 %593  ;;  %vm5469_vm10 = vcmp.lt.s32.totalorder %v5404_v29, %v11087_v61  ;;  %v5417_v2 = vadd.s32 376, %v11081_v57 }
 0x163   : > { %v5769_v62 = vpack.c.bf16 %v5720_v12, %v5719_v3  ;;  %vm5658_vm12 = vmand %vm725_vm13, %vm5466_vm7  ;;  %vm724_vm8 = vcmp.eq.s32.totalorder %v10814_v17, %v594_v19  ;;  %v5416_v3 = vadd.s32 368, %v11081_v57  ;;  %v5418_v29 = vadd.s32 384, %v11081_v57 }
 0x164   : > { %v5722_v22 = vsel %vm5658_vm12, 1.0, %v10549_v20  ;;  %vm7726_vm5 = vmpackc.low %vm725_vm13, %vm724_vm8 }
 0x165   : > { %vm5657_vm3 = vmand %vm724_vm8, %vm5465_vm0  ;;  %6017 = vxpose.xlu0.c.b16.cont [7/8] %v5769_v62, 128  ;;  %9197 = vmatmul.mubr.msk.bf16.gmra.mrb[28].mxu0 %vm7726_vm5, %v10548_v28  ;;  %v603_v7 = vpop.permute.xlu1 %602  ;;  %vm5472_vm8 = vcmp.lt.s32.totalorder %v5407_v35, %v11087_v61  ;;  %v5419_v62 = vadd.s32 392, %v11081_v57 }
 0x166   : > { %v5721_v25 = vsel %vm5657_vm3, 1.0, %v10549_v20  ;;  %vm727_vm14 = vcmp.eq.s32.totalorder %v10814_v17, %v603_v7  ;;  %v600_v26 = vpop.permute.xlu0 %599  ;;  %vm5471_vm3 = vcmp.lt.s32.totalorder %v5406_v32, %v11087_v61 }
 0x167   : > { %v5770_v31 = vpack.c.bf16 %v5722_v22, %v5721_v25  ;;  %vm5660_vm1 = vmand %vm727_vm14, %vm5468_vm4  ;;  %vm726_vm6 = vcmp.eq.s32.totalorder %v10814_v17, %v600_v26 }
 0x168   : > { %v5724_v34 = vsel %vm5660_vm1, 1.0, %v10549_v20  ;;  %vm7728_vm11 = vmpackc.low %vm727_vm14, %vm726_vm6 }
 0x169   : > { %vm5659_vm2 = vmand %vm726_vm6, %vm5467_vm15  ;;  %6018 = vxpose.xlu0.c.b16.end [8/8] %v5770_v31, 128  ;;  %9200 = vmatprep.mubr.msk.bf16.mxu0 %vm7728_vm11, %v10548_v28  ;;  %v609_v36 = vpop.permute.xlu1 %608  ;;  %vm5474_vm6 = vcmp.lt.s32.totalorder %v5409_v37, %v11087_v61 }
 0x16a   : > { %v5723_v39 = vsel %vm5659_vm2, 1.0, %v10549_v20  ;;  %vm729_vm7 = vcmp.eq.s32.totalorder %v10814_v17, %v609_v36  ;;  %v606_v10 = vpop.permute.xlu0 %605  ;;  %vm5473_vm2 = vcmp.lt.s32.totalorder %v5408_v38, %v11087_v61  ;;  %v5423_v38 = vadd.s32 424, %v11081_v57 }
 0x16b   : > { %v5771_v40 = vpack.c.bf16 %v5724_v34, %v5723_v39  ;;  %vm5662_vm13 = vmand %vm729_vm7, %vm5470_vm9  ;;  %vm728_vm0 = vcmp.eq.s32.totalorder %v10814_v17, %v606_v10  ;;  %v5421_v10 = vadd.s32 408, %v11081_v57 }
 0x16c   : > { %v5726_v41 = vsel %vm5662_vm13, 1.0, %v10549_v20  ;;  %vm7730_vm12 = vmpackc.low %vm729_vm7, %vm728_vm0 }
 0x16d   : > { %vm5661_vm5 = vmand %vm728_vm0, %vm5469_vm10  ;;  %6027 = vxpose.xlu1.c.b16.start [1/8] %v5771_v40, 128  ;;  %9201 = vmatmul.mubr.msk.bf16.gmra.mrb[32].mxu0 %vm7730_vm12, %v10548_v28  ;;  %v615_v42 = vpop.permute.xlu1 %614  ;;  %vm5476_vm0 = vcmp.lt.s32.totalorder %v5411_v1, %v11087_v61 }
 0x16e   : > { %v5725_v43 = vsel %vm5661_vm5, 1.0, %v10549_v20  ;;  %vm731_vm4 = vcmp.eq.s32.totalorder %v10814_v17, %v615_v42  ;;  %v612_v44 = vpop.permute.xlu0 %611  ;;  %vm5475_vm5 = vcmp.lt.s32.totalorder %v5410_v50, %v11087_v61  ;;  %v5420_v42 = vadd.s32 400, %v11081_v57 }
 0x16f   : > { %v5772_v45 = vpack.c.bf16 %v5726_v41, %v5725_v43  ;;  %vm5664_vm14 = vmand %vm731_vm4, %vm5472_vm8  ;;  %vm730_vm15 = vcmp.eq.s32.totalorder %v10814_v17, %v612_v44 }
 0x170   : > { %v5728_v46 = vsel %vm5664_vm14, 1.0, %v10549_v20  ;;  %vm7732_vm1 = vmpackc.low %vm731_vm4, %vm730_vm15 }
 0x171   : > { %vm5663_vm11 = vmand %vm730_vm15, %vm5471_vm3  ;;  %6028 = vxpose.xlu1.c.b16.cont [2/8] %v5772_v45, 128  ;;  %9204 = vmatprep.mubr.msk.bf16.mxu0 %vm7732_vm1, %v10548_v28  ;;  %v621_v47 = vpop.permute.xlu1 %620  ;;  %vm5478_vm15 = vcmp.lt.s32.totalorder %v5413_v55, %v11087_v61 }
 0x172   : > { %v5727_v48 = vsel %vm5663_vm11, 1.0, %v10549_v20  ;;  %vm733_vm9 = vcmp.eq.s32.totalorder %v10814_v17, %v621_v47  ;;  %v618_v49 = vpop.permute.xlu0 %617  ;;  %vm5477_vm11 = vcmp.lt.s32.totalorder %v5412_v5, %v11087_v61 }
 0x173   : > { %v5773_v51 = vpack.c.bf16 %v5728_v46, %v5727_v48  ;;  %vm5666_vm7 = vmand %vm733_vm9, %vm5474_vm6  ;;  %vm732_vm10 = vcmp.eq.s32.totalorder %v10814_v17, %v618_v49  ;;  %v5422_v49 = vadd.s32 416, %v11081_v57 }
 0x174   : > { %v5730_v52 = vsel %vm5666_vm7, 1.0, %v10549_v20  ;;  %vm7734_vm13 = vmpackc.low %vm733_vm9, %vm732_vm10 }
 0x175   : > { %vm5665_vm12 = vmand %vm732_vm10, %vm5473_vm2  ;;  %6029 = vxpose.xlu1.c.b16.cont [3/8] %v5773_v51, 128  ;;  %9205 = vmatmul.mubr.msk.bf16.gmra.mrb[36].mxu0 %vm7734_vm13, %v10548_v28  ;;  %v627_v56 = vpop.permute.xlu1 %626  ;;  %vm5480_vm10 = vcmp.lt.s32.totalorder %v5415_v63, %v11087_v61 }
 0x176   : > { %v5729_v58 = vsel %vm5665_vm12, 1.0, %v10549_v20  ;;  %vm735_vm8 = vcmp.eq.s32.totalorder %v10814_v17, %v627_v56  ;;  %v624_v59 = vpop.permute.xlu0 %623  ;;  %vm5479_vm12 = vcmp.lt.s32.totalorder %v5414_v8, %v11087_v61  ;;  %v5427_v8 = vadd.s32 456, %v11081_v57 }
 0x177   : > { %v5774_v53 = vpack.c.bf16 %v5730_v52, %v5729_v58  ;;  %vm5668_vm4 = vmand %vm735_vm8, %vm5476_vm0  ;;  %vm734_vm3 = vcmp.eq.s32.totalorder %v10814_v17, %v624_v59  ;;  %v5425_v58 = vadd.s32 440, %v11081_v57  ;;  %v11520_v59 = vld [vmem:[%s13003_s5] sm:$0xff]  }
 0x178   : > { %v5732_v60 = vsel %vm5668_vm4, 1.0, %v10549_v20  ;;  %vm7736_vm14 = vmpackc.low %vm735_vm8, %vm734_vm3  ;;  %9392 = vmatprep.subr.bf16.mxu0 %v11520_v59 }
 0x179   : > { %vm5667_vm1 = vmand %vm734_vm3, %vm5475_vm5  ;;  %6030 = vxpose.xlu1.c.b16.cont [4/8] %v5774_v53, 128  ;;  %9208 = vmatprep.mubr.msk.bf16.mxu0 %vm7736_vm14, %v10548_v28  ;;  %v633_v0 = vpop.permute.xlu1 %632  ;;  %vm5482_vm3 = vcmp.lt.s32.totalorder %v5417_v2, %v11087_v61 }
 0x17a   : > { %v5731_v54 = vsel %vm5667_vm1, 1.0, %v10549_v20  ;;  %vm737_vm6 = vcmp.eq.s32.totalorder %v10814_v17, %v633_v0  ;;  %v630_v4 = vpop.permute.xlu0 %629  ;;  %vm5481_vm1 = vcmp.lt.s32.totalorder %v5416_v3, %v11087_v61  ;;  %v5424_v0 = vadd.s32 432, %v11081_v57 }
 0x17b   : > { %v5775_v9 = vpack.c.bf16 %v5732_v60, %v5731_v54  ;;  %vm5670_vm9 = vmand %vm737_vm6, %vm5478_vm15  ;;  %vm736_vm2 = vcmp.eq.s32.totalorder %v10814_v17, %v630_v4 }
 0x17c   : > { %v5734_v11 = vsel %vm5670_vm9, 1.0, %v10549_v20  ;;  %vm7738_vm7 = vmpackc.low %vm737_vm6, %vm736_vm2 }
 0x17d   : > { %vm5669_vm13 = vmand %vm736_vm2, %vm5477_vm11  ;;  %6031 = vxpose.xlu1.c.b16.cont [5/8] %v5775_v9, 128  ;;  %9209 = vmatmul.mubr.msk.bf16.gmra.mrb[40].mxu0 %vm7738_vm7, %v10548_v28  ;;  %v639_v12 = vpop.permute.xlu1 %638  ;;  %vm5484_vm2 = vcmp.lt.s32.totalorder %v5419_v62, %v11087_v61 }
 0x17e   : > { %v5733_v13 = vsel %vm5669_vm13, 1.0, %v10549_v20  ;;  %vm739_vm0 = vcmp.eq.s32.totalorder %v10814_v17, %v639_v12  ;;  %v636_v16 = vpop.permute.xlu0 %635  ;;  %vm5483_vm13 = vcmp.lt.s32.totalorder %v5418_v29, %v11087_v61 }
 0x17f   : > { %v5776_v19 = vpack.c.bf16 %v5734_v11, %v5733_v13  ;;  %vm5672_vm8 = vmand %vm739_vm0, %vm5480_vm10  ;;  %vm738_vm5 = vcmp.eq.s32.totalorder %v10814_v17, %v636_v16  ;;  %v5426_v16 = vadd.s32 448, %v11081_v57 }
 0x180   : > { %v5736_v6 = vsel %vm5672_vm8, 1.0, %v10549_v20  ;;  %vm7740_vm4 = vmpackc.low %vm739_vm0, %vm738_vm5 }
 0x181   : > { %vm5671_vm14 = vmand %vm738_vm5, %vm5479_vm12  ;;  %6032 = vxpose.xlu1.c.b16.cont [6/8] %v5776_v19, 128  ;;  %9212 = vmatprep.mubr.msk.bf16.mxu0 %vm7740_vm4, %v10548_v28  ;;  %v9250_v22 = vpop.f32.mrb[0].mxu1  ;;  %v645_v23 = vpop.permute.xlu1 %644  ;;  %vm5486_vm5 = vcmp.lt.s32.totalorder %v5421_v10, %v11087_v61 }
 0x182   : > { %v5735_v7 = vsel %vm5671_vm14, 1.0, %v10549_v20  ;;  %v1593_v25 = vpop.f32.mrb[1].mxu1  ;;  %vm741_vm15 = vcmp.eq.s32.totalorder %v10814_v17, %v645_v23  ;;  %v642_v26 = vpop.permute.xlu0 %641  ;;  %vm5485_vm14 = vcmp.lt.s32.totalorder %v5420_v42, %v11087_v61  ;;  %v5429_v23 = vadd.s32 472, %v11081_v57 }
 0x183   : > { %v5777_v31 = vpack.c.bf16 %v5736_v6, %v5735_v7  ;;  %vm5674_vm6 = vmand %vm741_vm15, %vm5482_vm3  ;;  %vm740_vm11 = vcmp.eq.s32.totalorder %v10814_v17, %v642_v26  ;;  %v9251_v34 = vpop.f32.mrb[2].mxu1 }
 0x184   : > { %v5738_v35 = vsel %vm5674_vm6, 1.0, %v10549_v20  ;;  %vm7742_vm9 = vmpackc.low %vm741_vm15, %vm740_vm11  ;;  %v11491_v36 = vpack.c.bf16 %v9251_v34, %v9250_v22  ;;  %v1596_v39 = vpop.f32.mrb[3].mxu1 }
 0x185   : > { %vm5673_vm7 = vmand %vm740_vm11, %vm5481_vm1  ;;  %v11495_v32 = vpack.c.bf16 %v1596_v39, %v1593_v25  ;;  %6033 = vxpose.xlu1.c.b16.cont [7/8] %v5777_v31, 128  ;;  %9213 = vmatmul.mubr.msk.bf16.gmra.mrb[44].mxu0 %vm7742_vm9, %v10548_v28  ;;  %v651_v40 = vpop.permute.xlu1 %650  ;;  %vm5488_vm11 = vcmp.lt.s32.totalorder %v5423_v38, %v11087_v61  ;;  %v5428_v31 = vadd.s32 464, %v11081_v57  ;;  %v5431_v39 = vadd.s32 488, %v11081_v57 }
 0x186   : > { %v5737_v41 = vsel %vm5673_vm7, 1.0, %v10549_v20  ;;  %vm743_vm10 = vcmp.eq.s32.totalorder %v10814_v17, %v651_v40  ;;  %v648_v37 = vpop.permute.xlu0 %647  ;;  %vm5487_vm7 = vcmp.lt.s32.totalorder %v5422_v49, %v11087_v61 }
 0x187   : > { %v5778_v43 = vpack.c.bf16 %v5738_v35, %v5737_v41  ;;  %vm5676_vm0 = vmand %vm743_vm10, %vm5484_vm2  ;;  %vm742_vm12 = vcmp.eq.s32.totalorder %v10814_v17, %v648_v37 }
 0x188   : > { %v5740_v44 = vsel %vm5676_vm0, 1.0, %v10549_v20  ;;  %vm7744_vm8 = vmpackc.low %vm743_vm10, %vm742_vm12 }
 0x189   : > { %vm5675_vm4 = vmand %vm742_vm12, %vm5483_vm13  ;;  %6034 = vxpose.xlu1.c.b16.end [8/8] %v5778_v43, 128  ;;  %9216 = vmatprep.mubr.msk.bf16.mxu0 %vm7744_vm8, %v10548_v28  ;;  %v9254_v45 = vpop.f32.mrb[4].mxu1  ;;  %v657_v46 = vpop.permute.xlu1 %656  ;;  %vm5490_vm12 = vcmp.lt.s32.totalorder %v5425_v58, %v11087_v61  ;;  %v5430_v43 = vadd.s32 480, %v11081_v57 }
 0x18a   : > { %v5739_v1 = vsel %vm5675_vm4, 1.0, %v10549_v20  ;;  %v1609_v47 = vpop.f32.mrb[5].mxu1  ;;  %vm745_vm3 = vcmp.eq.s32.totalorder %v10814_v17, %v657_v46  ;;  %v654_v48 = vpop.permute.xlu0 %653  ;;  %vm5489_vm4 = vcmp.lt.s32.totalorder %v5424_v0, %v11087_v61 }
 0x18b   : > { %v5779_v50 = vpack.c.bf16 %v5740_v44, %v5739_v1  ;;  %vm5678_vm15 = vmand %vm745_vm3, %vm5486_vm5  ;;  %vm744_vm1 = vcmp.eq.s32.totalorder %v10814_v17, %v654_v48  ;;  %v9255_v51 = vpop.f32.mrb[6].mxu1 }
 0x18c   : > { %v5742_v52 = vsel %vm5678_vm15, 1.0, %v10549_v20  ;;  %vm7746_vm6 = vmpackc.low %vm745_vm3, %vm744_vm1  ;;  %v11513_v55 = vpack.c.bf16 %v9255_v51, %v9254_v45  ;;  %v1612_v56 = vpop.f32.mrb[7].mxu1 }
 0x18d   : > { %vm5677_vm9 = vmand %vm744_vm1, %vm5485_vm14  ;;  %v11522_v5 = vpack.c.bf16 %v1612_v56, %v1609_v47  ;;  %6043 = vxpose.xlu0.c.b16.start [1/8] %v5779_v50, 128  ;;  %9217 = vmatmul.mubr.msk.bf16.gmra.mrb[48].mxu0 %vm7746_vm6, %v10548_v28  ;;  %v663_v53 = vpop.permute.xlu1 %662  ;;  %vm5492_vm1 = vcmp.lt.s32.totalorder %v5427_v8, %v11087_v61  ;;  %v5433_v47 = vadd.s32 504, %v11081_v57 }
 0x18e   : > { %v5741_v60 = vsel %vm5677_vm9, 1.0, %v10549_v20  ;;  %vm747_vm2 = vcmp.eq.s32.totalorder %v10814_v17, %v663_v53  ;;  %v660_v63 = vpop.permute.xlu0 %659  ;;  %vm5491_vm9 = vcmp.lt.s32.totalorder %v5426_v16, %v11087_v61 }
 0x18f   : > { %v5780_v54 = vpack.c.bf16 %v5742_v52, %v5741_v60  ;;  %vm5680_vm10 = vmand %vm747_vm2, %vm5488_vm11  ;;  %vm746_vm13 = vcmp.eq.s32.totalorder %v10814_v17, %v660_v63  ;;  %v5432_v52 = vadd.s32 496, %v11081_v57 }
 0x190   : > { %v5744_v4 = vsel %vm5680_vm10, 1.0, %v10549_v20  ;;  %vm7748_vm0 = vmpackc.low %vm747_vm2, %vm746_vm13 }
 0x191   : > { %vm5679_vm8 = vmand %vm746_vm13, %vm5487_vm7  ;;  %6044 = vxpose.xlu0.c.b16.cont [2/8] %v5780_v54, 128  ;;  %9220 = vmatprep.mubr.msk.bf16.mxu0 %vm7748_vm0, %v10548_v28  ;;  %v9258_v9 = vpop.f32.mrb[8].mxu1  ;;  %v669_v11 = vpop.permute.xlu1 %668  ;;  %vm5494_vm13 = vcmp.lt.s32.totalorder %v5429_v23, %v11087_v61 }
 0x192   : > { %v5743_v2 = vsel %vm5679_vm8, 1.0, %v10549_v20  ;;  %v1625_v12 = vpop.f32.mrb[9].mxu1  ;;  %vm749_vm5 = vcmp.eq.s32.totalorder %v10814_v17, %v669_v11  ;;  %v666_v13 = vpop.permute.xlu0 %665  ;;  %vm5493_vm8 = vcmp.lt.s32.totalorder %v5428_v31, %v11087_v61 }
 0x193   : > { %v5781_v3 = vpack.c.bf16 %v5744_v4, %v5743_v2  ;;  %vm5682_vm3 = vmand %vm749_vm5, %vm5490_vm12  ;;  %vm748_vm14 = vcmp.eq.s32.totalorder %v10814_v17, %v666_v13  ;;  %v9259_v19 = vpop.f32.mrb[10].mxu1 }
 0x194   : > { %v5746_v6 = vsel %vm5682_vm3, 1.0, %v10549_v20  ;;  %vm7750_vm15 = vmpackc.low %vm749_vm5, %vm748_vm14  ;;  %v11543_v62 = vpack.c.bf16 %v9259_v19, %v9258_v9  ;;  %v1628_v22 = vpop.f32.mrb[11].mxu1  ;;  %v10330_v19 = vld [vmem:[%s13003_s5 + $0x8] sm:$0xff]  }
 0x195   : > { %vm5681_vm6 = vmand %vm748_vm14, %vm5489_vm4  ;;  %v11547_v7 = vpack.c.bf16 %v1628_v22, %v1625_v12  ;;  %6045 = vxpose.xlu0.c.b16.cont [3/8] %v5781_v3, 128  ;;  %9221 = vmatmul.mubr.msk.bf16.gmra.mrb[52].mxu0 %vm7750_vm15, %v10548_v28  ;;  %v675_v25 = vpop.permute.xlu1 %674  ;;  %vm5496_vm14 = vcmp.lt.s32.totalorder %v5431_v39, %v11087_v61 }
 0x196   : > { %v5745_v26 = vsel %vm5681_vm6, 1.0, %v10549_v20  ;;  %vm751_vm11 = vcmp.eq.s32.totalorder %v10814_v17, %v675_v25  ;;  %v672_v29 = vpop.permute.xlu0 %671  ;;  %vm5495_vm6 = vcmp.lt.s32.totalorder %v5430_v43, %v11087_v61 }
 0x197   : > { %v5782_v34 = vpack.c.bf16 %v5746_v6, %v5745_v26  ;;  %vm5684_vm2 = vmand %vm751_vm11, %vm5492_vm1  ;;  %vm750_vm7 = vcmp.eq.s32.totalorder %v10814_v17, %v672_v29  ;;  %v10332_v29 = vld [vmem:[%s13003_s5 + $0x18] sm:$0xff]  }
 0x198   : > { %v5748_v35 = vsel %vm5684_vm2, 1.0, %v10549_v20  ;;  %vm7752_vm10 = vmpackc.low %vm751_vm11, %vm750_vm7 }
 0x199   : > { %vm5683_vm0 = vmand %vm750_vm7, %vm5491_vm9  ;;  %6046 = vxpose.xlu0.c.b16.cont [4/8] %v5782_v34, 128  ;;  %9224 = vmatprep.mubr.msk.bf16.mxu0 %vm7752_vm10, %v10548_v28  ;;  %v9262_v10 = vpop.f32.mrb[12].mxu1  ;;  %v681_v40 = vpop.permute.xlu1 %680  ;;  %vm5498_vm7 = vcmp.lt.s32.totalorder %v5433_v47, %v11087_v61  ;;  %v10336_v47 = vld [vmem:[%s13003_s5 + $0x38] sm:$0xff]  }
 0x19a   : > { %v5747_v41 = vsel %vm5683_vm0, 1.0, %v10549_v20  ;;  %v1641_v37 = vpop.f32.mrb[13].mxu1  ;;  %vm753_vm12 = vcmp.eq.s32.totalorder %v10814_v17, %v681_v40  ;;  %v678_v42 = vpop.permute.xlu0 %677  ;;  %vm5497_vm0 = vcmp.lt.s32.totalorder %v5432_v52, %v11087_v61 }
 0x19b   : > { %v5783_v44 = vpack.c.bf16 %v5748_v35, %v5747_v41  ;;  %vm5686_vm5 = vmand %vm753_vm12, %vm5494_vm13  ;;  %vm752_vm4 = vcmp.eq.s32.totalorder %v10814_v17, %v678_v42  ;;  %v9263_v38 = vpop.f32.mrb[14].mxu1  ;;  %v10334_v41 = vld [vmem:[%s13003_s5 + $0x28] sm:$0xff]  }
 0x19c   : > { %v5750_v45 = vsel %vm5686_vm5, 1.0, %v10549_v20  ;;  %vm7754_vm3 = vmpackc.low %vm753_vm12, %vm752_vm4  ;;  %v11565_v46 = vpack.c.bf16 %v9263_v38, %v9262_v10  ;;  %v1644_v1 = vpop.f32.mrb[15].mxu1 }
 0x19d   : > { %vm5685_vm15 = vmand %vm752_vm4, %vm5493_vm8  ;;  %v11569_v48 = vpack.c.bf16 %v1644_v1, %v1641_v37  ;;  %6047 = vxpose.xlu0.c.b16.cont [5/8] %v5783_v44, 128  ;;  %9225 = vmatmul.mubr.msk.bf16.gmra.mrb[56].mxu0 %vm7754_vm3, %v10548_v28  ;;  %v687_v49 = vpop.permute.xlu1 %686  ;;  %v10335_v44 = vld [vmem:[%s13003_s5 + $0x30] sm:$0xff]  }
 0x19e   : > { %v5749_v50 = vsel %vm5685_vm15, 1.0, %v10549_v20  ;;  %vm755_vm1 = vcmp.eq.s32.totalorder %v10814_v17, %v687_v49  ;;  %v684_v51 = vpop.permute.xlu0 %683 }
 0x19f   : > { %v5784_v56 = vpack.c.bf16 %v5750_v45, %v5749_v50  ;;  %vm5688_vm11 = vmand %vm755_vm1, %vm5496_vm14  ;;  %vm754_vm9 = vcmp.eq.s32.totalorder %v10814_v17, %v684_v51 }
 0x1a0   : > { %v5752_v58 = vsel %vm5688_vm11, 1.0, %v10549_v20  ;;  %vm7756_vm2 = vmpackc.low %vm755_vm1, %vm754_vm9 }
 0x1a1   : > { %vm5687_vm10 = vmand %vm754_vm9, %vm5495_vm6  ;;  %6048 = vxpose.xlu0.c.b16.cont [6/8] %v5784_v56, 128  ;;  %9228 = vmatprep.mubr.msk.bf16.mxu0 %vm7756_vm2, %v10548_v28  ;;  %v9266_v53 = vpop.f32.mrb[16].mxu1  ;;  %v693_v60 = vpop.permute.xlu1 %692 }
 0x1a2   : > { %v5751_v63 = vsel %vm5687_vm10, 1.0, %v10549_v20  ;;  %v1657_v0 = vpop.f32.mrb[17].mxu1  ;;  %vm757_vm13 = vcmp.eq.s32.totalorder %v10814_v17, %v693_v60  ;;  %v690_v54 = vpop.permute.xlu0 %689 }
 0x1a3   : > { %v5785_v4 = vpack.c.bf16 %v5752_v58, %v5751_v63  ;;  %vm5690_vm12 = vmand %vm757_vm13, %vm5498_vm7  ;;  %vm756_vm8 = vcmp.eq.s32.totalorder %v10814_v17, %v690_v54  ;;  %v9267_v8 = vpop.f32.mrb[18].mxu1 }
 0x1a4   : > { %v5754_v9 = vsel %vm5690_vm12, 1.0, %v10549_v20  ;;  %vm7758_vm5 = vmpackc.low %vm757_vm13, %vm756_vm8  ;;  %v11585_v11 = vpack.c.bf16 %v9267_v8, %v9266_v53  ;;  %v1660_v2 = vpop.f32.mrb[19].mxu1 }
 0x1a5   : > { %vm5689_vm4 = vmand %vm756_vm8, %vm5497_vm0  ;;  %v11587_v12 = vpack.c.bf16 %v1660_v2, %v1657_v0  ;;  %6049 = vxpose.xlu0.c.b16.cont [7/8] %v5785_v4, 128  ;;  %9229 = vmatmul.mubr.msk.bf16.gmra.mrb[60].mxu0 %vm7758_vm5, %v10548_v28  ;;  %v10331_v28 = vld [vmem:[%s13003_s5 + $0x10] sm:$0xff]  }
 0x1a6   : > { %v5753_v61 = vsel %vm5689_vm4, 1.0, %v10549_v20  ;;  %9328 = vmatprep.mubr.bf16.mxu0 %v11495_v32 }
 0x1a7   : > { %v5786_v13 = vpack.c.bf16 %v5754_v9, %v5753_v61 }
 0x1a9   : > { %6050 = vxpose.xlu0.c.b16.end [8/8] %v5786_v13, 128  ;;  %v9270_v17 = vpop.f32.mrb[20].mxu1 }
 0x1aa   : > { %v1673_v16 = vpop.f32.mrb[21].mxu1 }
 0x1ab   : > { %v9271_v3 = vpop.f32.mrb[22].mxu1 }
 0x1ac   : > { %v11595_v6 = vpack.c.bf16 %v9271_v3, %v9270_v17  ;;  %v1676_v22 = vpop.f32.mrb[23].mxu1 }
 0x1ad   : > { %v11597_v23 = vpack.c.bf16 %v1676_v22, %v1673_v16  ;;  %9329 = vmatmul.mubr.bf16.vlgmr.msra.gmra.mrb[64].mxu0 %v11491_v36 }
 0x1ae   : > { %9332 = vmatprep.mubr.bf16.mxu0 %v11522_v5  ;;  %9393 = vmatpush3.bf16.msra.mxu0 %v11520_v59  ;;  %v10333_v59 = vld [vmem:[%s13003_s5 + $0x20] sm:$0xff]  }
 0x1af   : > { %9394 = vmatprep.subr.bf16.mxu0 %v10330_v19 }
 0x1b1   : > { %v9274_v20 = vpop.f32.mrb[24].mxu1 }
 0x1b2   : > { %v1689_v25 = vpop.f32.mrb[25].mxu1  ;;  %9395 = vmatpush3.bf16.msra.mxu0 %v10330_v19 }
 0x1b3   : > { %v9275_v26 = vpop.f32.mrb[26].mxu1  ;;  %9396 = vmatprep.subr.bf16.mxu0 %v10331_v28 }
 0x1b4   : > { %v11608_v31 = vpack.c.bf16 %v9275_v26, %v9274_v20  ;;  %v1692_v34 = vpop.f32.mrb[27].mxu1 }
 0x1b5   : > { %v11610_v35 = vpack.c.bf16 %v1692_v34, %v1689_v25  ;;  %9333 = vmatmul.mubr.bf16.gmra.mrb[68].mxu0 %v11513_v55 }
 0x1b6   : > { %9336 = vmatprep.mubr.bf16.mxu0 %v11547_v7  ;;  %9397 = vmatpush3.bf16.msra.mxu0 %v10331_v28 }
 0x1b7   : > { %9398 = vmatprep.subr.bf16.mxu0 %v10332_v29 }
 0x1b9   : > { %v9278_v39 = vpop.f32.mrb[28].mxu1 }
 0x1ba   : > { %v1705_v10 = vpop.f32.mrb[29].mxu1  ;;  %9399 = vmatpush3.bf16.msra.mxu0 %v10332_v29 }
 0x1bb   : > { %v9279_v40 = vpop.f32.mrb[30].mxu1  ;;  %9400 = vmatprep.subr.bf16.mxu0 %v10333_v59 }
 0x1bc   : > { %v11620_v37 = vpack.c.bf16 %v9279_v40, %v9278_v39  ;;  %v1708_v42 = vpop.f32.mrb[31].mxu1 }
 0x1bd   : > { %v11622_v43 = vpack.c.bf16 %v1708_v42, %v1705_v10  ;;  %9337 = vmatmul.mubr.bf16.gmra.mrb[72].mxu0 %v11543_v62 }
 0x1be   : > { %9340 = vmatprep.mubr.bf16.mxu0 %v11569_v48  ;;  %9401 = vmatpush3.bf16.msra.mxu0 %v10333_v59 }
 0x1bf   : > { %9402 = vmatprep.subr.bf16.mxu0 %v10334_v41 }
 0x1c1   : > { %v9282_v38 = vpop.f32.mrb[32].mxu1 }
 0x1c2   : > { %v1721_v45 = vpop.f32.mrb[33].mxu1  ;;  %9403 = vmatpush3.bf16.msra.mxu0 %v10334_v41 }
 0x1c3   : > { %v9283_v1 = vpop.f32.mrb[34].mxu1  ;;  %9404 = vmatprep.subr.bf16.mxu0 %v10335_v44 }
 0x1c4   : > { %v11632_v49 = vpack.c.bf16 %v9283_v1, %v9282_v38  ;;  %v1724_v50 = vpop.f32.mrb[35].mxu1 }
 0x1c5   : > { %v11634_v51 = vpack.c.bf16 %v1724_v50, %v1721_v45  ;;  %9341 = vmatmul.mubr.bf16.gmra.mrb[76].mxu0 %v11565_v46 }
 0x1c6   : > { %9344 = vmatprep.mubr.bf16.mxu0 %v11587_v12  ;;  %9405 = vmatpush3.bf16.msra.mxu0 %v10335_v44 }
 0x1c7   : > { %9406 = vmatprep.subr.bf16.mxu0 %v10336_v47 }
 0x1c9   : > { %v9286_v52 = vpop.f32.mrb[36].mxu1 }
 0x1ca   : > { %v1737_v56 = vpop.f32.mrb[37].mxu1  ;;  %9407 = vmatpush3.bf16.msra.mxu0 %v10336_v47 }
 0x1cb   : > { %v9287_v58 = vpop.f32.mrb[38].mxu1 }
 0x1cc   : > { %v11638_v53 = vpack.c.bf16 %v9287_v58, %v9286_v52  ;;  %v1740_v60 = vpop.f32.mrb[39].mxu1 }
 0x1cd   : > { %v11640_v63 = vpack.c.bf16 %v1740_v60, %v1737_v56  ;;  %9345 = vmatmul.mubr.bf16.gmra.mrb[80].mxu0 %v11585_v11 }
 0x1ce   : > { %9348 = vmatprep.mubr.bf16.mxu0 %v11597_v23 }
 0x1d1   : > { %v9290_v0 = vpop.f32.mrb[40].mxu1 }
 0x1d2   : > { %v1753_v54 = vpop.f32.mrb[41].mxu1 }
 0x1d3   : > { %v9291_v4 = vpop.f32.mrb[42].mxu1 }
 0x1d4   : > { %v11644_v8 = vpack.c.bf16 %v9291_v4, %v9290_v0  ;;  %v1756_v9 = vpop.f32.mrb[43].mxu1 }
 0x1d5   : > { %v11646_v2 = vpack.c.bf16 %v1756_v9, %v1753_v54  ;;  %9349 = vmatmul.mubr.bf16.gmra.mrb[84].mxu0 %v11595_v6 }
 0x1d6   : > { %9352 = vmatprep.mubr.bf16.mxu0 %v11610_v35 }
 0x1d9   : > { %v9294_v61 = vpop.f32.mrb[44].mxu1 }
 0x1da   : > { %v1769_v13 = vpop.f32.mrb[45].mxu1 }
 0x1db   : > { %v9295_v17 = vpop.f32.mrb[46].mxu1 }
 0x1dc   : > { %v11650_v16 = vpack.c.bf16 %v9295_v17, %v9294_v61  ;;  %v1772_v3 = vpop.f32.mrb[47].mxu1 }
 0x1dd   : > { %v11652_v19 = vpack.c.bf16 %v1772_v3, %v1769_v13  ;;  %9353 = vmatmul.mubr.bf16.gmra.mrb[88].mxu0 %v11608_v31 }
 0x1de   : > { %9356 = vmatprep.mubr.bf16.mxu0 %v11622_v43 }
 0x1df   : > { %v11656_v22 = vpop.f32.mrb[0].mxu0 }
 0x1e0   : > { %v11658_v28 = vpop.f32.mrb[1].mxu0 }
 0x1e1   : > { %v11660_v20 = vpop.f32.mrb[2].mxu0 }
 0x1e2   : > { %v11664_v26 = vpop.f32.mrb[3].mxu0 }
 0x1e5   : > { %9357 = vmatmul.mubr.bf16.gmra.mrb[92].mxu0 %v11620_v37 }
 0x1e6   : > { %9360 = vmatprep.mubr.bf16.mxu0 %v11634_v51 }
 0x1e7   : > { %v9298_v34 = vpop.f32.mrb[48].mxu1 }
 0x1e8   : > { %v1785_v59 = vpop.f32.mrb[49].mxu1 }
 0x1e9   : > { %v9299_v39 = vpop.f32.mrb[50].mxu1 }
 0x1ea   : > { %v11670_v10 = vpack.c.bf16 %v9299_v39, %v9298_v34  ;;  %v1788_v40 = vpop.f32.mrb[51].mxu1 }
 0x1eb   : > { %v11672_v41 = vpack.c.bf16 %v1788_v40, %v1785_v59 }
 0x1ed   : > { %9361 = vmatmul.mubr.bf16.gmra.mrb[96].mxu0 %v11632_v49 }
 0x1ee   : > { %9364 = vmatprep.mubr.bf16.mxu0 %v11640_v63 }
 0x1ef   : > { %v11676_v42 = vpop.f32.mrb[4].mxu0 }
 0x1f0   : > { %v11678_v44 = vpop.f32.mrb[5].mxu0 }
 0x1f1   : > { %v11680_v38 = vpop.f32.mrb[6].mxu0 }
 0x1f2   : > { %v1227_v1 = vpop.f32.mrb[7].mxu0 }
 0x1f3   : > { %v1931_v47 = vpack.c.bf16 %v1227_v1, %v11678_v44  ;;  %v10337_v1 = vld [vmem:[%s13003_s5 + $0x80] sm:$0xff]  }
 0x1f4   : > { %9472 = vmatprep.subr.bf16.mxu0 %v10337_v1 }
 0x1f5   : > { %9365 = vmatmul.mubr.bf16.gmra.mrb[100].mxu0 %v11638_v53 }
 0x1f6   : > { %9368 = vmatprep.mubr.bf16.mxu0 %v11646_v2 }
 0x1f7   : > { %v9302_v50 = vpop.f32.mrb[52].mxu1 }
 0x1f8   : > { %v1801_v52 = vpop.f32.mrb[53].mxu1 }
 0x1f9   : > { %v9303_v56 = vpop.f32.mrb[54].mxu1 }
 0x1fa   : > { %v11687_v58 = vpack.c.bf16 %v9303_v56, %v9302_v50  ;;  %v1804_v60 = vpop.f32.mrb[55].mxu1 }
 0x1fb   : > { %v11689_v0 = vpack.c.bf16 %v1804_v60, %v1801_v52 }
 0x1fd   : > { %9369 = vmatmul.mubr.bf16.gmra.mrb[104].mxu0 %v11644_v8 }
 0x1fe   : > { %9372 = vmatprep.mubr.bf16.mxu0 %v11652_v19 }
 0x1ff   : > { %v11693_v54 = vpop.f32.mrb[8].mxu0 }
 0x200   : > { %v11695_v4 = vpop.f32.mrb[9].mxu0 }
 0x201   : > { %v11697_v9 = vpop.f32.mrb[10].mxu0 }
 0x202   : > { %v1243_v13 = vpop.f32.mrb[11].mxu0 }
 0x203   : > { %v1933_v17 = vpack.c.bf16 %v1243_v13, %v11695_v4 }
 0x205   : > { %9373 = vmatmul.mubr.bf16.gmra.mrb[108].mxu0 %v11650_v16 }
 0x206   : > { %9376 = vmatprep.mubr.bf16.mxu0 %v11672_v41 }
 0x208   : > { %v9306_v3 = vpop.f32.mrb[56].mxu1 }
 0x209   : > { %v1817_v34 = vpop.f32.mrb[57].mxu1 }
 0x20a   : > { %v9307_v59 = vpop.f32.mrb[58].mxu1 }
 0x20b   : > { %v11704_v39 = vpack.c.bf16 %v9307_v59, %v9306_v3  ;;  %v1820_v40 = vpop.f32.mrb[59].mxu1 }
 0x20c   : > { %v11706_v44 = vpack.c.bf16 %v1820_v40, %v1817_v34 }
 0x20d   : > { %9377 = vmatmul.mubr.bf16.gmra.mrb[112].mxu0 %v11670_v10 }
 0x20e   : > { %9380 = vmatprep.mubr.bf16.mxu0 %v11689_v0 }
 0x210   : > { %v11713_v50 = vpop.f32.mrb[12].mxu0 }
 0x211   : > { %v1256_v52 = vpop.f32.mrb[13].mxu0 }
 0x212   : > { %v11715_v56 = vpop.f32.mrb[14].mxu0 }
 0x213   : > { %v1259_v4 = vpop.f32.mrb[15].mxu0 }
 0x214   : > { %v1935_v13 = vpack.c.bf16 %v1259_v4, %v1256_v52  ;;  %v10338_v4 = vld [vmem:[%s13003_s5 + $0x88] sm:$0xff]  }
 0x215   : > { %9381 = vmatmul.mubr.bf16.gmra.mrb[116].mxu0 %v11687_v58 }
 0x216   : > { %9384 = vmatprep.mubr.bf16.mxu0 %v11706_v44 }
 0x218   : > { %v9310_v3 = vpop.f32.mrb[60].mxu1 }
 0x219   : > { %v1833_v34 = vpop.f32.mrb[61].mxu1 }
 0x21a   : > { %v9311_v59 = vpop.f32.mrb[62].mxu1 }
 0x21b   : > { %v11721_v40 = vpack.c.bf16 %v9311_v59, %v9310_v3  ;;  %v1836_v61 = vpop.f32.mrb[63].mxu1 }
 0x21c   : > { %v11723_v45 = vpack.c.bf16 %v1836_v61, %v1833_v34  ;;  %v13071_v61 = vpack.c.bf16 %v11664_v26, %v11658_v28  ;;  %v10339_v28 = vld [vmem:[%s13003_s5 + $0x90] sm:$0xff]  }
 0x21d   : > { %9385 = vmatmul.mubr.bf16.gmra.mrb[120].mxu0 %v11704_v39 }
 0x21e   : > { %9388 = vmatprep.mubr.bf16.mxu0 %v11723_v45 }
 0x220   : > { %v11727_v25 = vpop.f32.mrb[16].mxu0 }
 0x221   : > { %v1272_v60 = vpop.f32.mrb[17].mxu0 }
 0x222   : > { %v11729_v52 = vpop.f32.mrb[18].mxu0 }
 0x223   : > { %v1275_v29 = vpop.f32.mrb[19].mxu0 }
 0x224   : > { %v1937_v33 = vpack.c.bf16 %v1275_v29, %v1272_v60  ;;  %v13072_v60 = vpack.c.bf16 %v11660_v20, %v11656_v22  ;;  %v13073_v20 = vpack.c.bf16 %v11680_v38, %v11676_v42  ;;  %v13074_v38 = vpack.c.bf16 %v11697_v9, %v11693_v54 }
 0x225   : > { %9389 = vmatmul.mubr.bf16.gmra.mrb[124].mxu0 %v11721_v40  ;;  %v13075_v9 = vpack.c.bf16 %v11715_v56, %v11713_v50 }
 0x226   : > { %9408 = vmatprep.mubr.bf16.mxu0 %v13071_v61 }
 0x228   : > { %v11737_v3 = vpop.f32.mrb[20].mxu0 }
 0x229   : > { %v1288_v34 = vpop.f32.mrb[21].mxu0 }
 0x22a   : > { %v11739_v59 = vpop.f32.mrb[22].mxu0 }
 0x22b   : > { %v1291_v27 = vpop.f32.mrb[23].mxu0 }
 0x22c   : > { %v1939_v29 = vpack.c.bf16 %v1291_v27, %v1288_v34  ;;  %v10340_v27 = vld [vmem:[%s13003_s5 + $0x98] sm:$0xff]  }
 0x22d   : > { %9409 = vmatmul.mubr.bf16.vlgmr.msra.gmra.mrb[64].mxu0 %v13072_v60 }
 0x22e   : > { %9412 = vmatprep.mubr.bf16.mxu0 %v1931_v47  ;;  %9473 = vmatpush3.bf16.msra.mxu0 %v10337_v1  ;;  %v10341_v47 = vld [vmem:[%s13003_s5 + $0xa0] sm:$0xff]  }
 0x22f   : > { %9474 = vmatprep.subr.bf16.mxu0 %v10338_v4 }
 0x230   : > { %v11752_v26 = vpop.f32.mrb[24].mxu0 }
 0x231   : > { %v1304_v61 = vpop.f32.mrb[25].mxu0 }
 0x232   : > { %v9195_v30 = vpop.f32.mrb[26].mxu0  ;;  %9475 = vmatpush3.bf16.msra.mxu0 %v10338_v4 }
 0x233   : > { %v1942_v24 = vpack.c.bf16 %v9195_v30, %v11752_v26  ;;  %v1307_v21 = vpop.f32.mrb[27].mxu0  ;;  %9476 = vmatprep.subr.bf16.mxu0 %v10339_v28 }
 0x234   : > { %v1941_v22 = vpack.c.bf16 %v1307_v21, %v1304_v61  ;;  %v10342_v21 = vld [vmem:[%s13003_s5 + $0xa8] sm:$0xff]  }
 0x235   : > { %9413 = vmatmul.mubr.bf16.gmra.mrb[68].mxu0 %v13073_v20 }
 0x236   : > { %9416 = vmatprep.mubr.bf16.mxu0 %v1933_v17  ;;  %9477 = vmatpush3.bf16.msra.mxu0 %v10339_v28  ;;  %v10343_v17 = vld [vmem:[%s13003_s5 + $0xb0] sm:$0xff]  }
 0x237   : > { %9478 = vmatprep.subr.bf16.mxu0 %v10340_v27 }
 0x238   : > { %v9198_v1 = vpop.f32.mrb[28].mxu0 }
 0x239   : > { %v1320_v30 = vpop.f32.mrb[29].mxu0 }
 0x23a   : > { %v9199_v4 = vpop.f32.mrb[30].mxu0  ;;  %9479 = vmatpush3.bf16.msra.mxu0 %v10340_v27 }
 0x23b   : > { %v1944_v34 = vpack.c.bf16 %v9199_v4, %v9198_v1  ;;  %v1323_v60 = vpop.f32.mrb[31].mxu0  ;;  %9480 = vmatprep.subr.bf16.mxu0 %v10341_v47  ;;  %v10344_v1 = vld [vmem:[%s13003_s5 + $0xb8] sm:$0xff]  }
 0x23c   : > { %v1943_v42 = vpack.c.bf16 %v1323_v60, %v1320_v30 }
 0x23d   : > { %9417 = vmatmul.mubr.bf16.gmra.mrb[72].mxu0 %v13074_v38  ;;  %v13076_v38 = vpack.c.bf16 %v11729_v52, %v11727_v25 }
 0x23e   : > { %9420 = vmatprep.mubr.bf16.mxu0 %v1935_v13  ;;  %9481 = vmatpush3.bf16.msra.mxu0 %v10341_v47 }
 0x23f   : > { %9482 = vmatprep.subr.bf16.mxu0 %v10342_v21 }
 0x240   : > { %v9202_v28 = vpop.f32.mrb[32].mxu0 }
 0x241   : > { %v1336_v26 = vpop.f32.mrb[33].mxu0 }
 0x242   : > { %v9203_v61 = vpop.f32.mrb[34].mxu0  ;;  %9483 = vmatpush3.bf16.msra.mxu0 %v10342_v21 }
 0x243   : > { %v1946_v27 = vpack.c.bf16 %v9203_v61, %v9202_v28  ;;  %v1339_v20 = vpop.f32.mrb[35].mxu0  ;;  %9484 = vmatprep.subr.bf16.mxu0 %v10343_v17 }
 0x244   : > { %v1945_v54 = vpack.c.bf16 %v1339_v20, %v1336_v26 }
 0x245   : > { %9421 = vmatmul.mubr.bf16.gmra.mrb[76].mxu0 %v13075_v9 }
 0x246   : > { %9424 = vmatprep.mubr.bf16.mxu0 %v1937_v33  ;;  %9485 = vmatpush3.bf16.msra.mxu0 %v10343_v17  ;;  %v13077_v17 = vpack.c.bf16 %v11739_v59, %v11737_v3 }
 0x247   : > { %9486 = vmatprep.subr.bf16.mxu0 %v10344_v1 }
 0x248   : > { %v9206_v13 = vpop.f32.mrb[36].mxu0 }
 0x249   : > { %v1352_v47 = vpop.f32.mrb[37].mxu0 }
 0x24a   : > { %v9207_v30 = vpop.f32.mrb[38].mxu0  ;;  %9487 = vmatpush3.bf16.msra.mxu0 %v10344_v1 }
 0x24b   : > { %v1948_v4 = vpack.c.bf16 %v9207_v30, %v9206_v13  ;;  %v1355_v60 = vpop.f32.mrb[39].mxu0 }
 0x24c   : > { %v1947_v21 = vpack.c.bf16 %v1355_v60, %v1352_v47 }
 0x24d   : > { %9425 = vmatmul.mubr.bf16.gmra.mrb[80].mxu0 %v13076_v38 }
 0x24e   : > { %9428 = vmatprep.mubr.bf16.mxu0 %v1939_v29 }
 0x250   : > { %v9210_v28 = vpop.f32.mrb[40].mxu0 }
 0x251   : > { %v1368_v26 = vpop.f32.mrb[41].mxu0 }
 0x252   : > { %v9211_v61 = vpop.f32.mrb[42].mxu0 }
 0x253   : > { %v1950_v50 = vpack.c.bf16 %v9211_v61, %v9210_v28  ;;  %v1371_v56 = vpop.f32.mrb[43].mxu0 }
 0x254   : > { %v1949_v33 = vpack.c.bf16 %v1371_v56, %v1368_v26 }
 0x255   : > { %9429 = vmatmul.mubr.bf16.gmra.mrb[84].mxu0 %v13077_v17 }
 0x256   : > { %9432 = vmatprep.mubr.bf16.mxu0 %v1941_v22 }
 0x258   : > { %v9214_v20 = vpop.f32.mrb[44].mxu0 }
 0x259   : > { %v1384_v1 = vpop.f32.mrb[45].mxu0 }
 0x25a   : > { %v9215_v9 = vpop.f32.mrb[46].mxu0 }
 0x25b   : > { %v1952_v13 = vpack.c.bf16 %v9215_v9, %v9214_v20  ;;  %v1387_v47 = vpop.f32.mrb[47].mxu0 }
 0x25c   : > { %v1951_v30 = vpack.c.bf16 %v1387_v47, %v1384_v1 }
 0x25d   : > { %9433 = vmatmul.mubr.bf16.gmra.mrb[88].mxu0 %v1942_v24 }
 0x25e   : > { %9436 = vmatprep.mubr.bf16.mxu0 %v1943_v42 }
 0x260   : > { %v9218_v25 = vpop.f32.mrb[48].mxu0 }
 0x261   : > { %v1400_v52 = vpop.f32.mrb[49].mxu0 }
 0x262   : > { %v9219_v29 = vpop.f32.mrb[50].mxu0 }
 0x263   : > { %v1954_v60 = vpack.c.bf16 %v9219_v29, %v9218_v25  ;;  %v1403_v38 = vpop.f32.mrb[51].mxu0 }
 0x264   : > { %v1953_v28 = vpack.c.bf16 %v1403_v38, %v1400_v52  ;;  %v10381_v38 = vld [vmem:[%s13003_s5 + $0xe0] sm:$0xff]  }
 0x265   : > { %9437 = vmatmul.mubr.bf16.gmra.mrb[92].mxu0 %v1944_v34 }
 0x266   : > { %9440 = vmatprep.mubr.bf16.mxu0 %v1945_v54 }
 0x268   : > { %v9222_v26 = vpop.f32.mrb[52].mxu0 }
 0x269   : > { %v1416_v3 = vpop.f32.mrb[53].mxu0 }
 0x26a   : > { %v9223_v59 = vpop.f32.mrb[54].mxu0 }
 0x26b   : > { %v1956_v22 = vpack.c.bf16 %v9223_v59, %v9222_v26  ;;  %v1419_v61 = vpop.f32.mrb[55].mxu0  ;;  %v10382_v26 = vld [vmem:[%s13003_s5 + $0xe8] sm:$0xff]   ;;  %v10351_v59 = vld [vmem:[%s10670_s29 + $0x30] sm:$0xff]  }
 0x26c   : > { %v1955_v56 = vpack.c.bf16 %v1419_v61, %v1416_v3  ;;  %v10350_v3 = vld [vmem:[%s10670_s29 + $0x28] sm:$0xff]   ;;  %v10353_v61 = vld [vmem:[%s10670_s29 + $0x40] sm:$0xff]  }
 0x26d   : > { %9441 = vmatmul.mubr.bf16.gmra.mrb[96].mxu0 %v1946_v27  ;;  %v10345_v27 = vld [vmem:[%s10670_s29] sm:$0xff]  }
 0x26e   : > { %9444 = vmatprep.mubr.bf16.mxu0 %v1947_v21  ;;  %v10378_v21 = vld [vmem:[%s13003_s5 + $0xc8] sm:$0xff]  }
 0x270   : > { %v9226_v17 = vpop.f32.mrb[56].mxu0 }
 0x271   : > { %v1432_v20 = vpop.f32.mrb[57].mxu0 }
 0x272   : > { %v9227_v24 = vpop.f32.mrb[58].mxu0 }
 0x273   : > { %v1958_v42 = vpack.c.bf16 %v9227_v24, %v9226_v17  ;;  %v1435_v1 = vpop.f32.mrb[59].mxu0  ;;  %v10355_v17 = vld [vmem:[%s10670_s29 + $0x50] sm:$0xff]   ;;  %v10357_v24 = vld [vmem:[%s10670_s29 + $0x60] sm:$0xff]  }
 0x274   : > { %v1957_v9 = vpack.c.bf16 %v1435_v1, %v1432_v20  ;;  %v10356_v20 = vld [vmem:[%s10670_s29 + $0x58] sm:$0xff]   ;;  %v10359_v1 = vld [vmem:[%s10670_s29 + $0x70] sm:$0xff]  }
 0x275   : > { %9445 = vmatmul.mubr.bf16.gmra.mrb[100].mxu0 %v1948_v4  ;;  %v10377_v4 = vld [vmem:[%s13003_s5 + $0xc0] sm:$0xff]  }
 0x276   : > { %9448 = vmatprep.mubr.bf16.mxu0 %v1949_v33  ;;  %9552 = vmatprep.subr.bf16.mxu1 %v10377_v4  ;;  %v10379_v33 = vld [vmem:[%s13003_s5 + $0xd0] sm:$0xff]  }
 0x277   : > { %9553 = vmatpush3.bf16.msra.mxu1 %v10377_v4  ;;  %v10368_v4 = vld [vmem:[%s10670_s29 + $0xb8] sm:$0xff]  }
 0x278   : > { %v9230_v47 = vpop.f32.mrb[60].mxu0  ;;  %9554 = vmatprep.subr.bf16.mxu1 %v10378_v21 }
 0x279   : > { %v1448_v34 = vpop.f32.mrb[61].mxu0 }
 0x27a   : > { %v9231_v54 = vpop.f32.mrb[62].mxu0 }
 0x27b   : > { %v1960_v25 = vpack.c.bf16 %v9231_v54, %v9230_v47  ;;  %v1451_v52 = vpop.f32.mrb[63].mxu0  ;;  %9555 = vmatpush3.bf16.msra.mxu1 %v10378_v21  ;;  %v10361_v47 = vld [vmem:[%s10670_s29 + $0x80] sm:$0xff]   ;;  %v10363_v54 = vld [vmem:[%s10670_s29 + $0x90] sm:$0xff]  }
 0x27c   : > { %v1959_v29 = vpack.c.bf16 %v1451_v52, %v1448_v34  ;;  %9556 = vmatprep.subr.bf16.mxu1 %v10379_v33  ;;  %v10362_v34 = vld [vmem:[%s10670_s29 + $0x88] sm:$0xff]   ;;  %v10365_v52 = vld [vmem:[%s10670_s29 + $0xa0] sm:$0xff]  }
 0x27d   : > { %9449 = vmatmul.mubr.bf16.gmra.mrb[104].mxu0 %v1950_v50  ;;  %v10346_v50 = vld [vmem:[%s10670_s29 + $0x8] sm:$0xff]   ;;  %v10369_v21 = vld [vmem:[%s10670_s29 + $0xc0] sm:$0xff]  }
 0x27e   : > { %9452 = vmatprep.mubr.bf16.mxu0 %v1951_v30  ;;  %v10380_v30 = vld [vmem:[%s13003_s5 + $0xd8] sm:$0xff]  }
 0x27f   : > { %9557 = vmatpush3.bf16.msra.mxu1 %v10379_v33  ;;  %v10384_v33 = vld [vmem:[%s13003_s5 + $0xf8] sm:$0xff]  }
 0x280   : > { %9558 = vmatprep.subr.bf16.mxu1 %v10380_v30 }
 0x283   : > { %9559 = vmatpush3.bf16.msra.mxu1 %v10380_v30  ;;  %v10371_v30 = vld [vmem:[%s10670_s29 + $0xd0] sm:$0xff]  }
 0x284   : > { %9560 = vmatprep.subr.bf16.mxu1 %v10381_v38 }
 0x285   : > { %9453 = vmatmul.mubr.bf16.gmra.mrb[108].mxu0 %v1952_v13  ;;  %v10347_v13 = vld [vmem:[%s10670_s29 + $0x10] sm:$0xff]  }
 0x286   : > { %9456 = vmatprep.mubr.bf16.mxu0 %v1953_v28  ;;  %v10349_v28 = vld [vmem:[%s10670_s29 + $0x20] sm:$0xff]  }
 0x287   : > { %9561 = vmatpush3.bf16.msra.mxu1 %v10381_v38  ;;  %v10373_v38 = vld [vmem:[%s10670_s29 + $0xe0] sm:$0xff]  }
 0x288   : > { %9562 = vmatprep.subr.bf16.mxu1 %v10382_v26 }
 0x28b   : > { %9563 = vmatpush3.bf16.msra.mxu1 %v10382_v26  ;;  %v10375_v26 = vld [vmem:[%s10670_s29 + $0xf0] sm:$0xff]  }
 0x28d   : > { %9457 = vmatmul.mubr.bf16.gmra.mrb[112].mxu0 %v1954_v60  ;;  %v10348_v60 = vld [vmem:[%s10670_s29 + $0x18] sm:$0xff]  }
 0x28e   : > { %9460 = vmatprep.mubr.bf16.mxu0 %v1955_v56  ;;  %v10354_v56 = vld [vmem:[%s10670_s29 + $0x48] sm:$0xff]  }
 0x295   : > { %9461 = vmatmul.mubr.bf16.gmra.mrb[116].mxu0 %v1956_v22  ;;  %v10352_v22 = vld [vmem:[%s10670_s29 + $0x38] sm:$0xff]  }
 0x296   : > { %9464 = vmatprep.mubr.bf16.mxu0 %v1957_v9  ;;  %v10360_v9 = vld [vmem:[%s10670_s29 + $0x78] sm:$0xff]  }
 0x29d   : > { %9465 = vmatmul.mubr.bf16.gmra.mrb[120].mxu0 %v1958_v42  ;;  %v10358_v42 = vld [vmem:[%s10670_s29 + $0x68] sm:$0xff]  }
 0x29e   : > { %9468 = vmatprep.mubr.bf16.mxu0 %v1959_v29  ;;  %v10366_v29 = vld [vmem:[%s10670_s29 + $0xa8] sm:$0xff]  }
 0x2a5   : > { %9469 = vmatmul.mubr.bf16.gmra.mrb[124].mxu0 %v1960_v25  ;;  %v10364_v25 = vld [vmem:[%s10670_s29 + $0x98] sm:$0xff]  }
 0x2a6   : > { %9488 = vmatprep.mubr.bf16.mxu0 %v10345_v27  ;;  %v10367_v27 = vld [vmem:[%s10670_s29 + $0xb0] sm:$0xff]  }
 0x2ad   : > { %9489 = vmatmul.mubr.bf16.vlgmr.msra.gmra.mrb[64].mxu0 %v10346_v50  ;;  %v10383_v50 = vld [vmem:[%s13003_s5 + $0xf0] sm:$0xff]  }
 0x2ae   : > { %9492 = vmatprep.mubr.bf16.mxu0 %v10347_v13  ;;  %9564 = vmatprep.subr.bf16.mxu1 %v10383_v50  ;;  %v10370_v13 = vld [vmem:[%s10670_s29 + $0xc8] sm:$0xff]  }
 0x2af   : > { %9565 = vmatpush3.bf16.msra.mxu1 %v10383_v50 }
 0x2b0   : > { %9566 = vmatprep.subr.bf16.mxu1 %v10384_v33 }
 0x2b3   : > { %9567 = vmatpush3.bf16.msra.mxu1 %v10384_v33 }
 0x2b5   : > { %9493 = vmatmul.mubr.bf16.gmra.mrb[68].mxu0 %v10348_v60  ;;  %v10372_v60 = vld [vmem:[%s10670_s29 + $0xd8] sm:$0xff]  }
 0x2b6   : > { %9496 = vmatprep.mubr.bf16.mxu0 %v10349_v28  ;;  %v10374_v28 = vld [vmem:[%s10670_s29 + $0xe8] sm:$0xff]  }
 0x2bd   : > { %9497 = vmatmul.mubr.bf16.gmra.mrb[72].mxu0 %v10350_v3  ;;  %v10376_v3 = vld [vmem:[%s10670_s29 + $0xf8] sm:$0xff]  }
 0x2be   : > { %9500 = vmatprep.mubr.bf16.mxu0 %v10351_v59  ;;  %v3296_v59 = vsub.s32 0, %v11081_v57 }
 0x2c5   : > { %9501 = vmatmul.mubr.bf16.gmra.mrb[76].mxu0 %v10352_v22  ;;  %v11845_v22 = vld [vmem:[%s13004_s6] sm:$0xff] }
 0x2c6   : > { %9504 = vmatprep.mubr.bf16.mxu0 %v10353_v61  ;;  %v11848_v61 = vrot.slane %v11845_v22, %v3296_v59 }
 0x2cd   : > { %9505 = vmatmul.mubr.bf16.gmra.mrb[80].mxu0 %v10354_v56 }
 0x2ce   : > { %9508 = vmatprep.mubr.bf16.mxu0 %v10355_v17 }
 0x2d5   : > { %9509 = vmatmul.mubr.bf16.gmra.mrb[84].mxu0 %v10356_v20 }
 0x2d6   : > { %9512 = vmatprep.mubr.bf16.mxu0 %v10357_v24 }
 0x2dd   : > { %9513 = vmatmul.mubr.bf16.gmra.mrb[88].mxu0 %v10358_v42 }
 0x2de   : > { %9516 = vmatprep.mubr.bf16.mxu0 %v10359_v1 }
 0x2e5   : > { %9517 = vmatmul.mubr.bf16.gmra.mrb[92].mxu0 %v10360_v9 }
 0x2e6   : > { %9520 = vmatprep.mubr.bf16.mxu0 %v10361_v47  ;;  %v10385_v47 = vld [vmem:[%s13003_s5 + $0x140] sm:$0xff]  }
 0x2e7   : > { %9632 = vmatprep.subr.bf16.mxu1 %v10385_v47 }
 0x2ed   : > { %9521 = vmatmul.mubr.bf16.gmra.mrb[96].mxu0 %v10362_v34 }
 0x2ee   : > { %9524 = vmatprep.mubr.bf16.mxu0 %v10363_v54 }
 0x2f5   : > { %9525 = vmatmul.mubr.bf16.gmra.mrb[100].mxu0 %v10364_v25 }
 0x2f6   : > { %9528 = vmatprep.mubr.bf16.mxu0 %v10365_v52 }
 0x2fd   : > { %9529 = vmatmul.mubr.bf16.gmra.mrb[104].mxu0 %v10366_v29 }
 0x2fe   : > { %9532 = vmatprep.mubr.bf16.mxu0 %v10367_v27 }
 0x305   : > { %9533 = vmatmul.mubr.bf16.gmra.mrb[108].mxu0 %v10368_v4 }
 0x306   : > { %9536 = vmatprep.mubr.bf16.mxu0 %v10369_v21 }
 0x30d   : > { %9537 = vmatmul.mubr.bf16.gmra.mrb[112].mxu0 %v10370_v13  ;;  %v10386_v13 = vld [vmem:[%s13003_s5 + $0x148] sm:$0xff]  }
 0x30e   : > { %9540 = vmatprep.mubr.bf16.mxu0 %v10371_v30 }
 0x315   : > { %9541 = vmatmul.mubr.bf16.gmra.mrb[116].mxu0 %v10372_v60 }
 0x316   : > { %9544 = vmatprep.mubr.bf16.mxu0 %v10373_v38 }
 0x31d   : > { %9545 = vmatmul.mubr.bf16.gmra.mrb[120].mxu0 %v10374_v28 }
 0x31e   : > { %9548 = vmatprep.mubr.bf16.mxu0 %v10375_v26 }
 0x325   : > { %9549 = vmatmul.mubr.bf16.gmra.mrb[124].mxu0 %v10376_v3 }
 0x380   : > { %v9490_v56 = vpop.f32.mrb[64].mxu0 }
 0x381   : > { %v3300_v17 = vadd.f32 %v9490_v56, %v11848_v61  ;;  %v2975_v20 = vpop.f32.mrb[65].mxu0  ;;  %v10387_v56 = vld [vmem:[%s13003_s5 + $0x150] sm:$0xff]  }
 0x382   : > { %v3298_v24 = vadd.f32 %v11848_v61, %v2975_v20  ;;  %v9491_v42 = vpop.f32.mrb[66].mxu0 }
 0x383   : > { %v3301_v1 = vadd.f32 %v9491_v42, %v11848_v61  ;;  %v2978_v9 = vpop.f32.mrb[67].mxu0  ;;  %v3364_v54 = vmax.f32 %v3300_v17, 0.0 }
 0x384   : > { %v3299_v34 = vadd.f32 %v11848_v61, %v2978_v9  ;;  %v3362_v52 = vmax.f32 %v3298_v24, 0.0 }
 0x385   : > { %v3365_v25 = vmax.f32 %v3301_v1, 0.0 }
 0x386   : > { %v3363_v29 = vmax.f32 %v3299_v34, 0.0 }
 0x387   : > { %v3444_v27 = vpack.c.bf16 %v3365_v25, %v3364_v54 }
 0x388   : > { %v3443_v4 = vpack.c.bf16 %v3363_v29, %v3362_v52  ;;  %v9494_v21 = vpop.f32.mrb[68].mxu0 }
 0x389   : > { %v3304_v50 = vadd.f32 %v9494_v21, %v11848_v61  ;;  %v2991_v33 = vpop.f32.mrb[69].mxu0 }
 0x38a   : > { %v3302_v30 = vadd.f32 %v11848_v61, %v2991_v33  ;;  %v9495_v60 = vpop.f32.mrb[70].mxu0  ;;  %9568 = vmatprep.mubr.bf16.mxu1 %v3443_v4 }
 0x38b   : > { %v3305_v38 = vadd.f32 %v9495_v60, %v11848_v61  ;;  %v2994_v28 = vpop.f32.mrb[71].mxu0  ;;  %9569 = vmatmul.mubr.bf16.vlgmr.msra.gmra.mrb[64].mxu1 %v3444_v27  ;;  %v3368_v3 = vmax.f32 %v3304_v50, 0.0  ;;  %v10389_v50 = vld [vmem:[%s13003_s5 + $0x160] sm:$0xff]  }
 0x38c   : > { %v3303_v26 = vadd.f32 %v11848_v61, %v2994_v28  ;;  %9633 = vmatpush3.bf16.msra.mxu1 %v10385_v47  ;;  %v3366_v17 = vmax.f32 %v3302_v30, 0.0  ;;  %v10388_v47 = vld [vmem:[%s13003_s5 + $0x158] sm:$0xff]  }
 0x38d   : > { %v3369_v59 = vmax.f32 %v3305_v38, 0.0  ;;  %9634 = vmatprep.subr.bf16.mxu1 %v10386_v13 }
 0x38e   : > { %v3367_v20 = vmax.f32 %v3303_v26, 0.0 }
 0x38f   : > { %v3446_v24 = vpack.c.bf16 %v3369_v59, %v3368_v3  ;;  %v10390_v3 = vld [vmem:[%s13003_s5 + $0x168] sm:$0xff]  }
 0x390   : > { %v3445_v42 = vpack.c.bf16 %v3367_v20, %v3366_v17  ;;  %v9498_v1 = vpop.f32.mrb[72].mxu0  ;;  %9635 = vmatpush3.bf16.msra.mxu1 %v10386_v13 }
 0x391   : > { %v3308_v9 = vadd.f32 %v9498_v1, %v11848_v61  ;;  %v3007_v34 = vpop.f32.mrb[73].mxu0  ;;  %9636 = vmatprep.subr.bf16.mxu1 %v10387_v56 }
 0x392   : > { %v3306_v54 = vadd.f32 %v11848_v61, %v3007_v34  ;;  %v9499_v25 = vpop.f32.mrb[74].mxu0  ;;  %9572 = vmatprep.mubr.bf16.mxu1 %v3445_v42 }
 0x393   : > { %v3309_v52 = vadd.f32 %v9499_v25, %v11848_v61  ;;  %v3010_v29 = vpop.f32.mrb[75].mxu0  ;;  %9573 = vmatmul.mubr.bf16.gmra.mrb[68].mxu1 %v3446_v24  ;;  %v3372_v4 = vmax.f32 %v3308_v9, 0.0 }
 0x394   : > { %v3307_v27 = vadd.f32 %v11848_v61, %v3010_v29  ;;  %9637 = vmatpush3.bf16.msra.mxu1 %v10387_v56  ;;  %v3370_v33 = vmax.f32 %v3306_v54, 0.0 }
 0x395   : > { %v3373_v21 = vmax.f32 %v3309_v52, 0.0  ;;  %9638 = vmatprep.subr.bf16.mxu1 %v10388_v47 }
 0x396   : > { %v3371_v13 = vmax.f32 %v3307_v27, 0.0 }
 0x397   : > { %v3448_v30 = vpack.c.bf16 %v3373_v21, %v3372_v4 }
 0x398   : > { %v3447_v60 = vpack.c.bf16 %v3371_v13, %v3370_v33  ;;  %v9502_v38 = vpop.f32.mrb[76].mxu0  ;;  %9639 = vmatpush3.bf16.msra.mxu1 %v10388_v47 }
 0x399   : > { %v3312_v28 = vadd.f32 %v9502_v38, %v11848_v61  ;;  %v3023_v26 = vpop.f32.mrb[77].mxu0  ;;  %9640 = vmatprep.subr.bf16.mxu1 %v10389_v50 }
 0x39a   : > { %v3310_v59 = vadd.f32 %v11848_v61, %v3023_v26  ;;  %v9503_v56 = vpop.f32.mrb[78].mxu0  ;;  %9576 = vmatprep.mubr.bf16.mxu1 %v3447_v60 }
 0x39b   : > { %v3313_v17 = vadd.f32 %v9503_v56, %v11848_v61  ;;  %v3026_v20 = vpop.f32.mrb[79].mxu0  ;;  %9577 = vmatmul.mubr.bf16.gmra.mrb[72].mxu1 %v3448_v30  ;;  %v3376_v42 = vmax.f32 %v3312_v28, 0.0 }
 0x39c   : > { %v3311_v24 = vadd.f32 %v11848_v61, %v3026_v20  ;;  %9641 = vmatpush3.bf16.msra.mxu1 %v10389_v50  ;;  %v3374_v9 = vmax.f32 %v3310_v59, 0.0 }
 0x39d   : > { %v3377_v1 = vmax.f32 %v3313_v17, 0.0  ;;  %9642 = vmatprep.subr.bf16.mxu1 %v10390_v3 }
 0x39e   : > { %v3375_v34 = vmax.f32 %v3311_v24, 0.0 }
 0x39f   : > { %v3450_v47 = vpack.c.bf16 %v3377_v1, %v3376_v42 }
 0x3a0   : > { %v3449_v54 = vpack.c.bf16 %v3375_v34, %v3374_v9  ;;  %v9506_v25 = vpop.f32.mrb[80].mxu0  ;;  %9643 = vmatpush3.bf16.msra.mxu1 %v10390_v3 }
 0x3a1   : > { %v3316_v52 = vadd.f32 %v9506_v25, %v11848_v61  ;;  %v3039_v29 = vpop.f32.mrb[81].mxu0 }
 0x3a2   : > { %v3314_v27 = vadd.f32 %v11848_v61, %v3039_v29  ;;  %v9507_v4 = vpop.f32.mrb[82].mxu0  ;;  %9580 = vmatprep.mubr.bf16.mxu1 %v3449_v54 }
 0x3a3   : > { %v3317_v21 = vadd.f32 %v9507_v4, %v11848_v61  ;;  %v3042_v33 = vpop.f32.mrb[83].mxu0  ;;  %9581 = vmatmul.mubr.bf16.gmra.mrb[76].mxu1 %v3450_v47  ;;  %v3380_v13 = vmax.f32 %v3316_v52, 0.0 }
 0x3a4   : > { %v3315_v50 = vadd.f32 %v11848_v61, %v3042_v33  ;;  %v3378_v60 = vmax.f32 %v3314_v27, 0.0 }
 0x3a5   : > { %v3381_v30 = vmax.f32 %v3317_v21, 0.0 }
 0x3a6   : > { %v3379_v38 = vmax.f32 %v3315_v50, 0.0 }
 0x3a7   : > { %v3452_v28 = vpack.c.bf16 %v3381_v30, %v3380_v13 }
 0x3a8   : > { %v3451_v26 = vpack.c.bf16 %v3379_v38, %v3378_v60  ;;  %v9510_v3 = vpop.f32.mrb[84].mxu0 }
 0x3a9   : > { %v3320_v59 = vadd.f32 %v9510_v3, %v11848_v61  ;;  %v3055_v56 = vpop.f32.mrb[85].mxu0 }
 0x3aa   : > { %v3318_v17 = vadd.f32 %v11848_v61, %v3055_v56  ;;  %v9511_v20 = vpop.f32.mrb[86].mxu0  ;;  %9584 = vmatprep.mubr.bf16.mxu1 %v3451_v26 }
 0x3ab   : > { %v3321_v24 = vadd.f32 %v9511_v20, %v11848_v61  ;;  %v3058_v42 = vpop.f32.mrb[87].mxu0  ;;  %9585 = vmatmul.mubr.bf16.gmra.mrb[80].mxu1 %v3452_v28  ;;  %v3384_v9 = vmax.f32 %v3320_v59, 0.0 }
 0x3ac   : > { %v3319_v1 = vadd.f32 %v11848_v61, %v3058_v42  ;;  %v3382_v47 = vmax.f32 %v3318_v17, 0.0 }
 0x3ad   : > { %v3385_v34 = vmax.f32 %v3321_v24, 0.0 }
 0x3ae   : > { %v3383_v54 = vmax.f32 %v3319_v1, 0.0 }
 0x3af   : > { %v3454_v25 = vpack.c.bf16 %v3385_v34, %v3384_v9 }
 0x3b0   : > { %v3453_v52 = vpack.c.bf16 %v3383_v54, %v3382_v47  ;;  %v9514_v29 = vpop.f32.mrb[88].mxu0 }
 0x3b1   : > { %v3324_v27 = vadd.f32 %v9514_v29, %v11848_v61  ;;  %v3071_v4 = vpop.f32.mrb[89].mxu0 }
 0x3b2   : > { %v3322_v21 = vadd.f32 %v11848_v61, %v3071_v4  ;;  %v9515_v33 = vpop.f32.mrb[90].mxu0  ;;  %9588 = vmatprep.mubr.bf16.mxu1 %v3453_v52 }
 0x3b3   : > { %v3325_v50 = vadd.f32 %v9515_v33, %v11848_v61  ;;  %v3074_v13 = vpop.f32.mrb[91].mxu0  ;;  %9589 = vmatmul.mubr.bf16.gmra.mrb[84].mxu1 %v3454_v25  ;;  %v3388_v60 = vmax.f32 %v3324_v27, 0.0 }
 0x3b4   : > { %v3323_v30 = vadd.f32 %v11848_v61, %v3074_v13  ;;  %v3386_v28 = vmax.f32 %v3322_v21, 0.0 }
 0x3b5   : > { %v3389_v38 = vmax.f32 %v3325_v50, 0.0 }
 0x3b6   : > { %v3387_v26 = vmax.f32 %v3323_v30, 0.0 }
 0x3b7   : > { %v3456_v3 = vpack.c.bf16 %v3389_v38, %v3388_v60 }
 0x3b8   : > { %v3455_v59 = vpack.c.bf16 %v3387_v26, %v3386_v28  ;;  %v9518_v56 = vpop.f32.mrb[92].mxu0 }
 0x3b9   : > { %v3328_v17 = vadd.f32 %v9518_v56, %v11848_v61  ;;  %v3087_v20 = vpop.f32.mrb[93].mxu0 }
 0x3ba   : > { %v3326_v24 = vadd.f32 %v11848_v61, %v3087_v20  ;;  %v9519_v42 = vpop.f32.mrb[94].mxu0  ;;  %9592 = vmatprep.mubr.bf16.mxu1 %v3455_v59 }
 0x3bb   : > { %v3329_v1 = vadd.f32 %v9519_v42, %v11848_v61  ;;  %v3090_v9 = vpop.f32.mrb[95].mxu0  ;;  %9593 = vmatmul.mubr.bf16.gmra.mrb[88].mxu1 %v3456_v3  ;;  %v3392_v47 = vmax.f32 %v3328_v17, 0.0 }
 0x3bc   : > { %v3327_v34 = vadd.f32 %v11848_v61, %v3090_v9  ;;  %v3390_v25 = vmax.f32 %v3326_v24, 0.0 }
 0x3bd   : > { %v3393_v54 = vmax.f32 %v3329_v1, 0.0 }
 0x3be   : > { %v3391_v52 = vmax.f32 %v3327_v34, 0.0 }
 0x3bf   : > { %v3458_v29 = vpack.c.bf16 %v3393_v54, %v3392_v47 }
 0x3c0   : > { %v3457_v27 = vpack.c.bf16 %v3391_v52, %v3390_v25  ;;  %v9522_v4 = vpop.f32.mrb[96].mxu0 }
 0x3c1   : > { %v3332_v21 = vadd.f32 %v9522_v4, %v11848_v61  ;;  %v3103_v33 = vpop.f32.mrb[97].mxu0 }
 0x3c2   : > { %v3330_v50 = vadd.f32 %v11848_v61, %v3103_v33  ;;  %v9523_v13 = vpop.f32.mrb[98].mxu0  ;;  %9596 = vmatprep.mubr.bf16.mxu1 %v3457_v27 }
 0x3c3   : > { %v3333_v30 = vadd.f32 %v9523_v13, %v11848_v61  ;;  %v3106_v60 = vpop.f32.mrb[99].mxu0  ;;  %9597 = vmatmul.mubr.bf16.gmra.mrb[92].mxu1 %v3458_v29  ;;  %v3396_v28 = vmax.f32 %v3332_v21, 0.0 }
 0x3c4   : > { %v3331_v38 = vadd.f32 %v11848_v61, %v3106_v60  ;;  %v3394_v3 = vmax.f32 %v3330_v50, 0.0 }
 0x3c5   : > { %v3397_v26 = vmax.f32 %v3333_v30, 0.0 }
 0x3c6   : > { %v3395_v59 = vmax.f32 %v3331_v38, 0.0 }
 0x3c7   : > { %v3460_v56 = vpack.c.bf16 %v3397_v26, %v3396_v28 }
 0x3c8   : > { %v3459_v17 = vpack.c.bf16 %v3395_v59, %v3394_v3  ;;  %v9526_v20 = vpop.f32.mrb[100].mxu0 }
 0x3c9   : > { %v3336_v24 = vadd.f32 %v9526_v20, %v11848_v61  ;;  %v3119_v42 = vpop.f32.mrb[101].mxu0 }
 0x3ca   : > { %v3334_v1 = vadd.f32 %v11848_v61, %v3119_v42  ;;  %v9527_v9 = vpop.f32.mrb[102].mxu0  ;;  %9600 = vmatprep.mubr.bf16.mxu1 %v3459_v17 }
 0x3cb   : > { %v3337_v34 = vadd.f32 %v9527_v9, %v11848_v61  ;;  %v3122_v47 = vpop.f32.mrb[103].mxu0  ;;  %9601 = vmatmul.mubr.bf16.gmra.mrb[96].mxu1 %v3460_v56  ;;  %v3400_v25 = vmax.f32 %v3336_v24, 0.0 }
 0x3cc   : > { %v3335_v54 = vadd.f32 %v11848_v61, %v3122_v47  ;;  %v3398_v29 = vmax.f32 %v3334_v1, 0.0 }
 0x3cd   : > { %v3401_v52 = vmax.f32 %v3337_v34, 0.0 }
 0x3ce   : > { %v3399_v27 = vmax.f32 %v3335_v54, 0.0 }
 0x3cf   : > { %v3462_v4 = vpack.c.bf16 %v3401_v52, %v3400_v25 }
 0x3d0   : > { %v3461_v21 = vpack.c.bf16 %v3399_v27, %v3398_v29  ;;  %v9530_v33 = vpop.f32.mrb[104].mxu0 }
 0x3d1   : > { %v3340_v50 = vadd.f32 %v9530_v33, %v11848_v61  ;;  %v3135_v13 = vpop.f32.mrb[105].mxu0  ;;  %v10391_v33 = vld [vmem:[%s13003_s5 + $0x170] sm:$0xff]  }
 0x3d2   : > { %v3338_v30 = vadd.f32 %v11848_v61, %v3135_v13  ;;  %v9531_v60 = vpop.f32.mrb[106].mxu0  ;;  %9604 = vmatprep.mubr.bf16.mxu1 %v3461_v21  ;;  %9644 = vmatprep.subr.bf16.mxu1 %v10391_v33 }
 0x3d3   : > { %v3341_v38 = vadd.f32 %v9531_v60, %v11848_v61  ;;  %v3138_v28 = vpop.f32.mrb[107].mxu0  ;;  %9605 = vmatmul.mubr.bf16.gmra.mrb[100].mxu1 %v3462_v4  ;;  %v3404_v3 = vmax.f32 %v3340_v50, 0.0 }
 0x3d4   : > { %v3339_v26 = vadd.f32 %v11848_v61, %v3138_v28  ;;  %v3402_v56 = vmax.f32 %v3338_v30, 0.0  ;;  %9645 = vmatpush3.bf16.msra.mxu1 %v10391_v33 }
 0x3d5   : > { %v3405_v59 = vmax.f32 %v3341_v38, 0.0 }
 0x3d6   : > { %v3403_v17 = vmax.f32 %v3339_v26, 0.0 }
 0x3d7   : > { %v3464_v20 = vpack.c.bf16 %v3405_v59, %v3404_v3  ;;  %v10392_v3 = vld [vmem:[%s13003_s5 + $0x178] sm:$0xff]  }
 0x3d8   : > { %v3463_v24 = vpack.c.bf16 %v3403_v17, %v3402_v56  ;;  %v9534_v42 = vpop.f32.mrb[108].mxu0  ;;  %9646 = vmatprep.subr.bf16.mxu1 %v10392_v3 }
 0x3d9   : > { %v3344_v1 = vadd.f32 %v9534_v42, %v11848_v61  ;;  %v3151_v9 = vpop.f32.mrb[109].mxu0  ;;  %9647 = vmatpush3.bf16.msra.mxu1 %v10392_v3 }
 0x3da   : > { %v3342_v34 = vadd.f32 %v11848_v61, %v3151_v9  ;;  %v9535_v47 = vpop.f32.mrb[110].mxu0  ;;  %9608 = vmatprep.mubr.bf16.mxu1 %v3463_v24 }
 0x3db   : > { %v3345_v54 = vadd.f32 %v9535_v47, %v11848_v61  ;;  %v3154_v25 = vpop.f32.mrb[111].mxu0  ;;  %9609 = vmatmul.mubr.bf16.gmra.mrb[104].mxu1 %v3464_v20  ;;  %v3408_v29 = vmax.f32 %v3344_v1, 0.0 }
 0x3dc   : > { %v3343_v52 = vadd.f32 %v11848_v61, %v3154_v25  ;;  %v3406_v4 = vmax.f32 %v3342_v34, 0.0 }
 0x3dd   : > { %v3409_v27 = vmax.f32 %v3345_v54, 0.0 }
 0x3de   : > { %v3407_v21 = vmax.f32 %v3343_v52, 0.0 }
 0x3df   : > { %v3466_v50 = vpack.c.bf16 %v3409_v27, %v3408_v29 }
 0x3e0   : > { %v3465_v13 = vpack.c.bf16 %v3407_v21, %v3406_v4  ;;  %v9538_v30 = vpop.f32.mrb[112].mxu0 }
 0x3e1   : > { %v3348_v60 = vadd.f32 %v9538_v30, %v11848_v61  ;;  %v3167_v38 = vpop.f32.mrb[113].mxu0 }
 0x3e2   : > { %v3346_v28 = vadd.f32 %v11848_v61, %v3167_v38  ;;  %v9539_v26 = vpop.f32.mrb[114].mxu0  ;;  %9612 = vmatprep.mubr.bf16.mxu1 %v3465_v13 }
 0x3e3   : > { %v3349_v59 = vadd.f32 %v9539_v26, %v11848_v61  ;;  %v3170_v56 = vpop.f32.mrb[115].mxu0  ;;  %9613 = vmatmul.mubr.bf16.gmra.mrb[108].mxu1 %v3466_v50  ;;  %v3412_v20 = vmax.f32 %v3348_v60, 0.0 }
 0x3e4   : > { %v3347_v17 = vadd.f32 %v11848_v61, %v3170_v56  ;;  %v3410_v42 = vmax.f32 %v3346_v28, 0.0 }
 0x3e5   : > { %v3413_v24 = vmax.f32 %v3349_v59, 0.0 }
 0x3e6   : > { %v3411_v1 = vmax.f32 %v3347_v17, 0.0 }
 0x3e7   : > { %v3468_v9 = vpack.c.bf16 %v3413_v24, %v3412_v20 }
 0x3e8   : > { %v3467_v34 = vpack.c.bf16 %v3411_v1, %v3410_v42  ;;  %v9542_v47 = vpop.f32.mrb[116].mxu0 }
 0x3e9   : > { %v3352_v54 = vadd.f32 %v9542_v47, %v11848_v61  ;;  %v3183_v25 = vpop.f32.mrb[117].mxu0 }
 0x3ea   : > { %v3350_v52 = vadd.f32 %v11848_v61, %v3183_v25  ;;  %v9543_v29 = vpop.f32.mrb[118].mxu0  ;;  %9616 = vmatprep.mubr.bf16.mxu1 %v3467_v34 }
 0x3eb   : > { %v3353_v27 = vadd.f32 %v9543_v29, %v11848_v61  ;;  %v3186_v4 = vpop.f32.mrb[119].mxu0  ;;  %9617 = vmatmul.mubr.bf16.gmra.mrb[112].mxu1 %v3468_v9  ;;  %v3416_v33 = vmax.f32 %v3352_v54, 0.0 }
 0x3ec   : > { %v3351_v21 = vadd.f32 %v11848_v61, %v3186_v4  ;;  %v3414_v13 = vmax.f32 %v3350_v52, 0.0 }
 0x3ed   : > { %v3417_v50 = vmax.f32 %v3353_v27, 0.0 }
 0x3ee   : > { %v3415_v30 = vmax.f32 %v3351_v21, 0.0 }
 0x3ef   : > { %v3470_v60 = vpack.c.bf16 %v3417_v50, %v3416_v33 }
 0x3f0   : > { %v3469_v38 = vpack.c.bf16 %v3415_v30, %v3414_v13  ;;  %v9546_v28 = vpop.f32.mrb[120].mxu0 }
 0x3f1   : > { %v3356_v26 = vadd.f32 %v9546_v28, %v11848_v61  ;;  %v3199_v3 = vpop.f32.mrb[121].mxu0 }
 0x3f2   : > { %v3354_v59 = vadd.f32 %v11848_v61, %v3199_v3  ;;  %v9547_v56 = vpop.f32.mrb[122].mxu0  ;;  %9620 = vmatprep.mubr.bf16.mxu1 %v3469_v38  ;;  %v10393_v3 = vld [vmem:[%s13003_s5 + $0x100] sm:$0xff]  }
 0x3f3   : > { %v3357_v17 = vadd.f32 %v9547_v56, %v11848_v61  ;;  %v3202_v20 = vpop.f32.mrb[123].mxu0  ;;  %9621 = vmatmul.mubr.bf16.gmra.mrb[116].mxu1 %v3470_v60  ;;  %v3420_v42 = vmax.f32 %v3356_v26, 0.0  ;;  %9712 = vmatprep.subr.bf16.mxu1 %v10393_v3 }
 0x3f4   : > { %v3355_v24 = vadd.f32 %v11848_v61, %v3202_v20  ;;  %v3418_v9 = vmax.f32 %v3354_v59, 0.0  ;;  %v3477_v59 = vsub.s32 1, %v11081_v57 }
 0x3f5   : > { %v3421_v1 = vmax.f32 %v3357_v17, 0.0 }
 0x3f6   : > { %v3419_v34 = vmax.f32 %v3355_v24, 0.0  ;;  %v11943_v56 = vrot.slane %v11845_v22, %v3477_v59 }
 0x3f7   : > { %v3472_v47 = vpack.c.bf16 %v3421_v1, %v3420_v42 }
 0x3f8   : > { %v3471_v54 = vpack.c.bf16 %v3419_v34, %v3418_v9  ;;  %v9550_v25 = vpop.f32.mrb[124].mxu0 }
 0x3f9   : > { %v3360_v52 = vadd.f32 %v9550_v25, %v11848_v61  ;;  %v3215_v29 = vpop.f32.mrb[125].mxu0  ;;  %v10394_v25 = vld [vmem:[%s13003_s5 + $0x108] sm:$0xff]  }
 0x3fa   : > { %v3358_v27 = vadd.f32 %v11848_v61, %v3215_v29  ;;  %v9551_v4 = vpop.f32.mrb[126].mxu0  ;;  %9624 = vmatprep.mubr.bf16.mxu1 %v3471_v54 }
 0x3fb   : > { %v3361_v21 = vadd.f32 %v9551_v4, %v11848_v61  ;;  %v3218_v33 = vpop.f32.mrb[127].mxu0  ;;  %9625 = vmatmul.mubr.bf16.gmra.mrb[120].mxu1 %v3472_v47  ;;  %v3424_v13 = vmax.f32 %v3360_v52, 0.0 }
 0x3fc   : > { %v3359_v50 = vadd.f32 %v11848_v61, %v3218_v33  ;;  %v3422_v60 = vmax.f32 %v3358_v27, 0.0 }
 0x3fd   : > { %v3425_v30 = vmax.f32 %v3361_v21, 0.0 }
 0x3fe   : > { %v3423_v38 = vmax.f32 %v3359_v50, 0.0  ;;  %v10395_v50 = vld [vmem:[%s13003_s5 + $0x110] sm:$0xff]  }
 0x3ff   : > { %v3474_v28 = vpack.c.bf16 %v3425_v30, %v3424_v13 }
 0x400   : > { %v3473_v26 = vpack.c.bf16 %v3423_v38, %v3422_v60 }
 0x402   : > { %9628 = vmatprep.mubr.bf16.mxu1 %v3473_v26 }
 0x403   : > { %9629 = vmatmul.mubr.bf16.gmra.mrb[124].mxu1 %v3474_v28  ;;  %v10396_v28 = vld [vmem:[%s13003_s5 + $0x118] sm:$0xff]  }
 0x45e   : > { %v9570_v61 = vpop.f32.mrb[64].mxu1 }
 0x45f   : > { %v3561_v17 = vpop.f32.mrb[65].mxu1  ;;  %v3570_v24 = vadd.f32 %v9570_v61, %v11943_v56 }
 0x460   : > { %v9571_v20 = vpop.f32.mrb[66].mxu1  ;;  %v3562_v9 = vadd.f32 %v3561_v17, %v11943_v56 }
 0x461   : > { %v3573_v42 = vadd.f32 %v9571_v20, %v11943_v56  ;;  %v3564_v1 = vpop.f32.mrb[67].mxu1 }
 0x462   : > { %v3565_v34 = vadd.f32 %v3564_v1, %v11943_v56 }
 0x463   : > { %v3817_v47 = vpack.c.bf16 %v3573_v42, %v3570_v24  ;;  %v10397_v24 = vld [vmem:[%s13003_s5 + $0x120] sm:$0xff]  }
 0x464   : > { %v3816_v54 = vpack.c.bf16 %v3565_v34, %v3562_v9 }
 0x465   : > { %8425 = vst [vmem:[%s10672_s17 + $0x8] sm:$0xff] %v3817_v47  }
 0x466   : > { %8269 = vst [vmem:[%s10672_s17] sm:$0xff] %v3816_v54   ;;  %v9574_v52 = vpop.f32.mrb[68].mxu1  ;;  %9648 = vmatprep.mubr.bf16.mxu1 %v3816_v54 }
 0x467   : > { %v3577_v29 = vpop.f32.mrb[69].mxu1  ;;  %9649 = vmatmul.mubr.bf16.vlgmr.msra.gmra.mrb[128].mxu1 %v3817_v47  ;;  %v3586_v4 = vadd.f32 %v9574_v52, %v11943_v56  ;;  %v10398_v47 = vld [vmem:[%s13003_s5 + $0x128] sm:$0xff]  }
 0x468   : > { %v9575_v27 = vpop.f32.mrb[70].mxu1  ;;  %9713 = vmatpush3.bf16.msra.mxu1 %v10393_v3  ;;  %v3578_v13 = vadd.f32 %v3577_v29, %v11943_v56 }
 0x469   : > { %v3589_v21 = vadd.f32 %v9575_v27, %v11943_v56  ;;  %v3580_v33 = vpop.f32.mrb[71].mxu1  ;;  %9714 = vmatprep.subr.bf16.mxu1 %v10394_v25 }
 0x46a   : > { %v3581_v30 = vadd.f32 %v3580_v33, %v11943_v56 }
 0x46b   : > { %v3819_v60 = vpack.c.bf16 %v3589_v21, %v3586_v4  ;;  %v10399_v21 = vld [vmem:[%s13003_s5 + $0x130] sm:$0xff]  }
 0x46c   : > { %v3818_v38 = vpack.c.bf16 %v3581_v30, %v3578_v13  ;;  %9715 = vmatpush3.bf16.msra.mxu1 %v10394_v25 }
 0x46d   : > { %8427 = vst [vmem:[%s10672_s17 + $0x18] sm:$0xff] %v3819_v60   ;;  %9716 = vmatprep.subr.bf16.mxu1 %v10395_v50 }
 0x46e   : > { %8426 = vst [vmem:[%s10672_s17 + $0x10] sm:$0xff] %v3818_v38   ;;  %v9578_v26 = vpop.f32.mrb[72].mxu1  ;;  %9652 = vmatprep.mubr.bf16.mxu1 %v3818_v38 }
 0x46f   : > { %v3593_v3 = vpop.f32.mrb[73].mxu1  ;;  %9653 = vmatmul.mubr.bf16.gmra.mrb[132].mxu1 %v3819_v60  ;;  %v3602_v61 = vadd.f32 %v9578_v26, %v11943_v56  ;;  %v10400_v60 = vld [vmem:[%s13003_s5 + $0x138] sm:$0xff]  }
 0x470   : > { %v9579_v59 = vpop.f32.mrb[74].mxu1  ;;  %9717 = vmatpush3.bf16.msra.mxu1 %v10395_v50  ;;  %v3594_v42 = vadd.f32 %v3593_v3, %v11943_v56 }
 0x471   : > { %v3605_v17 = vadd.f32 %v9579_v59, %v11943_v56  ;;  %v3596_v20 = vpop.f32.mrb[75].mxu1  ;;  %9718 = vmatprep.subr.bf16.mxu1 %v10396_v28 }
 0x472   : > { %v3597_v1 = vadd.f32 %v3596_v20, %v11943_v56 }
 0x473   : > { %v3821_v9 = vpack.c.bf16 %v3605_v17, %v3602_v61 }
 0x474   : > { %v3820_v34 = vpack.c.bf16 %v3597_v1, %v3594_v42  ;;  %9719 = vmatpush3.bf16.msra.mxu1 %v10396_v28 }
 0x475   : > { %8429 = vst [vmem:[%s10672_s17 + $0x28] sm:$0xff] %v3821_v9   ;;  %9720 = vmatprep.subr.bf16.mxu1 %v10397_v24 }
 0x476   : > { %8428 = vst [vmem:[%s10672_s17 + $0x20] sm:$0xff] %v3820_v34   ;;  %v9582_v54 = vpop.f32.mrb[76].mxu1  ;;  %9656 = vmatprep.mubr.bf16.mxu1 %v3820_v34 }
 0x477   : > { %v3609_v25 = vpop.f32.mrb[77].mxu1  ;;  %9657 = vmatmul.mubr.bf16.gmra.mrb[136].mxu1 %v3821_v9  ;;  %v3618_v29 = vadd.f32 %v9582_v54, %v11943_v56 }
 0x478   : > { %v9583_v52 = vpop.f32.mrb[78].mxu1  ;;  %9721 = vmatpush3.bf16.msra.mxu1 %v10397_v24  ;;  %v3610_v33 = vadd.f32 %v3609_v25, %v11943_v56 }
 0x479   : > { %v3621_v27 = vadd.f32 %v9583_v52, %v11943_v56  ;;  %v3612_v4 = vpop.f32.mrb[79].mxu1  ;;  %9722 = vmatprep.subr.bf16.mxu1 %v10398_v47 }
 0x47a   : > { %v3613_v50 = vadd.f32 %v3612_v4, %v11943_v56 }
 0x47b   : > { %v3823_v13 = vpack.c.bf16 %v3621_v27, %v3618_v29 }
 0x47c   : > { %v3822_v30 = vpack.c.bf16 %v3613_v50, %v3610_v33  ;;  %9723 = vmatpush3.bf16.msra.mxu1 %v10398_v47 }
 0x47d   : > { %8431 = vst [vmem:[%s10672_s17 + $0x38] sm:$0xff] %v3823_v13   ;;  %9724 = vmatprep.subr.bf16.mxu1 %v10399_v21 }
 0x47e   : > { %8430 = vst [vmem:[%s10672_s17 + $0x30] sm:$0xff] %v3822_v30   ;;  %v9586_v38 = vpop.f32.mrb[80].mxu1  ;;  %9660 = vmatprep.mubr.bf16.mxu1 %v3822_v30 }
 0x47f   : > { %v3625_v28 = vpop.f32.mrb[81].mxu1  ;;  %9661 = vmatmul.mubr.bf16.gmra.mrb[140].mxu1 %v3823_v13  ;;  %v3634_v3 = vadd.f32 %v9586_v38, %v11943_v56 }
 0x480   : > { %v9587_v26 = vpop.f32.mrb[82].mxu1  ;;  %9725 = vmatpush3.bf16.msra.mxu1 %v10399_v21  ;;  %v3626_v17 = vadd.f32 %v3625_v28, %v11943_v56 }
 0x481   : > { %v3637_v59 = vadd.f32 %v9587_v26, %v11943_v56  ;;  %v3628_v61 = vpop.f32.mrb[83].mxu1  ;;  %9726 = vmatprep.subr.bf16.mxu1 %v10400_v60 }
 0x482   : > { %v3629_v20 = vadd.f32 %v3628_v61, %v11943_v56 }
 0x483   : > { %v3825_v24 = vpack.c.bf16 %v3637_v59, %v3634_v3 }
 0x484   : > { %v3824_v42 = vpack.c.bf16 %v3629_v20, %v3626_v17  ;;  %9727 = vmatpush3.bf16.msra.mxu1 %v10400_v60 }
 0x485   : > { %8433 = vst [vmem:[%s10672_s17 + $0x48] sm:$0xff] %v3825_v24  }
 0x486   : > { %8432 = vst [vmem:[%s10672_s17 + $0x40] sm:$0xff] %v3824_v42   ;;  %v9590_v1 = vpop.f32.mrb[84].mxu1  ;;  %9664 = vmatprep.mubr.bf16.mxu1 %v3824_v42 }
 0x487   : > { %v3641_v9 = vpop.f32.mrb[85].mxu1  ;;  %9665 = vmatmul.mubr.bf16.gmra.mrb[144].mxu1 %v3825_v24  ;;  %v3650_v47 = vadd.f32 %v9590_v1, %v11943_v56 }
 0x488   : > { %v9591_v34 = vpop.f32.mrb[86].mxu1  ;;  %v3642_v52 = vadd.f32 %v3641_v9, %v11943_v56 }
 0x489   : > { %v3653_v54 = vadd.f32 %v9591_v34, %v11943_v56  ;;  %v3644_v25 = vpop.f32.mrb[87].mxu1 }
 0x48a   : > { %v3645_v29 = vadd.f32 %v3644_v25, %v11943_v56 }
 0x48b   : > { %v3827_v27 = vpack.c.bf16 %v3653_v54, %v3650_v47 }
 0x48c   : > { %v3826_v4 = vpack.c.bf16 %v3645_v29, %v3642_v52 }
 0x48d   : > { %8435 = vst [vmem:[%s10672_s17 + $0x58] sm:$0xff] %v3827_v27  }
 0x48e   : > { %8434 = vst [vmem:[%s10672_s17 + $0x50] sm:$0xff] %v3826_v4   ;;  %v9594_v21 = vpop.f32.mrb[88].mxu1  ;;  %9668 = vmatprep.mubr.bf16.mxu1 %v3826_v4 }
 0x48f   : > { %v3657_v33 = vpop.f32.mrb[89].mxu1  ;;  %9669 = vmatmul.mubr.bf16.gmra.mrb[148].mxu1 %v3827_v27  ;;  %v3666_v13 = vadd.f32 %v9594_v21, %v11943_v56 }
 0x490   : > { %v9595_v50 = vpop.f32.mrb[90].mxu1  ;;  %v3658_v38 = vadd.f32 %v3657_v33, %v11943_v56 }
 0x491   : > { %v3669_v30 = vadd.f32 %v9595_v50, %v11943_v56  ;;  %v3660_v60 = vpop.f32.mrb[91].mxu1 }
 0x492   : > { %v3661_v28 = vadd.f32 %v3660_v60, %v11943_v56 }
 0x493   : > { %v3829_v26 = vpack.c.bf16 %v3669_v30, %v3666_v13 }
 0x494   : > { %v3828_v3 = vpack.c.bf16 %v3661_v28, %v3658_v38 }
 0x495   : > { %8437 = vst [vmem:[%s10672_s17 + $0x68] sm:$0xff] %v3829_v26  }
 0x496   : > { %8436 = vst [vmem:[%s10672_s17 + $0x60] sm:$0xff] %v3828_v3   ;;  %v9598_v59 = vpop.f32.mrb[92].mxu1  ;;  %9672 = vmatprep.mubr.bf16.mxu1 %v3828_v3 }
 0x497   : > { %v3673_v61 = vpop.f32.mrb[93].mxu1  ;;  %9673 = vmatmul.mubr.bf16.gmra.mrb[152].mxu1 %v3829_v26  ;;  %v3682_v20 = vadd.f32 %v9598_v59, %v11943_v56 }
 0x498   : > { %v9599_v17 = vpop.f32.mrb[94].mxu1  ;;  %v3674_v1 = vadd.f32 %v3673_v61, %v11943_v56 }
 0x499   : > { %v3685_v24 = vadd.f32 %v9599_v17, %v11943_v56  ;;  %v3676_v42 = vpop.f32.mrb[95].mxu1 }
 0x49a   : > { %v3677_v9 = vadd.f32 %v3676_v42, %v11943_v56 }
 0x49b   : > { %v3831_v34 = vpack.c.bf16 %v3685_v24, %v3682_v20 }
 0x49c   : > { %v3830_v47 = vpack.c.bf16 %v3677_v9, %v3674_v1 }
 0x49d   : > { %8439 = vst [vmem:[%s10672_s17 + $0x78] sm:$0xff] %v3831_v34  }
 0x49e   : > { %8438 = vst [vmem:[%s10672_s17 + $0x70] sm:$0xff] %v3830_v47   ;;  %v9602_v54 = vpop.f32.mrb[96].mxu1  ;;  %9676 = vmatprep.mubr.bf16.mxu1 %v3830_v47 }
 0x49f   : > { %v3689_v25 = vpop.f32.mrb[97].mxu1  ;;  %9677 = vmatmul.mubr.bf16.gmra.mrb[156].mxu1 %v3831_v34  ;;  %v3698_v29 = vadd.f32 %v9602_v54, %v11943_v56 }
 0x4a0   : > { %v9603_v52 = vpop.f32.mrb[98].mxu1  ;;  %v3690_v21 = vadd.f32 %v3689_v25, %v11943_v56 }
 0x4a1   : > { %v3701_v27 = vadd.f32 %v9603_v52, %v11943_v56  ;;  %v3692_v4 = vpop.f32.mrb[99].mxu1 }
 0x4a2   : > { %v3693_v33 = vadd.f32 %v3692_v4, %v11943_v56 }
 0x4a3   : > { %v3833_v50 = vpack.c.bf16 %v3701_v27, %v3698_v29 }
 0x4a4   : > { %v3832_v13 = vpack.c.bf16 %v3693_v33, %v3690_v21 }
 0x4a5   : > { %8441 = vst [vmem:[%s10672_s17 + $0x88] sm:$0xff] %v3833_v50  }
 0x4a6   : > { %8440 = vst [vmem:[%s10672_s17 + $0x80] sm:$0xff] %v3832_v13   ;;  %v9606_v30 = vpop.f32.mrb[100].mxu1  ;;  %9680 = vmatprep.mubr.bf16.mxu1 %v3832_v13 }
 0x4a7   : > { %v3705_v60 = vpop.f32.mrb[101].mxu1  ;;  %9681 = vmatmul.mubr.bf16.gmra.mrb[160].mxu1 %v3833_v50  ;;  %v3714_v28 = vadd.f32 %v9606_v30, %v11943_v56 }
 0x4a8   : > { %v9607_v38 = vpop.f32.mrb[102].mxu1  ;;  %v3706_v59 = vadd.f32 %v3705_v60, %v11943_v56 }
 0x4a9   : > { %v3717_v26 = vadd.f32 %v9607_v38, %v11943_v56  ;;  %v3708_v3 = vpop.f32.mrb[103].mxu1 }
 0x4aa   : > { %v3709_v61 = vadd.f32 %v3708_v3, %v11943_v56 }
 0x4ab   : > { %v3835_v17 = vpack.c.bf16 %v3717_v26, %v3714_v28 }
 0x4ac   : > { %v3834_v20 = vpack.c.bf16 %v3709_v61, %v3706_v59 }
 0x4ad   : > { %8443 = vst [vmem:[%s10672_s17 + $0x98] sm:$0xff] %v3835_v17  }
 0x4ae   : > { %8442 = vst [vmem:[%s10672_s17 + $0x90] sm:$0xff] %v3834_v20   ;;  %v9610_v24 = vpop.f32.mrb[104].mxu1  ;;  %9684 = vmatprep.mubr.bf16.mxu1 %v3834_v20 }
 0x4af   : > { %v3721_v42 = vpop.f32.mrb[105].mxu1  ;;  %9685 = vmatmul.mubr.bf16.gmra.mrb[164].mxu1 %v3835_v17  ;;  %v3730_v9 = vadd.f32 %v9610_v24, %v11943_v56 }
 0x4b0   : > { %v9611_v1 = vpop.f32.mrb[106].mxu1  ;;  %v3722_v54 = vadd.f32 %v3721_v42, %v11943_v56 }
 0x4b1   : > { %v3733_v34 = vadd.f32 %v9611_v1, %v11943_v56  ;;  %v3724_v47 = vpop.f32.mrb[107].mxu1 }
 0x4b2   : > { %v3725_v25 = vadd.f32 %v3724_v47, %v11943_v56 }
 0x4b3   : > { %v3837_v52 = vpack.c.bf16 %v3733_v34, %v3730_v9 }
 0x4b4   : > { %v3836_v29 = vpack.c.bf16 %v3725_v25, %v3722_v54 }
 0x4b5   : > { %8445 = vst [vmem:[%s10672_s17 + $0xa8] sm:$0xff] %v3837_v52  }
 0x4b6   : > { %8444 = vst [vmem:[%s10672_s17 + $0xa0] sm:$0xff] %v3836_v29   ;;  %v9614_v27 = vpop.f32.mrb[108].mxu1  ;;  %9688 = vmatprep.mubr.bf16.mxu1 %v3836_v29 }
 0x4b7   : > { %v3737_v4 = vpop.f32.mrb[109].mxu1  ;;  %9689 = vmatmul.mubr.bf16.gmra.mrb[168].mxu1 %v3837_v52  ;;  %v3746_v33 = vadd.f32 %v9614_v27, %v11943_v56 }
 0x4b8   : > { %v9615_v21 = vpop.f32.mrb[110].mxu1  ;;  %v3738_v30 = vadd.f32 %v3737_v4, %v11943_v56 }
 0x4b9   : > { %v3749_v50 = vadd.f32 %v9615_v21, %v11943_v56  ;;  %v3740_v13 = vpop.f32.mrb[111].mxu1 }
 0x4ba   : > { %v3741_v60 = vadd.f32 %v3740_v13, %v11943_v56 }
 0x4bb   : > { %v3839_v38 = vpack.c.bf16 %v3749_v50, %v3746_v33 }
 0x4bc   : > { %v3838_v28 = vpack.c.bf16 %v3741_v60, %v3738_v30 }
 0x4bd   : > { %8447 = vst [vmem:[%s10672_s17 + $0xb8] sm:$0xff] %v3839_v38  }
 0x4be   : > { %8446 = vst [vmem:[%s10672_s17 + $0xb0] sm:$0xff] %v3838_v28   ;;  %v9618_v26 = vpop.f32.mrb[112].mxu1  ;;  %9692 = vmatprep.mubr.bf16.mxu1 %v3838_v28 }
 0x4bf   : > { %v3753_v3 = vpop.f32.mrb[113].mxu1  ;;  %9693 = vmatmul.mubr.bf16.gmra.mrb[172].mxu1 %v3839_v38  ;;  %v3762_v61 = vadd.f32 %v9618_v26, %v11943_v56 }
 0x4c0   : > { %v9619_v59 = vpop.f32.mrb[114].mxu1  ;;  %v3754_v24 = vadd.f32 %v3753_v3, %v11943_v56 }
 0x4c1   : > { %v3765_v17 = vadd.f32 %v9619_v59, %v11943_v56  ;;  %v3756_v20 = vpop.f32.mrb[115].mxu1 }
 0x4c2   : > { %v3757_v42 = vadd.f32 %v3756_v20, %v11943_v56 }
 0x4c3   : > { %v3841_v1 = vpack.c.bf16 %v3765_v17, %v3762_v61 }
 0x4c4   : > { %v3840_v9 = vpack.c.bf16 %v3757_v42, %v3754_v24 }
 0x4c5   : > { %8449 = vst [vmem:[%s10672_s17 + $0xc8] sm:$0xff] %v3841_v1  }
 0x4c6   : > { %8448 = vst [vmem:[%s10672_s17 + $0xc0] sm:$0xff] %v3840_v9   ;;  %v9622_v34 = vpop.f32.mrb[116].mxu1  ;;  %9696 = vmatprep.mubr.bf16.mxu1 %v3840_v9 }
 0x4c7   : > { %v3769_v47 = vpop.f32.mrb[117].mxu1  ;;  %9697 = vmatmul.mubr.bf16.gmra.mrb[176].mxu1 %v3841_v1  ;;  %v3778_v25 = vadd.f32 %v9622_v34, %v11943_v56 }
 0x4c8   : > { %v9623_v54 = vpop.f32.mrb[118].mxu1  ;;  %v3770_v27 = vadd.f32 %v3769_v47, %v11943_v56 }
 0x4c9   : > { %v3781_v52 = vadd.f32 %v9623_v54, %v11943_v56  ;;  %v3772_v29 = vpop.f32.mrb[119].mxu1 }
 0x4ca   : > { %v3773_v4 = vadd.f32 %v3772_v29, %v11943_v56  ;;  %v10402_v29 = vld [vmem:[%s13003_s5 + $0x188] sm:$0xff]  }
 0x4cb   : > { %v3843_v21 = vpack.c.bf16 %v3781_v52, %v3778_v25  ;;  %v10401_v52 = vld [vmem:[%s13003_s5 + $0x180] sm:$0xff]  }
 0x4cc   : > { %v3842_v33 = vpack.c.bf16 %v3773_v4, %v3770_v27  ;;  %9792 = vmatprep.subr.bf16.mxu0 %v10401_v52  ;;  %v10404_v27 = vld [vmem:[%s13003_s5 + $0x198] sm:$0xff]  }
 0x4cd   : > { %8451 = vst [vmem:[%s10672_s17 + $0xd8] sm:$0xff] %v3843_v21   ;;  %9793 = vmatpush3.bf16.msra.mxu0 %v10401_v52 }
 0x4ce   : > { %8450 = vst [vmem:[%s10672_s17 + $0xd0] sm:$0xff] %v3842_v33   ;;  %v9626_v50 = vpop.f32.mrb[120].mxu1  ;;  %9700 = vmatprep.mubr.bf16.mxu1 %v3842_v33  ;;  %9794 = vmatprep.subr.bf16.mxu0 %v10402_v29 }
 0x4cf   : > { %v3785_v13 = vpop.f32.mrb[121].mxu1  ;;  %9701 = vmatmul.mubr.bf16.gmra.mrb[180].mxu1 %v3843_v21  ;;  %v3794_v60 = vadd.f32 %v9626_v50, %v11943_v56 }
 0x4d0   : > { %v9627_v30 = vpop.f32.mrb[122].mxu1  ;;  %v3786_v26 = vadd.f32 %v3785_v13, %v11943_v56 }
 0x4d1   : > { %v3797_v38 = vadd.f32 %v9627_v30, %v11943_v56  ;;  %v3788_v28 = vpop.f32.mrb[123].mxu1  ;;  %9795 = vmatpush3.bf16.msra.mxu0 %v10402_v29 }
 0x4d2   : > { %v3789_v3 = vadd.f32 %v3788_v28, %v11943_v56 }
 0x4d3   : > { %v3845_v59 = vpack.c.bf16 %v3797_v38, %v3794_v60 }
 0x4d4   : > { %v3844_v61 = vpack.c.bf16 %v3789_v3, %v3786_v26 }
 0x4d5   : > { %8453 = vst [vmem:[%s10672_s17 + $0xe8] sm:$0xff] %v3845_v59  }
 0x4d6   : > { %8452 = vst [vmem:[%s10672_s17 + $0xe0] sm:$0xff] %v3844_v61   ;;  %v9630_v17 = vpop.f32.mrb[124].mxu1  ;;  %9704 = vmatprep.mubr.bf16.mxu1 %v3844_v61 }
 0x4d7   : > { %v3801_v20 = vpop.f32.mrb[125].mxu1  ;;  %9705 = vmatmul.mubr.bf16.gmra.mrb[184].mxu1 %v3845_v59  ;;  %v3810_v42 = vadd.f32 %v9630_v17, %v11943_v56 }
 0x4d8   : > { %v9631_v24 = vpop.f32.mrb[126].mxu1  ;;  %v3802_v34 = vadd.f32 %v3801_v20, %v11943_v56 }
 0x4d9   : > { %v3813_v1 = vadd.f32 %v9631_v24, %v11943_v56  ;;  %v3804_v9 = vpop.f32.mrb[127].mxu1 }
 0x4da   : > { %v3805_v47 = vadd.f32 %v3804_v9, %v11943_v56  ;;  %v10403_v56 = vld [vmem:[%s13003_s5 + $0x190] sm:$0xff]  }
 0x4db   : > { %v3847_v54 = vpack.c.bf16 %v3813_v1, %v3810_v42  ;;  %9796 = vmatprep.subr.bf16.mxu0 %v10403_v56 }
 0x4dc   : > { %v3846_v25 = vpack.c.bf16 %v3805_v47, %v3802_v34  ;;  %9797 = vmatpush3.bf16.msra.mxu0 %v10403_v56 }
 0x4dd   : > { %8455 = vst [vmem:[%s10672_s17 + $0xf8] sm:$0xff] %v3847_v54   ;;  %9798 = vmatprep.subr.bf16.mxu0 %v10404_v27 }
 0x4de   : > { %8454 = vst [vmem:[%s10672_s17 + $0xf0] sm:$0xff] %v3846_v25   ;;  %9708 = vmatprep.mubr.bf16.mxu1 %v3846_v25 }
 0x4df   : > { %9709 = vmatmul.mubr.bf16.gmra.mrb[188].mxu1 %v3847_v54 }
 0x4e0   : > { %9728 = vmatprep.mubr.bf16.mxu1 %v11495_v32  ;;  %v10405_v32 = vld [vmem:[%s13003_s5 + $0x1a0] sm:$0xff]   ;;  %9799 = vmatpush3.bf16.msra.mxu0 %v10404_v27 }
 0x4e1   : > { %9800 = vmatprep.subr.bf16.mxu0 %v10405_v32 }
 0x4e4   : > { %9801 = vmatpush3.bf16.msra.mxu0 %v10405_v32 }
 0x4e7   : > { %9729 = vmatmul.mubr.bf16.vlgmr.msra.gmra.mrb[128].mxu1 %v11491_v36  ;;  %v10406_v36 = vld [vmem:[%s13003_s5 + $0x1a8] sm:$0xff]  }
 0x4e8   : > { %9732 = vmatprep.mubr.bf16.mxu1 %v11522_v5  ;;  %9802 = vmatprep.subr.bf16.mxu0 %v10406_v36  ;;  %v10408_v5 = vld [vmem:[%s13003_s5 + $0x1b8] sm:$0xff]  }
 0x4e9   : > { %9803 = vmatpush3.bf16.msra.mxu0 %v10406_v36 }
 0x4ef   : > { %9733 = vmatmul.mubr.bf16.gmra.mrb[132].mxu1 %v11513_v55  ;;  %v10407_v55 = vld [vmem:[%s13003_s5 + $0x1b0] sm:$0xff]  }
 0x4f0   : > { %9736 = vmatprep.mubr.bf16.mxu1 %v11547_v7  ;;  %9804 = vmatprep.subr.bf16.mxu0 %v10407_v55  ;;  %v12122_v7 = vld [vmem:[%s13004_s6] sm:$0xff] }
 0x4f1   : > { %9805 = vmatpush3.bf16.msra.mxu0 %v10407_v55 }
 0x4f2   : > { %9806 = vmatprep.subr.bf16.mxu0 %v10408_v5 }
 0x4f5   : > { %9807 = vmatpush3.bf16.msra.mxu0 %v10408_v5 }
 0x4f7   : > { %9737 = vmatmul.mubr.bf16.gmra.mrb[136].mxu1 %v11543_v62  ;;  %v4846_v62 = vsub.s32 2, %v11081_v57 }
 0x4f8   : > { %9740 = vmatprep.mubr.bf16.mxu1 %v11569_v48 }
 0x4ff   : > { %9741 = vmatmul.mubr.bf16.gmra.mrb[140].mxu1 %v11565_v46  ;;  %v12125_v46 = vrot.slane %v12122_v7, %v4846_v62 }
 0x500   : > { %9744 = vmatprep.mubr.bf16.mxu1 %v11587_v12 }
 0x507   : > { %9745 = vmatmul.mubr.bf16.gmra.mrb[144].mxu1 %v11585_v11 }
 0x508   : > { %9748 = vmatprep.mubr.bf16.mxu1 %v11597_v23 }
 0x50f   : > { %9749 = vmatmul.mubr.bf16.gmra.mrb[148].mxu1 %v11595_v6 }
 0x510   : > { %9752 = vmatprep.mubr.bf16.mxu1 %v11610_v35 }
 0x517   : > { %9753 = vmatmul.mubr.bf16.gmra.mrb[152].mxu1 %v11608_v31 }
 0x518   : > { %9756 = vmatprep.mubr.bf16.mxu1 %v11622_v43 }
 0x51f   : > { %9757 = vmatmul.mubr.bf16.gmra.mrb[156].mxu1 %v11620_v37 }
 0x520   : > { %9760 = vmatprep.mubr.bf16.mxu1 %v11634_v51 }
 0x527   : > { %9761 = vmatmul.mubr.bf16.gmra.mrb[160].mxu1 %v11632_v49 }
 0x528   : > { %9764 = vmatprep.mubr.bf16.mxu1 %v11640_v63 }
 0x52f   : > { %9765 = vmatmul.mubr.bf16.gmra.mrb[164].mxu1 %v11638_v53 }
 0x530   : > { %9768 = vmatprep.mubr.bf16.mxu1 %v11646_v2 }
 0x537   : > { %9769 = vmatmul.mubr.bf16.gmra.mrb[168].mxu1 %v11644_v8 }
 0x538   : > { %9772 = vmatprep.mubr.bf16.mxu1 %v11652_v19 }
 0x53f   : > { %9773 = vmatmul.mubr.bf16.gmra.mrb[172].mxu1 %v11650_v16 }
 0x540   : > { %9776 = vmatprep.mubr.bf16.mxu1 %v11672_v41 }
 0x547   : > { %9777 = vmatmul.mubr.bf16.gmra.mrb[176].mxu1 %v11670_v10 }
 0x548   : > { %9780 = vmatprep.mubr.bf16.mxu1 %v11689_v0 }
 0x54f   : > { %9781 = vmatmul.mubr.bf16.gmra.mrb[180].mxu1 %v11687_v58 }
 0x550   : > { %9784 = vmatprep.mubr.bf16.mxu1 %v11706_v44 }
 0x557   : > { %9785 = vmatmul.mubr.bf16.gmra.mrb[184].mxu1 %v11704_v39 }
 0x558   : > { %9788 = vmatprep.mubr.bf16.mxu1 %v11723_v45 }
 0x55f   : > { %9789 = vmatmul.mubr.bf16.gmra.mrb[188].mxu1 %v11721_v40 }
 0x5ba   : > { %v9730_v48 = vpop.f32.mrb[128].mxu1 }
 0x5bb   : > { %v4850_v11 = vadd.f32 %v9730_v48, %v12125_v46  ;;  %v4589_v12 = vpop.f32.mrb[129].mxu1 }
 0x5bc   : > { %v4848_v6 = vadd.f32 %v12125_v46, %v4589_v12  ;;  %v9731_v23 = vpop.f32.mrb[130].mxu1 }
 0x5bd   : > { %v4851_v31 = vadd.f32 %v9731_v23, %v12125_v46  ;;  %v4592_v35 = vpop.f32.mrb[131].mxu1  ;;  %v4914_v43 = vmax.f32 %v4850_v11, 0.0 }
 0x5be   : > { %v4849_v37 = vadd.f32 %v12125_v46, %v4592_v35  ;;  %v4912_v51 = vmax.f32 %v4848_v6, 0.0 }
 0x5bf   : > { %v4915_v49 = vmax.f32 %v4851_v31, 0.0 }
 0x5c0   : > { %v4913_v53 = vmax.f32 %v4849_v37, 0.0 }
 0x5c1   : > { %v4994_v63 = vpack.c.bf16 %v4915_v49, %v4914_v43 }
 0x5c2   : > { %v4993_v8 = vpack.c.bf16 %v4913_v53, %v4912_v51  ;;  %v9734_v2 = vpop.f32.mrb[132].mxu1 }
 0x5c3   : > { %v4854_v16 = vadd.f32 %v9734_v2, %v12125_v46  ;;  %v4605_v19 = vpop.f32.mrb[133].mxu1 }
 0x5c4   : > { %v4852_v10 = vadd.f32 %v12125_v46, %v4605_v19  ;;  %v9735_v41 = vpop.f32.mrb[134].mxu1  ;;  %9808 = vmatprep.mubr.bf16.mxu0 %v4993_v8 }
 0x5c5   : > { %v4855_v45 = vadd.f32 %v9735_v41, %v12125_v46  ;;  %v4608_v58 = vpop.f32.mrb[135].mxu1  ;;  %9809 = vmatmul.mubr.bf16.vlgmr.msra.gmra.mrb[128].mxu0 %v4994_v63  ;;  %v4918_v39 = vmax.f32 %v4854_v16, 0.0 }
 0x5c6   : > { %v4853_v0 = vadd.f32 %v12125_v46, %v4608_v58  ;;  %v4916_v40 = vmax.f32 %v4852_v10, 0.0 }
 0x5c7   : > { %v4919_v44 = vmax.f32 %v4855_v45, 0.0 }
 0x5c8   : > { %v4917_v4 = vmax.f32 %v4853_v0, 0.0 }
 0x5c9   : > { %v4996_v21 = vpack.c.bf16 %v4919_v44, %v4918_v39 }
 0x5ca   : > { %v4995_v33 = vpack.c.bf16 %v4917_v4, %v4916_v40  ;;  %v9738_v50 = vpop.f32.mrb[136].mxu1 }
 0x5cb   : > { %v4858_v13 = vadd.f32 %v9738_v50, %v12125_v46  ;;  %v4621_v30 = vpop.f32.mrb[137].mxu1 }
 0x5cc   : > { %v4856_v60 = vadd.f32 %v12125_v46, %v4621_v30  ;;  %v9739_v38 = vpop.f32.mrb[138].mxu1  ;;  %9812 = vmatprep.mubr.bf16.mxu0 %v4995_v33 }
 0x5cd   : > { %v4859_v28 = vadd.f32 %v9739_v38, %v12125_v46  ;;  %v4624_v26 = vpop.f32.mrb[139].mxu1  ;;  %9813 = vmatmul.mubr.bf16.gmra.mrb[132].mxu0 %v4996_v21  ;;  %v4922_v59 = vmax.f32 %v4858_v13, 0.0 }
 0x5ce   : > { %v4857_v3 = vadd.f32 %v12125_v46, %v4624_v26  ;;  %v4920_v17 = vmax.f32 %v4856_v60, 0.0 }
 0x5cf   : > { %v4923_v61 = vmax.f32 %v4859_v28, 0.0 }
 0x5d0   : > { %v4921_v20 = vmax.f32 %v4857_v3, 0.0 }
 0x5d1   : > { %v4998_v24 = vpack.c.bf16 %v4923_v61, %v4922_v59 }
 0x5d2   : > { %v4997_v42 = vpack.c.bf16 %v4921_v20, %v4920_v17  ;;  %v9742_v1 = vpop.f32.mrb[140].mxu1 }
 0x5d3   : > { %v4862_v9 = vadd.f32 %v9742_v1, %v12125_v46  ;;  %v4637_v34 = vpop.f32.mrb[141].mxu1 }
 0x5d4   : > { %v4860_v47 = vadd.f32 %v12125_v46, %v4637_v34  ;;  %v9743_v54 = vpop.f32.mrb[142].mxu1  ;;  %9816 = vmatprep.mubr.bf16.mxu0 %v4997_v42 }
 0x5d5   : > { %v4863_v25 = vadd.f32 %v9743_v54, %v12125_v46  ;;  %v4640_v52 = vpop.f32.mrb[143].mxu1  ;;  %9817 = vmatmul.mubr.bf16.gmra.mrb[136].mxu0 %v4998_v24  ;;  %v4926_v56 = vmax.f32 %v4862_v9, 0.0 }
 0x5d6   : > { %v4861_v29 = vadd.f32 %v12125_v46, %v4640_v52  ;;  %v4924_v32 = vmax.f32 %v4860_v47, 0.0 }
 0x5d7   : > { %v4927_v27 = vmax.f32 %v4863_v25, 0.0 }
 0x5d8   : > { %v4925_v36 = vmax.f32 %v4861_v29, 0.0 }
 0x5d9   : > { %v5000_v55 = vpack.c.bf16 %v4927_v27, %v4926_v56 }
 0x5da   : > { %v4999_v5 = vpack.c.bf16 %v4925_v36, %v4924_v32  ;;  %v9746_v62 = vpop.f32.mrb[144].mxu1 }
 0x5db   : > { %v4866_v48 = vadd.f32 %v9746_v62, %v12125_v46  ;;  %v4653_v11 = vpop.f32.mrb[145].mxu1 }
 0x5dc   : > { %v4864_v12 = vadd.f32 %v12125_v46, %v4653_v11  ;;  %v9747_v6 = vpop.f32.mrb[146].mxu1  ;;  %9820 = vmatprep.mubr.bf16.mxu0 %v4999_v5 }
 0x5dd   : > { %v4867_v23 = vadd.f32 %v9747_v6, %v12125_v46  ;;  %v4656_v31 = vpop.f32.mrb[147].mxu1  ;;  %9821 = vmatmul.mubr.bf16.gmra.mrb[140].mxu0 %v5000_v55  ;;  %v4930_v37 = vmax.f32 %v4866_v48, 0.0 }
 0x5de   : > { %v4865_v35 = vadd.f32 %v12125_v46, %v4656_v31  ;;  %v4928_v49 = vmax.f32 %v4864_v12, 0.0 }
 0x5df   : > { %v4931_v43 = vmax.f32 %v4867_v23, 0.0 }
 0x5e0   : > { %v4929_v51 = vmax.f32 %v4865_v35, 0.0 }
 0x5e1   : > { %v5002_v53 = vpack.c.bf16 %v4931_v43, %v4930_v37 }
 0x5e2   : > { %v5001_v63 = vpack.c.bf16 %v4929_v51, %v4928_v49  ;;  %v9750_v8 = vpop.f32.mrb[148].mxu1 }
 0x5e3   : > { %v4870_v2 = vadd.f32 %v9750_v8, %v12125_v46  ;;  %v4669_v16 = vpop.f32.mrb[149].mxu1 }
 0x5e4   : > { %v4868_v19 = vadd.f32 %v12125_v46, %v4669_v16  ;;  %v9751_v10 = vpop.f32.mrb[150].mxu1  ;;  %9824 = vmatprep.mubr.bf16.mxu0 %v5001_v63 }
 0x5e5   : > { %v4871_v41 = vadd.f32 %v9751_v10, %v12125_v46  ;;  %v4672_v45 = vpop.f32.mrb[151].mxu1  ;;  %9825 = vmatmul.mubr.bf16.gmra.mrb[144].mxu0 %v5002_v53  ;;  %v4934_v0 = vmax.f32 %v4870_v2, 0.0 }
 0x5e6   : > { %v4869_v58 = vadd.f32 %v12125_v46, %v4672_v45  ;;  %v4932_v44 = vmax.f32 %v4868_v19, 0.0 }
 0x5e7   : > { %v4935_v39 = vmax.f32 %v4871_v41, 0.0 }
 0x5e8   : > { %v4933_v40 = vmax.f32 %v4869_v58, 0.0 }
 0x5e9   : > { %v5004_v4 = vpack.c.bf16 %v4935_v39, %v4934_v0 }
 0x5ea   : > { %v5003_v21 = vpack.c.bf16 %v4933_v40, %v4932_v44  ;;  %v9754_v33 = vpop.f32.mrb[152].mxu1 }
 0x5eb   : > { %v4874_v50 = vadd.f32 %v9754_v33, %v12125_v46  ;;  %v4685_v13 = vpop.f32.mrb[153].mxu1 }
 0x5ec   : > { %v4872_v30 = vadd.f32 %v12125_v46, %v4685_v13  ;;  %v9755_v60 = vpop.f32.mrb[154].mxu1  ;;  %9828 = vmatprep.mubr.bf16.mxu0 %v5003_v21 }
 0x5ed   : > { %v4875_v38 = vadd.f32 %v9755_v60, %v12125_v46  ;;  %v4688_v28 = vpop.f32.mrb[155].mxu1  ;;  %9829 = vmatmul.mubr.bf16.gmra.mrb[148].mxu0 %v5004_v4  ;;  %v4938_v3 = vmax.f32 %v4874_v50, 0.0 }
 0x5ee   : > { %v4873_v26 = vadd.f32 %v12125_v46, %v4688_v28  ;;  %v4936_v61 = vmax.f32 %v4872_v30, 0.0 }
 0x5ef   : > { %v4939_v59 = vmax.f32 %v4875_v38, 0.0 }
 0x5f0   : > { %v4937_v17 = vmax.f32 %v4873_v26, 0.0 }
 0x5f1   : > { %v5006_v20 = vpack.c.bf16 %v4939_v59, %v4938_v3 }
 0x5f2   : > { %v5005_v24 = vpack.c.bf16 %v4937_v17, %v4936_v61  ;;  %v9758_v42 = vpop.f32.mrb[156].mxu1 }
 0x5f3   : > { %v4878_v1 = vadd.f32 %v9758_v42, %v12125_v46  ;;  %v4701_v9 = vpop.f32.mrb[157].mxu1 }
 0x5f4   : > { %v4876_v34 = vadd.f32 %v12125_v46, %v4701_v9  ;;  %v9759_v47 = vpop.f32.mrb[158].mxu1  ;;  %9832 = vmatprep.mubr.bf16.mxu0 %v5005_v24 }
 0x5f5   : > { %v4879_v54 = vadd.f32 %v9759_v47, %v12125_v46  ;;  %v4704_v25 = vpop.f32.mrb[159].mxu1  ;;  %9833 = vmatmul.mubr.bf16.gmra.mrb[152].mxu0 %v5006_v20  ;;  %v4942_v29 = vmax.f32 %v4878_v1, 0.0 }
 0x5f6   : > { %v4877_v52 = vadd.f32 %v12125_v46, %v4704_v25  ;;  %v4940_v27 = vmax.f32 %v4876_v34, 0.0 }
 0x5f7   : > { %v4943_v56 = vmax.f32 %v4879_v54, 0.0 }
 0x5f8   : > { %v4941_v32 = vmax.f32 %v4877_v52, 0.0 }
 0x5f9   : > { %v5008_v36 = vpack.c.bf16 %v4943_v56, %v4942_v29 }
 0x5fa   : > { %v5007_v55 = vpack.c.bf16 %v4941_v32, %v4940_v27  ;;  %v9762_v5 = vpop.f32.mrb[160].mxu1 }
 0x5fb   : > { %v4882_v62 = vadd.f32 %v9762_v5, %v12125_v46  ;;  %v4717_v48 = vpop.f32.mrb[161].mxu1 }
 0x5fc   : > { %v4880_v11 = vadd.f32 %v12125_v46, %v4717_v48  ;;  %v9763_v12 = vpop.f32.mrb[162].mxu1  ;;  %9836 = vmatprep.mubr.bf16.mxu0 %v5007_v55 }
 0x5fd   : > { %v4883_v6 = vadd.f32 %v9763_v12, %v12125_v46  ;;  %v4720_v23 = vpop.f32.mrb[163].mxu1  ;;  %9837 = vmatmul.mubr.bf16.gmra.mrb[156].mxu0 %v5008_v36  ;;  %v4946_v35 = vmax.f32 %v4882_v62, 0.0 }
 0x5fe   : > { %v4881_v31 = vadd.f32 %v12125_v46, %v4720_v23  ;;  %v4944_v43 = vmax.f32 %v4880_v11, 0.0 }
 0x5ff   : > { %v4947_v37 = vmax.f32 %v4883_v6, 0.0 }
 0x600   : > { %v4945_v49 = vmax.f32 %v4881_v31, 0.0 }
 0x601   : > { %v5010_v51 = vpack.c.bf16 %v4947_v37, %v4946_v35 }
 0x602   : > { %v5009_v53 = vpack.c.bf16 %v4945_v49, %v4944_v43  ;;  %v9766_v63 = vpop.f32.mrb[164].mxu1 }
 0x603   : > { %v4886_v8 = vadd.f32 %v9766_v63, %v12125_v46  ;;  %v4733_v2 = vpop.f32.mrb[165].mxu1 }
 0x604   : > { %v4884_v16 = vadd.f32 %v12125_v46, %v4733_v2  ;;  %v9767_v19 = vpop.f32.mrb[166].mxu1  ;;  %9840 = vmatprep.mubr.bf16.mxu0 %v5009_v53 }
 0x605   : > { %v4887_v10 = vadd.f32 %v9767_v19, %v12125_v46  ;;  %v4736_v41 = vpop.f32.mrb[167].mxu1  ;;  %9841 = vmatmul.mubr.bf16.gmra.mrb[160].mxu0 %v5010_v51  ;;  %v4950_v58 = vmax.f32 %v4886_v8, 0.0 }
 0x606   : > { %v4885_v45 = vadd.f32 %v12125_v46, %v4736_v41  ;;  %v4948_v39 = vmax.f32 %v4884_v16, 0.0 }
 0x607   : > { %v4951_v0 = vmax.f32 %v4887_v10, 0.0 }
 0x608   : > { %v4949_v44 = vmax.f32 %v4885_v45, 0.0 }
 0x609   : > { %v5012_v40 = vpack.c.bf16 %v4951_v0, %v4950_v58 }
 0x60a   : > { %v5011_v4 = vpack.c.bf16 %v4949_v44, %v4948_v39  ;;  %v9770_v21 = vpop.f32.mrb[168].mxu1 }
 0x60b   : > { %v4890_v33 = vadd.f32 %v9770_v21, %v12125_v46  ;;  %v4749_v50 = vpop.f32.mrb[169].mxu1 }
 0x60c   : > { %v4888_v13 = vadd.f32 %v12125_v46, %v4749_v50  ;;  %v9771_v30 = vpop.f32.mrb[170].mxu1  ;;  %9844 = vmatprep.mubr.bf16.mxu0 %v5011_v4 }
 0x60d   : > { %v4891_v60 = vadd.f32 %v9771_v30, %v12125_v46  ;;  %v4752_v38 = vpop.f32.mrb[171].mxu1  ;;  %9845 = vmatmul.mubr.bf16.gmra.mrb[164].mxu0 %v5012_v40  ;;  %v4954_v26 = vmax.f32 %v4890_v33, 0.0 }
 0x60e   : > { %v4889_v28 = vadd.f32 %v12125_v46, %v4752_v38  ;;  %v4952_v59 = vmax.f32 %v4888_v13, 0.0 }
 0x60f   : > { %v4955_v3 = vmax.f32 %v4891_v60, 0.0 }
 0x610   : > { %v4953_v61 = vmax.f32 %v4889_v28, 0.0 }
 0x611   : > { %v5014_v17 = vpack.c.bf16 %v4955_v3, %v4954_v26 }
 0x612   : > { %v5013_v20 = vpack.c.bf16 %v4953_v61, %v4952_v59  ;;  %v9774_v24 = vpop.f32.mrb[172].mxu1 }
 0x613   : > { %v4894_v42 = vadd.f32 %v9774_v24, %v12125_v46  ;;  %v4765_v1 = vpop.f32.mrb[173].mxu1 }
 0x614   : > { %v4892_v9 = vadd.f32 %v12125_v46, %v4765_v1  ;;  %v9775_v34 = vpop.f32.mrb[174].mxu1  ;;  %9848 = vmatprep.mubr.bf16.mxu0 %v5013_v20 }
 0x615   : > { %v4895_v47 = vadd.f32 %v9775_v34, %v12125_v46  ;;  %v4768_v54 = vpop.f32.mrb[175].mxu1  ;;  %9849 = vmatmul.mubr.bf16.gmra.mrb[168].mxu0 %v5014_v17  ;;  %v4958_v52 = vmax.f32 %v4894_v42, 0.0 }
 0x616   : > { %v4893_v25 = vadd.f32 %v12125_v46, %v4768_v54  ;;  %v4956_v56 = vmax.f32 %v4892_v9, 0.0 }
 0x617   : > { %v4959_v29 = vmax.f32 %v4895_v47, 0.0 }
 0x618   : > { %v4957_v27 = vmax.f32 %v4893_v25, 0.0 }
 0x619   : > { %v5016_v32 = vpack.c.bf16 %v4959_v29, %v4958_v52 }
 0x61a   : > { %v5015_v36 = vpack.c.bf16 %v4957_v27, %v4956_v56  ;;  %v9778_v55 = vpop.f32.mrb[176].mxu1 }
 0x61b   : > { %v4898_v5 = vadd.f32 %v9778_v55, %v12125_v46  ;;  %v4781_v62 = vpop.f32.mrb[177].mxu1  ;;  %v5027_v55 = vsub.s32 3, %v11081_v57 }
 0x61c   : > { %v4896_v48 = vadd.f32 %v12125_v46, %v4781_v62  ;;  %v9779_v11 = vpop.f32.mrb[178].mxu1  ;;  %9852 = vmatprep.mubr.bf16.mxu0 %v5015_v36  ;;  %v6019_v36 = vpop.trf.xlu0 }
 0x61d   : > { %v4899_v12 = vadd.f32 %v9779_v11, %v12125_v46  ;;  %v4784_v6 = vpop.f32.mrb[179].mxu1  ;;  %9853 = vmatmul.mubr.bf16.gmra.mrb[172].mxu0 %v5016_v32  ;;  %v4962_v31 = vmax.f32 %v4898_v5, 0.0  ;;  %6091 = vmatprep.mubr.bf16.mxu1 %v6019_v36  ;;  %v12193_v5 = vrot.slane %v12122_v7, %v5027_v55 }
 0x61e   : > { %v4897_v23 = vadd.f32 %v12125_v46, %v4784_v6  ;;  %v4960_v37 = vmax.f32 %v4896_v48, 0.0 }
 0x61f   : > { %v4963_v35 = vmax.f32 %v4899_v12, 0.0 }
 0x620   : > { %v4961_v43 = vmax.f32 %v4897_v23, 0.0 }
 0x621   : > { %v5018_v49 = vpack.c.bf16 %v4963_v35, %v4962_v31 }
 0x622   : > { %v5017_v51 = vpack.c.bf16 %v4961_v43, %v4960_v37  ;;  %v9782_v53 = vpop.f32.mrb[180].mxu1 }
 0x623   : > { %v4902_v63 = vadd.f32 %v9782_v53, %v12125_v46  ;;  %v4797_v8 = vpop.f32.mrb[181].mxu1 }
 0x624   : > { %v4900_v2 = vadd.f32 %v12125_v46, %v4797_v8  ;;  %v9783_v16 = vpop.f32.mrb[182].mxu1  ;;  %9856 = vmatprep.mubr.bf16.mxu0 %v5017_v51 }
 0x625   : > { %v4903_v19 = vadd.f32 %v9783_v16, %v12125_v46  ;;  %v4800_v10 = vpop.f32.mrb[183].mxu1  ;;  %9857 = vmatmul.mubr.bf16.gmra.mrb[176].mxu0 %v5018_v49  ;;  %v4966_v45 = vmax.f32 %v4902_v63, 0.0 }
 0x626   : > { %v4901_v41 = vadd.f32 %v12125_v46, %v4800_v10  ;;  %v4964_v0 = vmax.f32 %v4900_v2, 0.0 }
 0x627   : > { %v4967_v58 = vmax.f32 %v4903_v19, 0.0 }
 0x628   : > { %v4965_v39 = vmax.f32 %v4901_v41, 0.0 }
 0x629   : > { %v5020_v44 = vpack.c.bf16 %v4967_v58, %v4966_v45 }
 0x62a   : > { %v5019_v40 = vpack.c.bf16 %v4965_v39, %v4964_v0  ;;  %v9786_v4 = vpop.f32.mrb[184].mxu1 }
 0x62b   : > { %v4906_v21 = vadd.f32 %v9786_v4, %v12125_v46  ;;  %v4813_v33 = vpop.f32.mrb[185].mxu1 }
 0x62c   : > { %v4904_v50 = vadd.f32 %v12125_v46, %v4813_v33  ;;  %v9787_v13 = vpop.f32.mrb[186].mxu1  ;;  %9860 = vmatprep.mubr.bf16.mxu0 %v5019_v40 }
 0x62d   : > { %v4907_v30 = vadd.f32 %v9787_v13, %v12125_v46  ;;  %v4816_v60 = vpop.f32.mrb[187].mxu1  ;;  %9861 = vmatmul.mubr.bf16.gmra.mrb[180].mxu0 %v5020_v44  ;;  %v4970_v28 = vmax.f32 %v4906_v21, 0.0 }
 0x62e   : > { %v4905_v38 = vadd.f32 %v12125_v46, %v4816_v60  ;;  %v4968_v3 = vmax.f32 %v4904_v50, 0.0 }
 0x62f   : > { %v4971_v26 = vmax.f32 %v4907_v30, 0.0 }
 0x630   : > { %v4969_v59 = vmax.f32 %v4905_v38, 0.0 }
 0x631   : > { %v5022_v61 = vpack.c.bf16 %v4971_v26, %v4970_v28 }
 0x632   : > { %v5021_v17 = vpack.c.bf16 %v4969_v59, %v4968_v3  ;;  %v9790_v20 = vpop.f32.mrb[188].mxu1 }
 0x633   : > { %v4910_v24 = vadd.f32 %v9790_v20, %v12125_v46  ;;  %v4829_v42 = vpop.f32.mrb[189].mxu1 }
 0x634   : > { %v4908_v1 = vadd.f32 %v12125_v46, %v4829_v42  ;;  %v9791_v9 = vpop.f32.mrb[190].mxu1  ;;  %9864 = vmatprep.mubr.bf16.mxu0 %v5021_v17 }
 0x635   : > { %v4911_v34 = vadd.f32 %v9791_v9, %v12125_v46  ;;  %v4832_v47 = vpop.f32.mrb[191].mxu1  ;;  %9865 = vmatmul.mubr.bf16.gmra.mrb[184].mxu0 %v5022_v61  ;;  %v4974_v25 = vmax.f32 %v4910_v24, 0.0 }
 0x636   : > { %v4909_v54 = vadd.f32 %v12125_v46, %v4832_v47  ;;  %v4972_v29 = vmax.f32 %v4908_v1, 0.0 }
 0x637   : > { %v4975_v52 = vmax.f32 %v4911_v34, 0.0 }
 0x638   : > { %v4973_v56 = vmax.f32 %v4909_v54, 0.0 }
 0x639   : > { %v5024_v27 = vpack.c.bf16 %v4975_v52, %v4974_v25 }
 0x63a   : > { %v5023_v32 = vpack.c.bf16 %v4973_v56, %v4972_v29 }
 0x63c   : > { %9868 = vmatprep.mubr.bf16.mxu0 %v5023_v32 }
 0x63d   : > { %9869 = vmatmul.mubr.bf16.gmra.mrb[188].mxu0 %v5024_v27 }
 0x63e   : > { %6285 = vmatprep.mubr.bf16.mxu0 %v6019_v36 }
 0x698   : > { %v9810_v62 = vpop.f32.mrb[128].mxu0 }
 0x699   : > { %v5111_v48 = vpop.f32.mrb[129].mxu0  ;;  %v5120_v46 = vadd.f32 %v9810_v62, %v12193_v5 }
 0x69a   : > { %v9811_v11 = vpop.f32.mrb[130].mxu0  ;;  %v5112_v23 = vadd.f32 %v5111_v48, %v12193_v5 }
 0x69b   : > { %v5123_v12 = vadd.f32 %v9811_v11, %v12193_v5  ;;  %v5114_v6 = vpop.f32.mrb[131].mxu0 }
 0x69c   : > { %v5115_v31 = vadd.f32 %v5114_v6, %v12193_v5 }
 0x69d   : > { %v12199_v35 = vpack.c.bf16 %v5123_v12, %v5120_v46 }
 0x69e   : > { %v12201_v37 = vpack.c.bf16 %v5115_v31, %v5112_v23 }
 0x69f   : > { %v5821_v43 = vunpack.c.l.bf16 %v12199_v35  ;;  %v5822_v7 = vunpack.c.h.bf16 %v12199_v35 }
 0x6a0   : > { %v5819_v49 = vunpack.c.l.bf16 %v12201_v37  ;;  %v5820_v51 = vunpack.c.h.bf16 %v12201_v37  ;;  %v9814_v53 = vpop.f32.mrb[132].mxu0 }
 0x6a1   : > { %v12207_v63 = vsub.f32 %v5120_v46, %v5821_v43  ;;  %v12209_v8 = vsub.f32 %v5123_v12, %v5822_v7  ;;  %v5127_v2 = vpop.f32.mrb[133].mxu0  ;;  %v5136_v45 = vadd.f32 %v9814_v53, %v12193_v5 }
 0x6a2   : > { %v12211_v16 = vsub.f32 %v5112_v23, %v5819_v49  ;;  %v12213_v19 = vsub.f32 %v5115_v31, %v5820_v51  ;;  %v9815_v10 = vpop.f32.mrb[134].mxu0  ;;  %v5128_v44 = vadd.f32 %v5127_v2, %v12193_v5 }
 0x6a3   : > { %v5948_v41 = vpack.c.bf16 %v12209_v8, %v12207_v63  ;;  %v5139_v58 = vadd.f32 %v9815_v10, %v12193_v5  ;;  %v5130_v0 = vpop.f32.mrb[135].mxu0 }
 0x6a4   : > { %v5947_v39 = vpack.c.bf16 %v12213_v19, %v12211_v16  ;;  %v5131_v40 = vadd.f32 %v5130_v0, %v12193_v5 }
 0x6a5   : > { %v12223_v4 = vpack.c.bf16 %v5139_v58, %v5136_v45 }
 0x6a6   : > { %v12225_v21 = vpack.c.bf16 %v5131_v40, %v5128_v44 }
 0x6a7   : > { %v5825_v33 = vunpack.c.l.bf16 %v12223_v4  ;;  %v5826_v50 = vunpack.c.h.bf16 %v12223_v4 }
 0x6a8   : > { %v5823_v13 = vunpack.c.l.bf16 %v12225_v21  ;;  %v5824_v30 = vunpack.c.h.bf16 %v12225_v21  ;;  %v9818_v60 = vpop.f32.mrb[136].mxu0 }
 0x6a9   : > { %v12231_v38 = vsub.f32 %v5136_v45, %v5825_v33  ;;  %v12233_v28 = vsub.f32 %v5139_v58, %v5826_v50  ;;  %v5143_v26 = vpop.f32.mrb[137].mxu0  ;;  %v5152_v20 = vadd.f32 %v9818_v60, %v12193_v5 }
 0x6aa   : > { %v12235_v3 = vsub.f32 %v5128_v44, %v5823_v13  ;;  %v12237_v59 = vsub.f32 %v5131_v40, %v5824_v30  ;;  %v9819_v61 = vpop.f32.mrb[138].mxu0  ;;  %v5144_v9 = vadd.f32 %v5143_v26, %v12193_v5 }
 0x6ab   : > { %v5950_v17 = vpack.c.bf16 %v12233_v28, %v12231_v38  ;;  %v5155_v24 = vadd.f32 %v9819_v61, %v12193_v5  ;;  %v5146_v42 = vpop.f32.mrb[139].mxu0 }
 0x6ac   : > { %v5949_v1 = vpack.c.bf16 %v12237_v59, %v12235_v3  ;;  %v5147_v34 = vadd.f32 %v5146_v42, %v12193_v5 }
 0x6ad   : > { %v12247_v47 = vpack.c.bf16 %v5155_v24, %v5152_v20 }
 0x6ae   : > { %v12249_v54 = vpack.c.bf16 %v5147_v34, %v5144_v9 }
 0x6af   : > { %v5829_v25 = vunpack.c.l.bf16 %v12247_v47  ;;  %v5830_v52 = vunpack.c.h.bf16 %v12247_v47 }
 0x6b0   : > { %v5827_v29 = vunpack.c.l.bf16 %v12249_v54  ;;  %v5828_v56 = vunpack.c.h.bf16 %v12249_v54  ;;  %v9822_v27 = vpop.f32.mrb[140].mxu0 }
 0x6b1   : > { %v12255_v32 = vsub.f32 %v5152_v20, %v5829_v25  ;;  %v12257_v36 = vsub.f32 %v5155_v24, %v5830_v52  ;;  %v5159_v55 = vpop.f32.mrb[141].mxu0  ;;  %v5168_v12 = vadd.f32 %v9822_v27, %v12193_v5 }
 0x6b2   : > { %v12259_v62 = vsub.f32 %v5144_v9, %v5827_v29  ;;  %v12261_v48 = vsub.f32 %v5147_v34, %v5828_v56  ;;  %v9823_v11 = vpop.f32.mrb[142].mxu0  ;;  %v5160_v43 = vadd.f32 %v5159_v55, %v12193_v5 }
 0x6b3   : > { %v5952_v46 = vpack.c.bf16 %v12257_v36, %v12255_v32  ;;  %v5171_v6 = vadd.f32 %v9823_v11, %v12193_v5  ;;  %v5162_v23 = vpop.f32.mrb[143].mxu0 }
 0x6b4   : > { %v5951_v31 = vpack.c.bf16 %v12261_v48, %v12259_v62  ;;  %v5163_v7 = vadd.f32 %v5162_v23, %v12193_v5 }
 0x6b5   : > { %v12271_v49 = vpack.c.bf16 %v5171_v6, %v5168_v12 }
 0x6b6   : > { %v12273_v51 = vpack.c.bf16 %v5163_v7, %v5160_v43 }
 0x6b7   : > { %v5833_v53 = vunpack.c.l.bf16 %v12271_v49  ;;  %v5834_v2 = vunpack.c.h.bf16 %v12271_v49 }
 0x6b8   : > { %v5831_v10 = vunpack.c.l.bf16 %v12273_v51  ;;  %v5832_v45 = vunpack.c.h.bf16 %v12273_v51  ;;  %v9826_v58 = vpop.f32.mrb[144].mxu0 }
 0x6b9   : > { %v12279_v0 = vsub.f32 %v5168_v12, %v5833_v53  ;;  %v12281_v44 = vsub.f32 %v5171_v6, %v5834_v2  ;;  %v5175_v40 = vpop.f32.mrb[145].mxu0  ;;  %v5184_v60 = vadd.f32 %v9826_v58, %v12193_v5 }
 0x6ba   : > { %v12283_v33 = vsub.f32 %v5160_v43, %v5831_v10  ;;  %v12285_v50 = vsub.f32 %v5163_v7, %v5832_v45  ;;  %v9827_v13 = vpop.f32.mrb[146].mxu0  ;;  %v5176_v24 = vadd.f32 %v5175_v40, %v12193_v5 }
 0x6bb   : > { %v5954_v30 = vpack.c.bf16 %v12281_v44, %v12279_v0  ;;  %v5187_v26 = vadd.f32 %v9827_v13, %v12193_v5  ;;  %v5178_v61 = vpop.f32.mrb[147].mxu0 }
 0x6bc   : > { %v5953_v20 = vpack.c.bf16 %v12285_v50, %v12283_v33  ;;  %v5179_v42 = vadd.f32 %v5178_v61, %v12193_v5 }
 0x6bd   : > { %v5796_v9 = vpack.c.bf16 %v5187_v26, %v5184_v60 }
 0x6be   : > { %v5795_v34 = vpack.c.bf16 %v5179_v42, %v5176_v24 }
 0x6bf   : > { %v5837_v25 = vunpack.c.l.bf16 %v5796_v9  ;;  %v5838_v52 = vunpack.c.h.bf16 %v5796_v9 }
 0x6c0   : > { %v5835_v29 = vunpack.c.l.bf16 %v5795_v34  ;;  %v5836_v56 = vunpack.c.h.bf16 %v5795_v34  ;;  %v9830_v27 = vpop.f32.mrb[148].mxu0  ;;  %8944 = vmatprep.subr.bf16.mxu0 %v5795_v34 }
 0x6c1   : > { %v5902_v55 = vsub.f32 %v5187_v26, %v5838_v52  ;;  %v5191_v11 = vpop.f32.mrb[149].mxu0  ;;  %8945 = vmatpush3.bf16.msra.mxu0 %v12201_v37  ;;  %v5901_v12 = vsub.f32 %v5184_v60, %v5837_v25  ;;  %v5200_v7 = vadd.f32 %v9830_v27, %v12193_v5 }
 0x6c2   : > { %v5900_v6 = vsub.f32 %v5179_v42, %v5836_v56  ;;  %v9831_v23 = vpop.f32.mrb[150].mxu0  ;;  %8946 = vmatprep.subr.bf16.mxu0 %v5796_v9  ;;  %v5899_v43 = vsub.f32 %v5176_v24, %v5835_v29  ;;  %v5192_v45 = vadd.f32 %v5191_v11, %v12193_v5 }
 0x6c3   : > { %v5203_v53 = vadd.f32 %v9831_v23, %v12193_v5  ;;  %v5194_v2 = vpop.f32.mrb[151].mxu0  ;;  %v5956_v10 = vpack.c.bf16 %v5902_v55, %v5901_v12 }
 0x6c4   : > { %v5195_v58 = vadd.f32 %v5194_v2, %v12193_v5  ;;  %v5955_v40 = vpack.c.bf16 %v5900_v6, %v5899_v43 }
 0x6c5   : > { %v5798_v13 = vpack.c.bf16 %v5203_v53, %v5200_v7  ;;  %8947 = vmatpush3.bf16.msra.mxu0 %v12199_v35 }
 0x6c6   : > { %v5797_v37 = vpack.c.bf16 %v5195_v58, %v5192_v45  ;;  %8816 = vmatprep.subr.bf16.mxu1 %v5955_v40 }
 0x6c7   : > { %v5841_v60 = vunpack.c.l.bf16 %v5798_v13  ;;  %v5842_v26 = vunpack.c.h.bf16 %v5798_v13  ;;  %8817 = vmatpush3.bf16.msra.mxu1 %v5947_v39 }
 0x6c8   : > { %v5839_v61 = vunpack.c.l.bf16 %v5797_v37  ;;  %v5840_v24 = vunpack.c.h.bf16 %v5797_v37  ;;  %v9834_v42 = vpop.f32.mrb[152].mxu0  ;;  %8818 = vmatprep.subr.bf16.mxu1 %v5956_v10  ;;  %8948 = vmatprep.subr.bf16.mxu0 %v5797_v37 }
 0x6c9   : > { %v5906_v9 = vsub.f32 %v5203_v53, %v5842_v26  ;;  %v5207_v34 = vpop.f32.mrb[153].mxu0  ;;  %8949 = vmatpush3.bf16.msra.mxu0 %v12225_v21  ;;  %v5905_v25 = vsub.f32 %v5200_v7, %v5841_v60  ;;  %v5216_v56 = vadd.f32 %v9834_v42, %v12193_v5 }
 0x6ca   : > { %v5904_v52 = vsub.f32 %v5195_v58, %v5840_v24  ;;  %v9835_v35 = vpop.f32.mrb[154].mxu0  ;;  %8950 = vmatprep.subr.bf16.mxu0 %v5798_v13  ;;  %v5903_v29 = vsub.f32 %v5192_v45, %v5839_v61  ;;  %v5208_v39 = vadd.f32 %v5207_v34, %v12193_v5 }
 0x6cb   : > { %v5219_v27 = vadd.f32 %v9835_v35, %v12193_v5  ;;  %v5210_v16 = vpop.f32.mrb[155].mxu0  ;;  %8819 = vmatpush3.bf16.msra.mxu1 %v5948_v41  ;;  %v5958_v19 = vpack.c.bf16 %v5906_v9, %v5905_v25 }
 0x6cc   : > { %v5211_v55 = vadd.f32 %v5210_v16, %v12193_v5  ;;  %v5957_v21 = vpack.c.bf16 %v5904_v52, %v5903_v29  ;;  %v6020_v16 = vpop.trf.xlu0 }
 0x6cd   : > { %v5800_v11 = vpack.c.bf16 %v5219_v27, %v5216_v56  ;;  %8951 = vmatpush3.bf16.msra.mxu0 %v12223_v4 }
 0x6ce   : > { %v5799_v12 = vpack.c.bf16 %v5211_v55, %v5208_v39  ;;  %8820 = vmatprep.subr.bf16.mxu1 %v5957_v21 }
 0x6cf   : > { %v5845_v6 = vunpack.c.l.bf16 %v5800_v11  ;;  %v5846_v23 = vunpack.c.h.bf16 %v5800_v11  ;;  %8821 = vmatpush3.bf16.msra.mxu1 %v5949_v1 }
 0x6d0   : > { %v5843_v43 = vunpack.c.l.bf16 %v5799_v12  ;;  %v5844_v63 = vunpack.c.h.bf16 %v5799_v12  ;;  %v9838_v8 = vpop.f32.mrb[156].mxu0  ;;  %8822 = vmatprep.subr.bf16.mxu1 %v5958_v19  ;;  %8952 = vmatprep.subr.bf16.mxu0 %v5799_v12 }
 0x6d1   : > { %v5910_v41 = vsub.f32 %v5219_v27, %v5846_v23  ;;  %v5223_v7 = vpop.f32.mrb[157].mxu0  ;;  %8953 = vmatpush3.bf16.msra.mxu0 %v12249_v54  ;;  %v5909_v53 = vsub.f32 %v5216_v56, %v5845_v6  ;;  %v5232_v45 = vadd.f32 %v9838_v8, %v12193_v5  ;;  %v6003_v56 = vpop.trf.xlu1 }
 0x6d2   : > { %v5908_v2 = vsub.f32 %v5211_v55, %v5844_v63  ;;  %v9839_v4 = vpop.f32.mrb[158].mxu0  ;;  %8954 = vmatprep.subr.bf16.mxu0 %v5800_v11  ;;  %v5907_v10 = vsub.f32 %v5208_v39, %v5843_v43  ;;  %v5224_v1 = vadd.f32 %v5223_v7, %v12193_v5 }
 0x6d3   : > { %v5235_v58 = vadd.f32 %v9839_v4, %v12193_v5  ;;  %v5226_v3 = vpop.f32.mrb[159].mxu0  ;;  %8823 = vmatpush3.bf16.msra.mxu1 %v5950_v17  ;;  %v5960_v59 = vpack.c.bf16 %v5910_v41, %v5909_v53 }
 0x6d4   : > { %v5227_v40 = vadd.f32 %v5226_v3, %v12193_v5  ;;  %v5959_v54 = vpack.c.bf16 %v5908_v2, %v5907_v10  ;;  %v6021_v2 = vpop.trf.xlu0 }
 0x6d5   : > { %v5802_v13 = vpack.c.bf16 %v5235_v58, %v5232_v45  ;;  %8955 = vmatpush3.bf16.msra.mxu0 %v12247_v47  ;;  %v6004_v7 = vpop.trf.xlu1 }
 0x6d6   : > { %v5801_v37 = vpack.c.bf16 %v5227_v40, %v5224_v1  ;;  %8824 = vmatprep.subr.bf16.mxu1 %v5959_v54 }
 0x6d7   : > { %v5849_v60 = vunpack.c.l.bf16 %v5802_v13  ;;  %v5850_v26 = vunpack.c.h.bf16 %v5802_v13  ;;  %8825 = vmatpush3.bf16.msra.mxu1 %v5951_v31 }
 0x6d8   : > { %v5847_v61 = vunpack.c.l.bf16 %v5801_v37  ;;  %v5848_v38 = vunpack.c.h.bf16 %v5801_v37  ;;  %v9842_v28 = vpop.f32.mrb[160].mxu0  ;;  %8826 = vmatprep.subr.bf16.mxu1 %v5960_v59  ;;  %8956 = vmatprep.subr.bf16.mxu0 %v5801_v37 }
 0x6d9   : > { %v5914_v17 = vsub.f32 %v5235_v58, %v5850_v26  ;;  %v5239_v24 = vpop.f32.mrb[161].mxu0  ;;  %8957 = vmatpush3.bf16.msra.mxu0 %v12273_v51  ;;  %v5913_v42 = vsub.f32 %v5232_v45, %v5849_v60  ;;  %v5248_v25 = vadd.f32 %v9842_v28, %v12193_v5 }
 0x6da   : > { %v5912_v9 = vsub.f32 %v5227_v40, %v5848_v38  ;;  %v9843_v47 = vpop.f32.mrb[162].mxu0  ;;  %8958 = vmatprep.subr.bf16.mxu0 %v5802_v13  ;;  %v5911_v34 = vsub.f32 %v5224_v1, %v5847_v61  ;;  %v5240_v31 = vadd.f32 %v5239_v24, %v12193_v5 }
 0x6db   : > { %v5251_v52 = vadd.f32 %v9843_v47, %v12193_v5  ;;  %v5242_v62 = vpop.f32.mrb[163].mxu0  ;;  %8827 = vmatpush3.bf16.msra.mxu1 %v5952_v46  ;;  %v5962_v48 = vpack.c.bf16 %v5914_v17, %v5913_v42  ;;  %v6005_v17 = vpop.trf.xlu1 }
 0x6dc   : > { %v5243_v35 = vadd.f32 %v5242_v62, %v12193_v5  ;;  %v5961_v51 = vpack.c.bf16 %v5912_v9, %v5911_v34  ;;  %v6022_v42 = vpop.trf.xlu0 }
 0x6dd   : > { %v12336_v29 = vpack.c.bf16 %v5251_v52, %v5248_v25  ;;  %8959 = vmatpush3.bf16.msra.mxu0 %v12271_v49 }
 0x6de   : > { %v12339_v27 = vpack.c.bf16 %v5243_v35, %v5240_v31  ;;  %8828 = vmatprep.subr.bf16.mxu1 %v5961_v51 }
 0x6df   : > { %v5853_v19 = vunpack.c.l.bf16 %v12336_v29  ;;  %v5854_v32 = vunpack.c.h.bf16 %v12336_v29  ;;  %8829 = vmatpush3.bf16.msra.mxu1 %v5953_v20 }
 0x6e0   : > { %v5851_v36 = vunpack.c.l.bf16 %v12339_v27  ;;  %v5852_v46 = vunpack.c.h.bf16 %v12339_v27  ;;  %v9846_v39 = vpop.f32.mrb[164].mxu0  ;;  %8830 = vmatprep.subr.bf16.mxu1 %v5962_v48  ;;  %6286 = vmatmul.mubr.bf16.vlgmr.msra.gmra.mrb[192].mxu0 %v6003_v56 }
 0x6e1   : > { %v12348_v49 = vsub.f32 %v5248_v25, %v5853_v19  ;;  %v12350_v55 = vsub.f32 %v5251_v52, %v5854_v32  ;;  %v5255_v21 = vpop.f32.mrb[165].mxu0  ;;  %6293 = vmatprep.mubr.bf16.mxu0 %v6020_v16  ;;  %v5264_v50 = vadd.f32 %v9846_v39, %v12193_v5 }
 0x6e2   : > { %v12352_v11 = vsub.f32 %v5240_v31, %v5851_v36  ;;  %v12354_v12 = vsub.f32 %v5243_v35, %v5852_v46  ;;  %v9847_v6 = vpop.f32.mrb[166].mxu0  ;;  %v5256_v63 = vadd.f32 %v5255_v21, %v12193_v5 }
 0x6e3   : > { %v5964_v33 = vpack.c.bf16 %v12350_v55, %v12348_v49  ;;  %v5267_v20 = vadd.f32 %v9847_v6, %v12193_v5  ;;  %v5258_v23 = vpop.f32.mrb[167].mxu0  ;;  %8831 = vmatpush3.bf16.msra.mxu1 %v5954_v30 }
 0x6e4   : > { %v5963_v43 = vpack.c.bf16 %v12354_v12, %v12352_v11  ;;  %v5259_v8 = vadd.f32 %v5258_v23, %v12193_v5  ;;  %v6023_v23 = vpop.trf.xlu0 }
 0x6e5   : > { %v12367_v41 = vpack.c.bf16 %v5267_v20, %v5264_v50 }
 0x6e6   : > { %v12369_v53 = vpack.c.bf16 %v5259_v8, %v5256_v63  ;;  %6092 = vmatmul.mubr.bf16.vlgmr.msra.gmra.mrb[192].mxu1 %v6003_v56 }
 0x6e7   : > { %v5857_v4 = vunpack.c.l.bf16 %v12367_v41  ;;  %v5858_v10 = vunpack.c.h.bf16 %v12367_v41  ;;  %6099 = vmatprep.mubr.bf16.mxu1 %v6020_v16 }
 0x6e8   : > { %v5855_v0 = vunpack.c.l.bf16 %v12369_v53  ;;  %v5856_v44 = vunpack.c.h.bf16 %v12369_v53  ;;  %v9850_v30 = vpop.f32.mrb[168].mxu0  ;;  %6294 = vmatmul.mubr.bf16.gmra.mrb[196].mxu0 %v6004_v7 }
 0x6e9   : > { %v12375_v45 = vsub.f32 %v5264_v50, %v5857_v4  ;;  %v12377_v58 = vsub.f32 %v5267_v20, %v5858_v10  ;;  %v5271_v3 = vpop.f32.mrb[169].mxu0  ;;  %6301 = vmatprep.mubr.bf16.mxu0 %v6021_v2  ;;  %v5280_v13 = vadd.f32 %v9850_v30, %v12193_v5  ;;  %v6006_v50 = vpop.trf.xlu1 }
 0x6ea   : > { %v12379_v59 = vsub.f32 %v5256_v63, %v5855_v0  ;;  %v12381_v1 = vsub.f32 %v5259_v8, %v5856_v44  ;;  %v9851_v40 = vpop.f32.mrb[170].mxu0  ;;  %v5272_v61 = vadd.f32 %v5271_v3, %v12193_v5 }
 0x6eb   : > { %v5966_v54 = vpack.c.bf16 %v12377_v58, %v12375_v45  ;;  %v5283_v37 = vadd.f32 %v9851_v40, %v12193_v5  ;;  %v5274_v60 = vpop.f32.mrb[171].mxu0 }
 0x6ec   : > { %v5965_v26 = vpack.c.bf16 %v12381_v1, %v12379_v59  ;;  %v5275_v38 = vadd.f32 %v5274_v60, %v12193_v5 }
 0x6ed   : > { %v12391_v28 = vpack.c.bf16 %v5283_v37, %v5280_v13 }
 0x6ee   : > { %v12393_v24 = vpack.c.bf16 %v5275_v38, %v5272_v61  ;;  %6100 = vmatmul.mubr.bf16.gmra.mrb[196].mxu1 %v6004_v7 }
 0x6ef   : > { %v5861_v9 = vunpack.c.l.bf16 %v12391_v28  ;;  %v5862_v47 = vunpack.c.h.bf16 %v12391_v28  ;;  %6107 = vmatprep.mubr.bf16.mxu1 %v6021_v2 }
 0x6f0   : > { %v5859_v34 = vunpack.c.l.bf16 %v12393_v24  ;;  %v5860_v25 = vunpack.c.h.bf16 %v12393_v24  ;;  %v9854_v52 = vpop.f32.mrb[172].mxu0  ;;  %6302 = vmatmul.mubr.bf16.gmra.mrb[200].mxu0 %v6005_v17 }
 0x6f1   : > { %v12399_v62 = vsub.f32 %v5280_v13, %v5861_v9  ;;  %v12401_v48 = vsub.f32 %v5283_v37, %v5862_v47  ;;  %v5287_v31 = vpop.f32.mrb[173].mxu0  ;;  %6309 = vmatprep.mubr.bf16.mxu0 %v6022_v42  ;;  %v5296_v19 = vadd.f32 %v9854_v52, %v12193_v5  ;;  %v6007_v47 = vpop.trf.xlu1 }
 0x6f2   : > { %v12403_v35 = vsub.f32 %v5272_v61, %v5859_v34  ;;  %v12405_v51 = vsub.f32 %v5275_v38, %v5860_v25  ;;  %v9855_v56 = vpop.f32.mrb[174].mxu0  ;;  %v5288_v39 = vadd.f32 %v5287_v31, %v12193_v5  ;;  %v6024_v25 = vpop.trf.xlu0 }
 0x6f3   : > { %v5968_v16 = vpack.c.bf16 %v12401_v48, %v12399_v62  ;;  %v5299_v32 = vadd.f32 %v9855_v56, %v12193_v5  ;;  %v5290_v36 = vpop.f32.mrb[175].mxu0 }
 0x6f4   : > { %v5967_v46 = vpack.c.bf16 %v12405_v51, %v12403_v35  ;;  %v5291_v21 = vadd.f32 %v5290_v36, %v12193_v5 }
 0x6f5   : > { %v12415_v6 = vpack.c.bf16 %v5299_v32, %v5296_v19 }
 0x6f6   : > { %v12417_v20 = vpack.c.bf16 %v5291_v21, %v5288_v39  ;;  %6108 = vmatmul.mubr.bf16.gmra.mrb[200].mxu1 %v6005_v17 }
 0x6f7   : > { %v5865_v63 = vunpack.c.l.bf16 %v12415_v6  ;;  %v5866_v8 = vunpack.c.h.bf16 %v12415_v6  ;;  %6115 = vmatprep.mubr.bf16.mxu1 %v6022_v42 }
 0x6f8   : > { %v5863_v7 = vunpack.c.l.bf16 %v12417_v20  ;;  %v5864_v2 = vunpack.c.h.bf16 %v12417_v20  ;;  %v9858_v4 = vpop.f32.mrb[176].mxu0  ;;  %6310 = vmatmul.mubr.bf16.gmra.mrb[204].mxu0 %v6006_v50 }
 0x6f9   : > { %v12423_v10 = vsub.f32 %v5296_v19, %v5865_v63  ;;  %v12425_v0 = vsub.f32 %v5299_v32, %v5866_v8  ;;  %v5303_v44 = vpop.f32.mrb[177].mxu0  ;;  %6317 = vmatprep.mubr.bf16.mxu0 %v6023_v23  ;;  %v5312_v37 = vadd.f32 %v9858_v4, %v12193_v5 }
 0x6fa   : > { %v12427_v30 = vsub.f32 %v5288_v39, %v5863_v7  ;;  %v12429_v3 = vsub.f32 %v5291_v21, %v5864_v2  ;;  %v9859_v40 = vpop.f32.mrb[178].mxu0  ;;  %v5304_v17 = vadd.f32 %v5303_v44, %v12193_v5 }
 0x6fb   : > { %v5315_v60 = vadd.f32 %v9859_v40, %v12193_v5  ;;  %v5306_v61 = vpop.f32.mrb[179].mxu0  ;;  %v13078_v35 = vpack.c.bf16 %v12425_v0, %v12423_v10 }
 0x6fc   : > { %v5969_v38 = vpack.c.bf16 %v12429_v3, %v12427_v30  ;;  %v5307_v42 = vadd.f32 %v5306_v61, %v12193_v5 }
 0x6fd   : > { %v12439_v9 = vpack.c.bf16 %v5315_v60, %v5312_v37 }
 0x6fe   : > { %v12441_v34 = vpack.c.bf16 %v5307_v42, %v5304_v17  ;;  %6116 = vmatmul.mubr.bf16.gmra.mrb[204].mxu1 %v6006_v50 }
 0x6ff   : > { %v5869_v52 = vunpack.c.l.bf16 %v12439_v9  ;;  %v5870_v31 = vunpack.c.h.bf16 %v12439_v9  ;;  %6123 = vmatprep.mubr.bf16.mxu1 %v6023_v23 }
 0x700   : > { %v5867_v56 = vunpack.c.l.bf16 %v12441_v34  ;;  %v5868_v19 = vunpack.c.h.bf16 %v12441_v34  ;;  %v9862_v32 = vpop.f32.mrb[180].mxu0  ;;  %6318 = vmatmul.mubr.bf16.gmra.mrb[208].mxu0 %v6007_v47 }
 0x701   : > { %v5934_v36 = vsub.f32 %v5315_v60, %v5870_v31  ;;  %v5319_v39 = vpop.f32.mrb[181].mxu0  ;;  %v5933_v21 = vsub.f32 %v5312_v37, %v5869_v52  ;;  %6325 = vmatprep.mubr.bf16.mxu0 %v6024_v25  ;;  %v5328_v50 = vadd.f32 %v9862_v32, %v12193_v5  ;;  %v6008_v60 = vpop.trf.xlu1 }
 0x702   : > { %v5932_v63 = vsub.f32 %v5307_v42, %v5868_v19  ;;  %v9863_v8 = vpop.f32.mrb[182].mxu0  ;;  %v5931_v7 = vsub.f32 %v5304_v17, %v5867_v56  ;;  %v5320_v23 = vadd.f32 %v5319_v39, %v12193_v5  ;;  %v6025_v37 = vpop.trf.xlu0 }
 0x703   : > { %v5331_v2 = vadd.f32 %v9863_v8, %v12193_v5  ;;  %v5322_v4 = vpop.f32.mrb[183].mxu0  ;;  %v5972_v44 = vpack.c.bf16 %v5934_v36, %v5933_v21 }
 0x704   : > { %v5323_v40 = vadd.f32 %v5322_v4, %v12193_v5  ;;  %v5971_v61 = vpack.c.bf16 %v5932_v63, %v5931_v7 }
 0x705   : > { %v12451_v13 = vpack.c.bf16 %v5331_v2, %v5328_v50  ;;  %v6009_v4 = vpop.trf.xlu1 }
 0x706   : > { %v12453_v31 = vpack.c.bf16 %v5323_v40, %v5320_v23  ;;  %6124 = vmatmul.mubr.bf16.gmra.mrb[208].mxu1 %v6007_v47  ;;  %8880 = vmatprep.subr.bf16.mxu1 %v5971_v61 }
 0x707   : > { %v5873_v17 = vunpack.c.l.bf16 %v12451_v13  ;;  %v5874_v42 = vunpack.c.h.bf16 %v12451_v13  ;;  %8881 = vmatpush3.bf16.msra.mxu1 %v5963_v43  ;;  %6131 = vmatprep.mubr.bf16.mxu1 %v6024_v25 }
 0x708   : > { %v5871_v52 = vunpack.c.l.bf16 %v12453_v31  ;;  %v5872_v56 = vunpack.c.h.bf16 %v12453_v31  ;;  %v9866_v19 = vpop.f32.mrb[184].mxu0  ;;  %8882 = vmatprep.subr.bf16.mxu1 %v5972_v44  ;;  %6326 = vmatmul.mubr.bf16.gmra.mrb[212].mxu0 %v6008_v60 }
 0x709   : > { %v5938_v32 = vsub.f32 %v5331_v2, %v5874_v42  ;;  %v5335_v47 = vpop.f32.mrb[185].mxu0  ;;  %v5937_v36 = vsub.f32 %v5328_v50, %v5873_v17  ;;  %6333 = vmatprep.mubr.bf16.mxu0 %v6025_v37  ;;  %v5344_v8 = vadd.f32 %v9866_v19, %v12193_v5 }
 0x70a   : > { %v5936_v39 = vsub.f32 %v5323_v40, %v5872_v56  ;;  %v9867_v21 = vpop.f32.mrb[186].mxu0  ;;  %v5935_v63 = vsub.f32 %v5320_v23, %v5871_v52  ;;  %v5336_v25 = vadd.f32 %v5335_v47, %v12193_v5  ;;  %v6026_v23 = vpop.trf.xlu0 }
 0x70b   : > { %v5347_v11 = vadd.f32 %v9867_v21, %v12193_v5  ;;  %v5338_v12 = vpop.f32.mrb[187].mxu0  ;;  %8883 = vmatpush3.bf16.msra.mxu1 %v5964_v33  ;;  %v5974_v43 = vpack.c.bf16 %v5938_v32, %v5937_v36  ;;  %v6010_v21 = vpop.trf.xlu1 }
 0x70c   : > { %v5339_v7 = vadd.f32 %v5338_v12, %v12193_v5  ;;  %v5973_v2 = vpack.c.bf16 %v5936_v39, %v5935_v63 }
 0x70d   : > { %v12469_v50 = vpack.c.bf16 %v5347_v11, %v5344_v8 }
 0x70e   : > { %v12471_v44 = vpack.c.bf16 %v5339_v7, %v5336_v25  ;;  %6132 = vmatmul.mubr.bf16.gmra.mrb[212].mxu1 %v6008_v60  ;;  %8884 = vmatprep.subr.bf16.mxu1 %v5973_v2  ;;  %v6051_v2 = vpop.trf.xlu0 }
 0x70f   : > { %v5877_v40 = vunpack.c.l.bf16 %v12469_v50  ;;  %v5878_v61 = vunpack.c.h.bf16 %v12469_v50  ;;  %8885 = vmatpush3.bf16.msra.mxu1 %v5965_v26  ;;  %6139 = vmatprep.mubr.bf16.mxu1 %v6025_v37  ;;  %v6035_v51 = vpop.trf.xlu1 }
 0x710   : > { %v5875_v49 = vunpack.c.l.bf16 %v12471_v44  ;;  %v5876_v55 = vunpack.c.h.bf16 %v12471_v44  ;;  %v9870_v33 = vpop.f32.mrb[188].mxu0  ;;  %8886 = vmatprep.subr.bf16.mxu1 %v5974_v43  ;;  %6334 = vmatmul.mubr.bf16.gmra.mrb[216].mxu0 %v6009_v4 }
 0x711   : > { %v5942_v17 = vsub.f32 %v5347_v11, %v5878_v61  ;;  %v5351_v60 = vpop.f32.mrb[189].mxu0  ;;  %v5941_v42 = vsub.f32 %v5344_v8, %v5877_v40  ;;  %6341 = vmatprep.mubr.bf16.mxu0 %v6026_v23  ;;  %v5360_v32 = vadd.f32 %v9870_v33, %v12193_v5 }
 0x712   : > { %v5940_v52 = vsub.f32 %v5339_v7, %v5876_v55  ;;  %v9871_v56 = vpop.f32.mrb[190].mxu0  ;;  %v5939_v19 = vsub.f32 %v5336_v25, %v5875_v49  ;;  %v5352_v37 = vadd.f32 %v5351_v60, %v12193_v5  ;;  %v6052_v62 = vpop.trf.xlu0 }
 0x713   : > { %v5363_v59 = vadd.f32 %v9871_v56, %v12193_v5  ;;  %v5354_v1 = vpop.f32.mrb[191].mxu0  ;;  %8887 = vmatpush3.bf16.msra.mxu1 %v5966_v54  ;;  %v5976_v26 = vpack.c.bf16 %v5942_v17, %v5941_v42  ;;  %v6036_v48 = vpop.trf.xlu1 }
 0x714   : > { %v5355_v47 = vadd.f32 %v5354_v1, %v12193_v5  ;;  %v5975_v36 = vpack.c.bf16 %v5940_v52, %v5939_v19 }
 0x715   : > { %v5818_v39 = vpack.c.bf16 %v5363_v59, %v5360_v32 }
 0x716   : > { %v5817_v63 = vpack.c.bf16 %v5355_v47, %v5352_v37  ;;  %6140 = vmatmul.mubr.bf16.gmra.mrb[216].mxu1 %v6009_v4  ;;  %8888 = vmatprep.subr.bf16.mxu1 %v5975_v36 }
 0x717   : > { %v5881_v8 = vunpack.c.l.bf16 %v5818_v39  ;;  %v5882_v11 = vunpack.c.h.bf16 %v5818_v39  ;;  %8889 = vmatpush3.bf16.msra.mxu1 %v5967_v46  ;;  %6147 = vmatprep.mubr.bf16.mxu1 %v6026_v23  ;;  %v6037_v46 = vpop.trf.xlu1 }
 0x718   : > { %v5879_v45 = vunpack.c.l.bf16 %v5817_v63  ;;  %v5880_v58 = vunpack.c.h.bf16 %v5817_v63  ;;  %8890 = vmatprep.subr.bf16.mxu1 %v5976_v26  ;;  %6342 = vmatmul.mubr.bf16.gmra.mrb[220].mxu0 %v6010_v21 }
 0x719   : > { %v5946_v54 = vsub.f32 %v5363_v59, %v5882_v11  ;;  %v5945_v12 = vsub.f32 %v5360_v32, %v5881_v8 }
 0x71a   : > { %v5944_v5 = vsub.f32 %v5355_v47, %v5880_v58  ;;  %v5943_v43 = vsub.f32 %v5352_v37, %v5879_v45 }
 0x71b   : > { %8891 = vmatpush3.bf16.msra.mxu1 %v5968_v16  ;;  %v5978_v25 = vpack.c.bf16 %v5946_v54, %v5945_v12  ;;  %v6053_v16 = vpop.trf.xlu0 }
 0x71c   : > { %v5977_v7 = vpack.c.bf16 %v5944_v5, %v5943_v43 }
 0x71e   : > { %6148 = vmatmul.mubr.bf16.gmra.mrb[220].mxu1 %v6010_v21  ;;  %8892 = vmatprep.subr.bf16.mxu1 %v5977_v7 }
 0x71f   : > { %8893 = vmatpush3.bf16.msra.mxu1 %v5969_v38  ;;  %6188 = vmatprep.mubr.bf16.mxu1 %v6051_v2 }
 0x720   : > { %8894 = vmatprep.subr.bf16.mxu1 %v5978_v25 }
 0x723   : > { %8895 = vmatpush3.bf16.msra.mxu1 %v13078_v35 }
 0x724   : > { %9008 = vmatprep.subr.bf16.mxu1 %v12441_v34 }
 0x726   : > { %6189 = vmatmul.mubr.bf16.vlgmr.msra.gmra.mrb[224].mxu1 %v6035_v51 }
 0x727   : > { %9009 = vmatpush3.bf16.msra.mxu1 %v12339_v27  ;;  %6196 = vmatprep.mubr.bf16.mxu1 %v6052_v62  ;;  %v6054_v27 = vpop.trf.xlu0 }
 0x728   : > { %9010 = vmatprep.subr.bf16.mxu1 %v12439_v9 }
 0x72b   : > { %9011 = vmatpush3.bf16.msra.mxu1 %v12336_v29  ;;  %v6038_v29 = vpop.trf.xlu1 }
 0x72c   : > { %9012 = vmatprep.subr.bf16.mxu1 %v12453_v31 }
 0x72e   : > { %6197 = vmatmul.mubr.bf16.gmra.mrb[228].mxu1 %v6036_v48 }
 0x72f   : > { %9013 = vmatpush3.bf16.msra.mxu1 %v12369_v53  ;;  %6204 = vmatprep.mubr.bf16.mxu1 %v6053_v16  ;;  %v6055_v53 = vpop.trf.xlu0 }
 0x730   : > { %9014 = vmatprep.subr.bf16.mxu1 %v12451_v13 }
 0x733   : > { %9015 = vmatpush3.bf16.msra.mxu1 %v12367_v41  ;;  %v6039_v41 = vpop.trf.xlu1  ;;  %v6056_v10 = vpop.trf.xlu0 }
 0x734   : > { %9016 = vmatprep.subr.bf16.mxu1 %v12471_v44 }
 0x736   : > { %6205 = vmatmul.mubr.bf16.gmra.mrb[232].mxu1 %v6037_v46 }
 0x737   : > { %9017 = vmatpush3.bf16.msra.mxu1 %v12393_v24  ;;  %6212 = vmatprep.mubr.bf16.mxu1 %v6054_v27  ;;  %v6040_v24 = vpop.trf.xlu1  ;;  %v6057_v0 = vpop.trf.xlu0 }
 0x738   : > { %9018 = vmatprep.subr.bf16.mxu1 %v12469_v50 }
 0x73b   : > { %9019 = vmatpush3.bf16.msra.mxu1 %v12391_v28  ;;  %v6041_v30 = vpop.trf.xlu1  ;;  %v6058_v28 = vpop.trf.xlu0 }
 0x73c   : > { %9020 = vmatprep.subr.bf16.mxu1 %v5817_v63 }
 0x73e   : > { %6213 = vmatmul.mubr.bf16.gmra.mrb[236].mxu1 %v6038_v29 }
 0x73f   : > { %9021 = vmatpush3.bf16.msra.mxu1 %v12417_v20  ;;  %6220 = vmatprep.mubr.bf16.mxu1 %v6055_v53  ;;  %v6042_v3 = vpop.trf.xlu1 }
 0x740   : > { %9022 = vmatprep.subr.bf16.mxu1 %v5818_v39 }
 0x743   : > { %9023 = vmatpush3.bf16.msra.mxu1 %v12415_v6 }
 0x746   : > { %6221 = vmatmul.mubr.bf16.gmra.mrb[240].mxu1 %v6039_v41 }
 0x747   : > { %6228 = vmatprep.mubr.bf16.mxu1 %v6056_v10 }
 0x74e   : > { %6229 = vmatmul.mubr.bf16.gmra.mrb[244].mxu1 %v6040_v24 }
 0x74f   : > { %6236 = vmatprep.mubr.bf16.mxu1 %v6057_v0 }
 0x756   : > { %6237 = vmatmul.mubr.bf16.gmra.mrb[248].mxu1 %v6041_v30 }
 0x757   : > { %6244 = vmatprep.mubr.bf16.mxu1 %v6058_v28 }
 0x75e   : > { %6245 = vmatmul.mubr.bf16.gmra.mrb[252].mxu1 %v6042_v3 }
 0x75f   : > { %6382 = vmatprep.mubr.bf16.mxu1 %v6051_v2 }
 0x766   : > { %6383 = vmatmul.mubr.bf16.vlgmr.msra.gmra.mrb[0].mxu1 %v6035_v51 }
 0x767   : > { %6390 = vmatprep.mubr.bf16.mxu1 %v6052_v62 }
 0x76e   : > { %6391 = vmatmul.mubr.bf16.gmra.mrb[4].mxu1 %v6036_v48 }
 0x76f   : > { %6398 = vmatprep.mubr.bf16.mxu1 %v6053_v16 }
 0x776   : > { %6399 = vmatmul.mubr.bf16.gmra.mrb[8].mxu1 %v6037_v46 }
 0x777   : > { %6406 = vmatprep.mubr.bf16.mxu1 %v6054_v27 }
 0x77e   : > { %6407 = vmatmul.mubr.bf16.gmra.mrb[12].mxu1 %v6038_v29 }
 0x77f   : > { %6414 = vmatprep.mubr.bf16.mxu1 %v6055_v53 }
 0x786   : > { %6415 = vmatmul.mubr.bf16.gmra.mrb[16].mxu1 %v6039_v41 }
 0x787   : > { %6422 = vmatprep.mubr.bf16.mxu1 %v6056_v10 }
 0x78e   : > { %6423 = vmatmul.mubr.bf16.gmra.mrb[20].mxu1 %v6040_v24 }
 0x78f   : > { %6430 = vmatprep.mubr.bf16.mxu1 %v6057_v0 }
 0x796   : > { %6431 = vmatmul.mubr.bf16.gmra.mrb[24].mxu1 %v6041_v30 }
 0x797   : > { %6438 = vmatprep.mubr.bf16.mxu1 %v6058_v28 }
 0x79e   : > { %6439 = vmatmul.mubr.bf16.gmra.mrb[28].mxu1 %v6042_v3 }
 0x7b3   : > { %v8960_v6 = vpop.f32.mrb[192].mxu0 }
 0x7b4   : > { %v8961_v20 = vpop.f32.mrb[193].mxu0 }
 0x7b5   : > { %v12513_v13 = vadd.f32 %v8961_v20, %v8960_v6  ;;  %v8963_v38 = vpop.f32.mrb[194].mxu0 }
 0x7b6   : > { %v8964_v9 = vpop.f32.mrb[195].mxu0 }
 0x7b7   : > { %v12515_v34 = vadd.f32 %v8964_v9, %v8963_v38 }
 0x7b9   : > { %v8832_v31 = vpop.f32.mrb[192].mxu1 }
 0x7ba   : > { %v8833_v50 = vpop.f32.mrb[193].mxu1 }
 0x7bb   : > { %v12517_v4 = vadd.f32 %v8833_v50, %v8832_v31  ;;  %v8835_v44 = vpop.f32.mrb[194].mxu1  ;;  %v8966_v23 = vpop.f32.mrb[196].mxu0 }
 0x7bc   : > { %v8836_v40 = vpop.f32.mrb[195].mxu1  ;;  %v8967_v61 = vpop.f32.mrb[197].mxu0 }
 0x7bd   : > { %v12519_v49 = vadd.f32 %v8836_v40, %v8835_v44  ;;  %v12521_v55 = vadd.f32 %v8967_v61, %v8966_v23  ;;  %v8969_v33 = vpop.f32.mrb[198].mxu0 }
 0x7be   : > { %v8970_v17 = vpop.f32.mrb[199].mxu0 }
 0x7bf   : > { %v12523_v60 = vadd.f32 %v8970_v17, %v8969_v33 }
 0x7c1   : > { %v8838_v42 = vpop.f32.mrb[196].mxu1 }
 0x7c2   : > { %v8839_v52 = vpop.f32.mrb[197].mxu1 }
 0x7c3   : > { %v12525_v56 = vadd.f32 %v8839_v52, %v8838_v42  ;;  %v8841_v19 = vpop.f32.mrb[198].mxu1  ;;  %v8972_v32 = vpop.f32.mrb[200].mxu0 }
 0x7c4   : > { %v8842_v59 = vpop.f32.mrb[199].mxu1  ;;  %v8973_v1 = vpop.f32.mrb[201].mxu0 }
 0x7c5   : > { %v12527_v26 = vadd.f32 %v8842_v59, %v8841_v19  ;;  %v12529_v37 = vadd.f32 %v8973_v1, %v8972_v32  ;;  %v8975_v47 = vpop.f32.mrb[202].mxu0 }
 0x7c6   : > { %v8976_v36 = vpop.f32.mrb[203].mxu0 }
 0x7c7   : > { %v12531_v39 = vadd.f32 %v8976_v36, %v8975_v47 }
 0x7c9   : > { %v8844_v21 = vpop.f32.mrb[200].mxu1 }
 0x7ca   : > { %v8845_v63 = vpop.f32.mrb[201].mxu1 }
 0x7cb   : > { %v12533_v8 = vadd.f32 %v8845_v63, %v8844_v21  ;;  %v8847_v11 = vpop.f32.mrb[202].mxu1  ;;  %v8978_v45 = vpop.f32.mrb[204].mxu0 }
 0x7cc   : > { %v8848_v58 = vpop.f32.mrb[203].mxu1  ;;  %v8979_v54 = vpop.f32.mrb[205].mxu0 }
 0x7cd   : > { %v12535_v12 = vadd.f32 %v8848_v58, %v8847_v11  ;;  %v12537_v5 = vadd.f32 %v8979_v54, %v8978_v45  ;;  %v8981_v43 = vpop.f32.mrb[206].mxu0 }
 0x7ce   : > { %v8982_v25 = vpop.f32.mrb[207].mxu0 }
 0x7cf   : > { %v12539_v7 = vadd.f32 %v8982_v25, %v8981_v43 }
 0x7d1   : > { %v8850_v2 = vpop.f32.mrb[204].mxu1 }
 0x7d2   : > { %v8851_v35 = vpop.f32.mrb[205].mxu1 }
 0x7d3   : > { %v12541_v51 = vadd.f32 %v8851_v35, %v8850_v2  ;;  %v8853_v62 = vpop.f32.mrb[206].mxu1  ;;  %v8984_v48 = vpop.f32.mrb[208].mxu0 }
 0x7d4   : > { %v8854_v16 = vpop.f32.mrb[207].mxu1  ;;  %v8985_v46 = vpop.f32.mrb[209].mxu0 }
 0x7d5   : > { %v12543_v27 = vadd.f32 %v8854_v16, %v8853_v62  ;;  %v12545_v29 = vadd.f32 %v8985_v46, %v8984_v48  ;;  %v8987_v53 = vpop.f32.mrb[210].mxu0 }
 0x7d6   : > { %v8988_v41 = vpop.f32.mrb[211].mxu0 }
 0x7d7   : > { %v12547_v10 = vadd.f32 %v8988_v41, %v8987_v53 }
 0x7d9   : > { %v8856_v24 = vpop.f32.mrb[208].mxu1 }
 0x7da   : > { %v8857_v0 = vpop.f32.mrb[209].mxu1 }
 0x7db   : > { %v12549_v30 = vadd.f32 %v8857_v0, %v8856_v24  ;;  %v8859_v28 = vpop.f32.mrb[210].mxu1  ;;  %v8990_v3 = vpop.f32.mrb[212].mxu0 }
 0x7dc   : > { %v8860_v6 = vpop.f32.mrb[211].mxu1  ;;  %v8991_v20 = vpop.f32.mrb[213].mxu0 }
 0x7dd   : > { %v12551_v38 = vadd.f32 %v8860_v6, %v8859_v28  ;;  %v12553_v9 = vadd.f32 %v8991_v20, %v8990_v3  ;;  %v8993_v31 = vpop.f32.mrb[214].mxu0 }
 0x7de   : > { %v8994_v50 = vpop.f32.mrb[215].mxu0 }
 0x7df   : > { %v12555_v44 = vadd.f32 %v8994_v50, %v8993_v31 }
 0x7e1   : > { %v8862_v23 = vpop.f32.mrb[212].mxu1 }
 0x7e2   : > { %v8863_v40 = vpop.f32.mrb[213].mxu1 }
 0x7e3   : > { %v12557_v61 = vadd.f32 %v8863_v40, %v8862_v23  ;;  %v8865_v33 = vpop.f32.mrb[214].mxu1  ;;  %v8996_v17 = vpop.f32.mrb[216].mxu0 }
 0x7e4   : > { %v8866_v42 = vpop.f32.mrb[215].mxu1  ;;  %v8997_v52 = vpop.f32.mrb[217].mxu0 }
 0x7e5   : > { %v12559_v19 = vadd.f32 %v8866_v42, %v8865_v33  ;;  %v12561_v32 = vadd.f32 %v8997_v52, %v8996_v17  ;;  %v8999_v59 = vpop.f32.mrb[218].mxu0 }
 0x7e6   : > { %v9000_v1 = vpop.f32.mrb[219].mxu0 }
 0x7e7   : > { %v12563_v47 = vadd.f32 %v9000_v1, %v8999_v59 }
 0x7e9   : > { %v8868_v36 = vpop.f32.mrb[216].mxu1 }
 0x7ea   : > { %v8869_v21 = vpop.f32.mrb[217].mxu1 }
 0x7eb   : > { %v12565_v63 = vadd.f32 %v8869_v21, %v8868_v36  ;;  %v8871_v11 = vpop.f32.mrb[218].mxu1  ;;  %v9002_v45 = vpop.f32.mrb[220].mxu0 }
 0x7ec   : > { %v8872_v58 = vpop.f32.mrb[219].mxu1  ;;  %v9003_v54 = vpop.f32.mrb[221].mxu0 }
 0x7ed   : > { %v12567_v43 = vadd.f32 %v8872_v58, %v8871_v11  ;;  %v12569_v25 = vadd.f32 %v9003_v54, %v9002_v45  ;;  %v9005_v2 = vpop.f32.mrb[222].mxu0 }
 0x7ee   : > { %v9006_v35 = vpop.f32.mrb[223].mxu0 }
 0x7ef   : > { %v12571_v62 = vadd.f32 %v9006_v35, %v9005_v2 }
 0x7f1   : > { %v8874_v48 = vpop.f32.mrb[220].mxu1 }
 0x7f2   : > { %v8875_v16 = vpop.f32.mrb[221].mxu1 }
 0x7f3   : > { %v12573_v46 = vadd.f32 %v8875_v16, %v8874_v48  ;;  %v8877_v53 = vpop.f32.mrb[222].mxu1 }
 0x7f4   : > { %v8878_v41 = vpop.f32.mrb[223].mxu1 }
 0x7f5   : > { %v12575_v24 = vadd.f32 %v8878_v41, %v8877_v53 }
 0x7f9   : > { %v8896_v0 = vpop.f32.mrb[224].mxu1 }
 0x7fa   : > { %v8897_v28 = vpop.f32.mrb[225].mxu1 }
 0x7fb   : > { %v8898_v3 = vadd.f32 %v8897_v28, %v8896_v0  ;;  %v8899_v6 = vpop.f32.mrb[226].mxu1 }
 0x7fc   : > { %v8900_v20 = vpop.f32.mrb[227].mxu1 }
 0x7fd   : > { %v6191_v31 = vadd.f32 %v8898_v3, %v12517_v4  ;;  %v8901_v50 = vadd.f32 %v8900_v20, %v8899_v6 }
 0x7ff   : > { %v6194_v23 = vadd.f32 %v8901_v50, %v12519_v49  ;;  %v12580_v40 = vadd.f32 %v12513_v13, %v6191_v31 }
 0x801   : > { %v12583_v33 = vadd.f32 %v12515_v34, %v6194_v23  ;;  %v8902_v17 = vpop.f32.mrb[228].mxu1 }
 0x802   : > { %v8903_v42 = vpop.f32.mrb[229].mxu1 }
 0x803   : > { %v8904_v52 = vadd.f32 %v8903_v42, %v8902_v17  ;;  %v8905_v59 = vpop.f32.mrb[230].mxu1 }
 0x804   : > { %v8906_v1 = vpop.f32.mrb[231].mxu1 }
 0x805   : > { %v6199_v36 = vadd.f32 %v8904_v52, %v12525_v56  ;;  %v8907_v21 = vadd.f32 %v8906_v1, %v8905_v59 }
 0x807   : > { %v6202_v11 = vadd.f32 %v8907_v21, %v12527_v26  ;;  %v12588_v4 = vadd.f32 %v12521_v55, %v6199_v36 }
 0x809   : > { %v8908_v49 = vpop.f32.mrb[232].mxu1  ;;  %v12591_v13 = vadd.f32 %v12523_v60, %v6202_v11 }
 0x80a   : > { %v8909_v45 = vpop.f32.mrb[233].mxu1 }
 0x80b   : > { %v8910_v34 = vadd.f32 %v8909_v45, %v8908_v49  ;;  %v8911_v58 = vpop.f32.mrb[234].mxu1 }
 0x80c   : > { %v8912_v54 = vpop.f32.mrb[235].mxu1 }
 0x80d   : > { %v6207_v2 = vadd.f32 %v8910_v34, %v12533_v8  ;;  %v8913_v35 = vadd.f32 %v8912_v54, %v8911_v58 }
 0x80f   : > { %v6210_v48 = vadd.f32 %v8913_v35, %v12535_v12  ;;  %v12596_v56 = vadd.f32 %v12529_v37, %v6207_v2 }
 0x811   : > { %v8914_v26 = vpop.f32.mrb[236].mxu1  ;;  %v12599_v55 = vadd.f32 %v12531_v39, %v6210_v48 }
 0x812   : > { %v8915_v16 = vpop.f32.mrb[237].mxu1 }
 0x813   : > { %v8916_v53 = vadd.f32 %v8915_v16, %v8914_v26  ;;  %v8917_v60 = vpop.f32.mrb[238].mxu1 }
 0x814   : > { %v8918_v41 = vpop.f32.mrb[239].mxu1 }
 0x815   : > { %v6215_v0 = vadd.f32 %v8916_v53, %v12541_v51  ;;  %v8919_v28 = vadd.f32 %v8918_v41, %v8917_v60 }
 0x817   : > { %v6218_v3 = vadd.f32 %v8919_v28, %v12543_v27  ;;  %v12604_v8 = vadd.f32 %v12537_v5, %v6215_v0  ;;  %v5979_v0 = vld [vmem:[#allocation2] sm:$0xff] }
 0x819   : > { %v8920_v12 = vpop.f32.mrb[240].mxu1  ;;  %v12607_v37 = vadd.f32 %v12539_v7, %v6218_v3 }
 0x81a   : > { %v8921_v6 = vpop.f32.mrb[241].mxu1 }
 0x81b   : > { %v8922_v20 = vadd.f32 %v8921_v6, %v8920_v12  ;;  %v8923_v39 = vpop.f32.mrb[242].mxu1  ;;  %v5980_v6 = vld [vmem:[#allocation2 + $0x8] sm:$0xff] }
 0x81c   : > { %v8924_v31 = vpop.f32.mrb[243].mxu1 }
 0x81d   : > { %v6223_v50 = vadd.f32 %v8922_v20, %v12549_v30  ;;  %v8925_v23 = vadd.f32 %v8924_v31, %v8923_v39 }
 0x81f   : > { %v6226_v17 = vadd.f32 %v8925_v23, %v12551_v38  ;;  %v12612_v51 = vadd.f32 %v12545_v29, %v6223_v50  ;;  %v5981_v50 = vld [vmem:[#allocation2 + $0x10] sm:$0xff] }
 0x821   : > { %v8926_v27 = vpop.f32.mrb[244].mxu1  ;;  %v12615_v5 = vadd.f32 %v12547_v10, %v6226_v17 }
 0x822   : > { %v8927_v42 = vpop.f32.mrb[245].mxu1 }
 0x823   : > { %v8928_v52 = vadd.f32 %v8927_v42, %v8926_v27  ;;  %v8929_v7 = vpop.f32.mrb[246].mxu1  ;;  %v5982_v42 = vld [vmem:[#allocation2 + $0x18] sm:$0xff] }
 0x824   : > { %v8930_v59 = vpop.f32.mrb[247].mxu1 }
 0x825   : > { %v6231_v1 = vadd.f32 %v8928_v52, %v12557_v61  ;;  %v8931_v36 = vadd.f32 %v8930_v59, %v8929_v7 }
 0x827   : > { %v6234_v21 = vadd.f32 %v8931_v36, %v12559_v19  ;;  %v12620_v30 = vadd.f32 %v12553_v9, %v6231_v1 }
 0x829   : > { %v8932_v38 = vpop.f32.mrb[248].mxu1  ;;  %v12623_v29 = vadd.f32 %v12555_v44, %v6234_v21  ;;  %v5983_v21 = vld [vmem:[#allocation2 + $0x20] sm:$0xff] }
 0x82a   : > { %v8933_v11 = vpop.f32.mrb[249].mxu1 }
 0x82b   : > { %v8934_v49 = vadd.f32 %v8933_v11, %v8932_v38  ;;  %v8935_v10 = vpop.f32.mrb[250].mxu1 }
 0x82c   : > { %v8936_v45 = vpop.f32.mrb[251].mxu1 }
 0x82d   : > { %v6239_v34 = vadd.f32 %v8934_v49, %v12565_v63  ;;  %v8937_v58 = vadd.f32 %v8936_v45, %v8935_v10  ;;  %v5984_v10 = vld [vmem:[#allocation2 + $0x28] sm:$0xff] }
 0x82f   : > { %v6242_v54 = vadd.f32 %v8937_v58, %v12567_v43  ;;  %v12628_v61 = vadd.f32 %v12561_v32, %v6239_v34 }
 0x831   : > { %v8938_v19 = vpop.f32.mrb[252].mxu1  ;;  %v12631_v9 = vadd.f32 %v12563_v47, %v6242_v54 }
 0x832   : > { %v8939_v2 = vpop.f32.mrb[253].mxu1 }
 0x833   : > { %v8940_v35 = vadd.f32 %v8939_v2, %v8938_v19  ;;  %v8941_v44 = vpop.f32.mrb[254].mxu1  ;;  %v5985_v2 = vld [vmem:[#allocation2 + $0x30] sm:$0xff] }
 0x834   : > { %v8942_v48 = vpop.f32.mrb[255].mxu1 }
 0x835   : > { %v6247_v26 = vadd.f32 %v8940_v35, %v12573_v46  ;;  %v8943_v16 = vadd.f32 %v8942_v48, %v8941_v44 }
 0x837   : > { %v6250_v53 = vadd.f32 %v8943_v16, %v12575_v24  ;;  %v12636_v63 = vadd.f32 %v12569_v25, %v6247_v26  ;;  %v5986_v26 = vld [vmem:[#allocation2 + $0x38] sm:$0xff] }
 0x839   : > { %v9024_v43 = vpop.f32.mrb[0].mxu1  ;;  %v12639_v32 = vadd.f32 %v12571_v62, %v6250_v53 }
 0x83a   : > { %v9025_v60 = vpop.f32.mrb[1].mxu1 }
 0x83b   : > { %v9026_v41 = vadd.f32 %v9025_v60, %v9024_v43  ;;  %v9027_v47 = vpop.f32.mrb[2].mxu1 }
 0x83c   : > { %v9028_v28 = vpop.f32.mrb[3].mxu1 }
 0x83d   : > { %v6385_v3 = vadd.f32 %v9026_v41, %v12580_v40  ;;  %v9029_v12 = vadd.f32 %v9028_v28, %v9027_v47  ;;  %v5987_v47 = vld [vmem:[#allocation2 + $0x40] sm:$0xff] }
 0x83f   : > { %v6447_v46 = vadd.f32 %v6385_v3, %v5979_v0  ;;  %v6388_v20 = vadd.f32 %v9029_v12, %v12583_v33  ;;  %v5988_v12 = vld [vmem:[#allocation2 + $0x48] sm:$0xff] }
 0x841   : > { %6463 = vst [vmem:[#allocation2] sm:$0xff] %v6447_v46  ;;  %v6448_v24 = vadd.f32 %v6388_v20, %v5980_v6  ;;  %v9030_v25 = vpop.f32.mrb[4].mxu1 }
 0x842   : > { %v9031_v39 = vpop.f32.mrb[5].mxu1 }
 0x843   : > { %6464 = vst [vmem:[#allocation2 + $0x8] sm:$0xff] %v6448_v24  ;;  %v9032_v31 = vadd.f32 %v9031_v39, %v9030_v25  ;;  %v9033_v62 = vpop.f32.mrb[6].mxu1  ;;  %v5989_v39 = vld [vmem:[#allocation2 + $0x50] sm:$0xff] }
 0x844   : > { %v9034_v23 = vpop.f32.mrb[7].mxu1 }
 0x845   : > { %v6393_v17 = vadd.f32 %v9032_v31, %v12588_v4  ;;  %v9035_v27 = vadd.f32 %v9034_v23, %v9033_v62  ;;  %v5990_v23 = vld [vmem:[#allocation2 + $0x58] sm:$0xff] }
 0x847   : > { %v6449_v52 = vadd.f32 %v6393_v17, %v5981_v50  ;;  %v6396_v40 = vadd.f32 %v9035_v27, %v12591_v13 }
 0x849   : > { %6465 = vst [vmem:[#allocation2 + $0x10] sm:$0xff] %v6449_v52  ;;  %v6450_v7 = vadd.f32 %v6396_v40, %v5982_v42  ;;  %v9036_v59 = vpop.f32.mrb[8].mxu1 }
 0x84a   : > { %v9037_v33 = vpop.f32.mrb[9].mxu1 }
 0x84b   : > { %6466 = vst [vmem:[#allocation2 + $0x18] sm:$0xff] %v6450_v7  ;;  %v9038_v1 = vadd.f32 %v9037_v33, %v9036_v59  ;;  %v9039_v36 = vpop.f32.mrb[10].mxu1  ;;  %v5991_v7 = vld [vmem:[#allocation2 + $0x60] sm:$0xff] }
 0x84c   : > { %v9040_v38 = vpop.f32.mrb[11].mxu1 }
 0x84d   : > { %v6401_v11 = vadd.f32 %v9038_v1, %v12596_v56  ;;  %v9041_v49 = vadd.f32 %v9040_v38, %v9039_v36  ;;  %v5992_v36 = vld [vmem:[#allocation2 + $0x68] sm:$0xff] }
 0x84f   : > { %v6451_v45 = vadd.f32 %v6401_v11, %v5983_v21  ;;  %v6404_v4 = vadd.f32 %v9041_v49, %v12599_v55 }
 0x851   : > { %6467 = vst [vmem:[#allocation2 + $0x20] sm:$0xff] %v6451_v45  ;;  %v6452_v34 = vadd.f32 %v6404_v4, %v5984_v10  ;;  %v9042_v58 = vpop.f32.mrb[12].mxu1  ;;  %v5993_v45 = vld [vmem:[#allocation2 + $0x70] sm:$0xff] }
 0x852   : > { %v9043_v13 = vpop.f32.mrb[13].mxu1 }
 0x853   : > { %6468 = vst [vmem:[#allocation2 + $0x28] sm:$0xff] %v6452_v34  ;;  %v9044_v54 = vadd.f32 %v9043_v13, %v9042_v58  ;;  %v9045_v19 = vpop.f32.mrb[14].mxu1  ;;  %v5994_v13 = vld [vmem:[#allocation2 + $0x78] sm:$0xff] }
 0x854   : > { %v9046_v35 = vpop.f32.mrb[15].mxu1 }
 0x855   : > { %v6409_v44 = vadd.f32 %v9044_v54, %v12604_v8  ;;  %v9047_v48 = vadd.f32 %v9046_v35, %v9045_v19  ;;  %v6500_v35 = vld [vmem:[%s13002_s4 + $0x8] sm:$0xff] (!%p8072_p13) }
 0x857   : > { %v6453_v16 = vadd.f32 %v6409_v44, %v5985_v2  ;;  %v6412_v56 = vadd.f32 %v9047_v48, %v12607_v37  ;;  %v6499_v2 = vld [vmem:[%s13002_s4] sm:$0xff] (!%p8072_p13)  ;;  %v6504_v44 = vld [vmem:[%s13002_s4 + $0x28] sm:$0xff] (!%p8072_p13) }
 0x858   : > { %v6503_v48 = vld [vmem:[%s13002_s4 + $0x20] sm:$0xff] (!%p8072_p13) }
 0x859   : > { %6469 = vst [vmem:[#allocation2 + $0x30] sm:$0xff] %v6453_v16  ;;  %v6454_v53 = vadd.f32 %v6412_v56, %v5986_v26  ;;  %v9048_v43 = vpop.f32.mrb[16].mxu1  ;;  %v10412_v26 = vld [vmem:[%s13003_s5 + $0x200] sm:$0xff] (!%p8072_p13)   ;;  %v10413_v16 = vld [vmem:[%s13003_s5 + $0x208] sm:$0xff] (!%p8072_p13)   ;;  %v6506_v56 = vld [vmem:[%s13002_s4 + $0x38] sm:$0xff] (!%p8072_p13) }
 0x85a   : > { %v9049_v55 = vpop.f32.mrb[17].mxu1  ;;  %9872 = vmatprep.subr.bf16.mxu0 (!%p8072_p13), %v10412_v26 }
 0x85b   : > { %6470 = vst [vmem:[#allocation2 + $0x38] sm:$0xff] %v6454_v53  ;;  %v9050_v60 = vadd.f32 %v9049_v55, %v9048_v43  ;;  %v9051_v41 = vpop.f32.mrb[18].mxu1  ;;  %9873 = vmatpush3.bf16.msra.mxu0 (!%p8072_p13), %v10412_v26  ;;  %v6505_v53 = vld [vmem:[%s13002_s4 + $0x30] sm:$0xff] (!%p8072_p13)  ;;  %v6508_v55 = vld [vmem:[%s13002_s4 + $0x48] sm:$0xff] (!%p8072_p13)  ;;  %v10423_v26 = vld [vmem:[%s13003_s5 + $0x1d8] sm:$0xff] (!%p8072_p13)  }
 0x85c   : > { %v9052_v0 = vpop.f32.mrb[19].mxu1  ;;  %9874 = vmatprep.subr.bf16.mxu0 (!%p8072_p13), %v10413_v16  ;;  %v10414_v43 = vld [vmem:[%s13003_s5 + $0x210] sm:$0xff] (!%p8072_p13)  }
 0x85d   : > { %v6417_v28 = vadd.f32 %v9050_v60, %v12612_v51  ;;  %v9053_v3 = vadd.f32 %v9052_v0, %v9051_v41  ;;  %v6507_v60 = vld [vmem:[%s13002_s4 + $0x40] sm:$0xff] (!%p8072_p13)  ;;  %v10415_v41 = vld [vmem:[%s13003_s5 + $0x218] sm:$0xff] (!%p8072_p13)   ;;  %v6509_v0 = vld [vmem:[%s13002_s4 + $0x50] sm:$0xff] (!%p8072_p13) }
 0x85f   : > { %v6455_v6 = vadd.f32 %v6417_v28, %v5987_v47  ;;  %v6420_v8 = vadd.f32 %v9053_v3, %v12615_v5  ;;  %9875 = vmatpush3.bf16.msra.mxu0 (!%p8072_p13), %v10413_v16  ;;  %v6510_v47 = vld [vmem:[%s13002_s4 + $0x58] sm:$0xff] (!%p8072_p13)  ;;  %v10416_v28 = vld [vmem:[%s13003_s5 + $0x220] sm:$0xff] (!%p8072_p13)   ;;  %v6512_v3 = vld [vmem:[%s13002_s4 + $0x68] sm:$0xff] (!%p8072_p13) }
 0x860   : > { %9876 = vmatprep.subr.bf16.mxu0 (!%p8072_p13), %v10414_v43 }
 0x861   : > { %6471 = vst [vmem:[#allocation2 + $0x40] sm:$0xff] %v6455_v6  ;;  %v6456_v46 = vadd.f32 %v6420_v8, %v5988_v12  ;;  %v9054_v20 = vpop.f32.mrb[20].mxu1  ;;  %v6511_v12 = vld [vmem:[%s13002_s4 + $0x60] sm:$0xff] (!%p8072_p13)  ;;  %v10417_v6 = vld [vmem:[%s13003_s5 + $0x228] sm:$0xff] (!%p8072_p13)   ;;  %v6514_v8 = vld [vmem:[%s13002_s4 + $0x78] sm:$0xff] (!%p8072_p13) }
 0x862   : > { %v9055_v37 = vpop.f32.mrb[21].mxu1 }
 0x863   : > { %6472 = vst [vmem:[#allocation2 + $0x48] sm:$0xff] %v6456_v46  ;;  %v9056_v24 = vadd.f32 %v9055_v37, %v9054_v20  ;;  %v9057_v25 = vpop.f32.mrb[22].mxu1  ;;  %9877 = vmatpush3.bf16.msra.mxu0 (!%p8072_p13), %v10414_v43  ;;  %v6513_v46 = vld [vmem:[%s13002_s4 + $0x70] sm:$0xff] (!%p8072_p13)  ;;  %v10419_v37 = vld [vmem:[%s13003_s5 + $0x238] sm:$0xff] (!%p8072_p13)  }
 0x864   : > { %v9058_v31 = vpop.f32.mrb[23].mxu1  ;;  %9878 = vmatprep.subr.bf16.mxu0 (!%p8072_p13), %v10415_v41  ;;  %v10418_v20 = vld [vmem:[%s13003_s5 + $0x230] sm:$0xff] (!%p8072_p13)  }
 0x865   : > { %v6425_v62 = vadd.f32 %v9056_v24, %v12620_v30  ;;  %v9059_v50 = vadd.f32 %v9058_v31, %v9057_v25  ;;  %v10420_v24 = vld [vmem:[%s13003_s5 + $0x1c0] sm:$0xff] (!%p8072_p13)   ;;  %v10430_v31 = vld [vmem:[%s13003_s5 + $0x250] sm:$0xff] (!%p8072_p13)  }
 0x866   : > { %v10428_v25 = vld [vmem:[%s13003_s5 + $0x240] sm:$0xff] (!%p8072_p13)  }
 0x867   : > { %v6457_v17 = vadd.f32 %v6425_v62, %v5989_v39  ;;  %v6428_v51 = vadd.f32 %v9059_v50, %v12623_v29  ;;  %9879 = vmatpush3.bf16.msra.mxu0 (!%p8072_p13), %v10415_v41  ;;  %v10429_v39 = vld [vmem:[%s13003_s5 + $0x248] sm:$0xff] (!%p8072_p13)   ;;  %9936 = vmatprep.subr.bf16.mxu1 (!%p8072_p13), %v10428_v25  ;;  %v10431_v62 = vld [vmem:[%s13003_s5 + $0x258] sm:$0xff] (!%p8072_p13)   ;;  %v10432_v50 = vld [vmem:[%s13003_s5 + $0x260] sm:$0xff] (!%p8072_p13)  }
 0x868   : > { %9880 = vmatprep.subr.bf16.mxu0 (!%p8072_p13), %v10416_v28  ;;  %9937 = vmatpush3.bf16.msra.mxu1 (!%p8072_p13), %v10428_v25 }
 0x869   : > { %6473 = vst [vmem:[#allocation2 + $0x50] sm:$0xff] %v6457_v17  ;;  %v6458_v27 = vadd.f32 %v6428_v51, %v5990_v23  ;;  %v9060_v42 = vpop.f32.mrb[24].mxu1  ;;  %9938 = vmatprep.subr.bf16.mxu1 (!%p8072_p13), %v10429_v39  ;;  %v10433_v23 = vld [vmem:[%s13003_s5 + $0x268] sm:$0xff] (!%p8072_p13)  }
 0x86a   : > { %v9061_v5 = vpop.f32.mrb[25].mxu1 }
 0x86b   : > { %6474 = vst [vmem:[#allocation2 + $0x58] sm:$0xff] %v6458_v27  ;;  %v9062_v52 = vadd.f32 %v9061_v5, %v9060_v42  ;;  %v9063_v40 = vpop.f32.mrb[26].mxu1  ;;  %9881 = vmatpush3.bf16.msra.mxu0 (!%p8072_p13), %v10416_v28  ;;  %v6485_v27 = vld [vmem:[#allocation2 + $0x10] sm:$0xff] (!%p8072_p13)  ;;  %v6483_v42 = vld [vmem:[#allocation2] sm:$0xff] (!%p8072_p13)  ;;  %v6486_v5 = vld [vmem:[#allocation2 + $0x18] sm:$0xff] (!%p8072_p13) }
 0x86c   : > { %v9064_v59 = vpop.f32.mrb[27].mxu1  ;;  %9882 = vmatprep.subr.bf16.mxu0 (!%p8072_p13), %v10417_v6  ;;  %9939 = vmatpush3.bf16.msra.mxu1 (!%p8072_p13), %v10429_v39 }
 0x86d   : > { %v6433_v33 = vadd.f32 %v9062_v52, %v12628_v61  ;;  %v9065_v1 = vadd.f32 %v9064_v59, %v9063_v40  ;;  %9940 = vmatprep.subr.bf16.mxu1 (!%p8072_p13), %v10430_v31  ;;  %v6484_v52 = vld [vmem:[#allocation2 + $0x8] sm:$0xff] (!%p8072_p13) }
 0x86f   : > { %v6459_v21 = vadd.f32 %v6433_v33, %v5991_v7  ;;  %v6436_v30 = vadd.f32 %v9065_v1, %v12631_v9  ;;  %v6501_v9 = vld [vmem:[%s13002_s4 + $0x10] sm:$0xff] (!%p8072_p13)  ;;  %9883 = vmatpush3.bf16.msra.mxu0 (!%p8072_p13), %v10417_v6 }
 0x870   : > { %9884 = vmatprep.subr.bf16.mxu0 (!%p8072_p13), %v10418_v20  ;;  %9941 = vmatpush3.bf16.msra.mxu1 (!%p8072_p13), %v10430_v31  ;;  %v6493_v43 = vld [vmem:[#allocation2 + $0x50] sm:$0xff] (!%p8072_p13) }
 0x871   : > { %6475 = vst [vmem:[#allocation2 + $0x60] sm:$0xff] %v6459_v21  ;;  %v6460_v38 = vadd.f32 %v6436_v30, %v5992_v36  ;;  %v9066_v11 = vpop.f32.mrb[28].mxu1  ;;  %9942 = vmatprep.subr.bf16.mxu1 (!%p8072_p13), %v10431_v62  ;;  %v6488_v21 = vld [vmem:[#allocation2 + $0x28] sm:$0xff] (!%p8072_p13)  ;;  %v6487_v30 = vld [vmem:[#allocation2 + $0x20] sm:$0xff] (!%p8072_p13) }
 0x872   : > { %v9067_v29 = vpop.f32.mrb[29].mxu1 }
 0x873   : > { %6476 = vst [vmem:[#allocation2 + $0x68] sm:$0xff] %v6460_v38  ;;  %v9068_v49 = vadd.f32 %v9067_v29, %v9066_v11  ;;  %v9069_v10 = vpop.f32.mrb[30].mxu1  ;;  %9885 = vmatpush3.bf16.msra.mxu0 (!%p8072_p13), %v10418_v20  ;;  %v10425_v20 = vld [vmem:[%s13003_s5 + $0x1e8] sm:$0xff] (!%p8072_p13)  }
 0x874   : > { %v9070_v4 = vpop.f32.mrb[31].mxu1  ;;  %9886 = vmatprep.subr.bf16.mxu0 (!%p8072_p13), %v10419_v37  ;;  %9943 = vmatpush3.bf16.msra.mxu1 (!%p8072_p13), %v10431_v62 }
 0x875   : > { %v6441_v34 = vadd.f32 %v9068_v49, %v12636_v63  ;;  %v9071_v58 = vadd.f32 %v9070_v4, %v9069_v10  ;;  %6482 = sbr.rel (%p8072_p13) target bundleno = 3244 (0xcac), region = 56  ;;  %v10550_v63 = vmov (!%p8072_p13), 0   ;;  %9944 = vmatprep.subr.bf16.mxu1 (!%p8072_p13), %v10432_v50  ;;  %v10421_v10 = vld [vmem:[%s13003_s5 + $0x1c8] sm:$0xff] (!%p8072_p13)  }
 0x876   : > { %10411 = vset.pattern.permute.xlu1 (!%p8072_p13), %v10550_v63  ;;  %10410 = vset.pattern.permute.xlu0 (!%p8072_p13), %v10550_v63  ;;  %v6492_v63 = vld [vmem:[#allocation2 + $0x48] sm:$0xff] (!%p8072_p13) }
 0x877   : > { %v6461_v54 = vadd.f32 %v6441_v34, %v5993_v45  ;;  %v6444_v61 = vadd.f32 %v9071_v58, %v12639_v32  ;;  %6527 = vperm.xlu1 (!%p8072_p13), %10411, %v6501_v9   ;;  %6517 = vperm.xlu0 (!%p8072_p13), %10410, %v6499_v2   ;;  %v6502_v32 = vld [vmem:[%s13002_s4 + $0x18] sm:$0xff] (!%p8072_p13)  ;;  %v6489_v58 = vld [vmem:[#allocation2 + $0x30] sm:$0xff] (!%p8072_p13) }
 0x878   : > { %9887 = vmatpush3.bf16.msra.mxu0 (!%p8072_p13), %v10419_v37  ;;  %9945 = vmatpush3.bf16.msra.mxu1 (!%p8072_p13), %v10432_v50  ;;  %v6490_v34 = vld [vmem:[#allocation2 + $0x38] sm:$0xff] (!%p8072_p13) }
 0x879   : > { %6477 = vst [vmem:[#allocation2 + $0x70] sm:$0xff] %v6461_v54  ;;  %v6462_v19 = vadd.f32 %v6444_v61, %v5994_v13  ;;  %9904 = vmatprep.subr.bf16.mxu0 (!%p8072_p13), %v10420_v24  ;;  %9946 = vmatprep.subr.bf16.mxu1 (!%p8072_p13), %v10433_v23 }
 0x87b   : > { %6478 = vst [vmem:[#allocation2 + $0x78] sm:$0xff] %v6462_v19  ;;  %6532 = vperm.xlu1 (!%p8072_p13), %10411, %v6502_v32   ;;  %6522 = vperm.xlu0 (!%p8072_p13), %10410, %v6500_v35   ;;  %v10422_v19 = vld [vmem:[%s13003_s5 + $0x1d0] sm:$0xff] (!%p8072_p13)   ;;  %v6491_v32 = vld [vmem:[#allocation2 + $0x40] sm:$0xff] (!%p8072_p13) }
 0x87c   : > { %9947 = vmatpush3.bf16.msra.mxu1 %v10433_v23  ;;  %v10426_v23 = vld [vmem:[%s13003_s5 + $0x1f0] sm:$0xff]  }
 0x87f   : > { %6542 = vperm.xlu1 %10411, %v6504_v44   ;;  %6537 = vperm.xlu0 %10410, %v6503_v48  }
 0x880   : > { %v6497_v39 = vld [vmem:[#allocation2 + $0x70] sm:$0xff] }
 0x882   : > { %v6498_v25 = vld [vmem:[#allocation2 + $0x78] sm:$0xff] }
 0x883   : > { %6552 = vperm.xlu1 %10411, %v6506_v56   ;;  %6547 = vperm.xlu0 %10410, %v6505_v53   ;;  %v6494_v53 = vld [vmem:[#allocation2 + $0x58] sm:$0xff] }
 0x887   : > { %6562 = vperm.xlu1 %10411, %v6508_v55   ;;  %6557 = vperm.xlu0 %10410, %v6507_v60  }
 0x88b   : > { %6572 = vperm.xlu1 %10411, %v6510_v47   ;;  %6567 = vperm.xlu0 %10410, %v6509_v0   ;;  %v10424_v47 = vld [vmem:[%s13003_s5 + $0x1e0] sm:$0xff]  }
 0x88f   : > { %6582 = vperm.xlu1 %10411, %v6512_v3   ;;  %6577 = vperm.xlu0 %10410, %v6511_v12   ;;  %v6496_v3 = vld [vmem:[#allocation2 + $0x68] sm:$0xff]  ;;  %v6495_v12 = vld [vmem:[#allocation2 + $0x60] sm:$0xff] }
 0x893   : > { %6592 = vperm.xlu1 %10411, %v6514_v8   ;;  %6587 = vperm.xlu0 %10410, %v6513_v46  }
 0x8f6   : > { %v6528_v17 = vpop.permute.xlu1 %6527  ;;  %v6518_v51 = vpop.permute.xlu0 %6517 }
 0x8f7   : > { %v6597_v59 = vmul.f32 %v6528_v17, %v6485_v27  ;;  %v6595_v33 = vmul.f32 %v6518_v51, %v6483_v42  ;;  %v10427_v42 = vld [vmem:[%s13003_s5 + $0x1f8] sm:$0xff]  }
 0x8fa   : > { %v6533_v40 = vpop.permute.xlu1 %6532  ;;  %v6523_v7 = vpop.permute.xlu0 %6522 }
 0x8fb   : > { %v6598_v1 = vmul.f32 %v6533_v40, %v6486_v5  ;;  %v6596_v36 = vmul.f32 %v6523_v7, %v6484_v52  ;;  %v13079_v5 = vld [vmem:[#allocation11_spill] sm:$0xff]  ;;  %v13080_v52 = vld [vmem:[#allocation12_spill] sm:$0xff]  ;;  %v13081_v40 = vld [vmem:[#allocation13_spill] sm:$0xff] }
 0x8fc   : > { %v13082_v7 = vld [vmem:[#allocation14_spill] sm:$0xff] }
 0x8fd   : > { %v6646_v38 = vpack.c.bf16 %v6598_v1, %v6597_v59  ;;  %v6645_v11 = vpack.c.bf16 %v6596_v36, %v6595_v33  ;;  %v13083_v59 = vld [vmem:[#allocation15_spill] sm:$0xff]  ;;  %v6945_v33 = vsub.s32 4, %v11081_v57 }
 0x8fe   : > { %v6543_v29 = vpop.permute.xlu1 %6542  ;;  %v6538_v49 = vpop.permute.xlu0 %6537 }
 0x8ff   : > { %v6600_v45 = vmul.f32 %v6543_v29, %v6488_v21  ;;  %v6599_v4 = vmul.f32 %v6538_v49, %v6487_v30  ;;  %9888 = vmatprep.mubr.bf16.mxu0 %v6645_v11  ;;  %v12791_v1 = vrot.slane %v11845_v22, %v6945_v33 }
 0x900   : > { %9889 = vmatmul.mubr.bf16.vlgmr.msra.gmra.mrb[0].mxu0 %v6646_v38 }
 0x901   : > { %v6647_v13 = vpack.c.bf16 %v6600_v45, %v6599_v4  ;;  %9905 = vmatpush3.bf16.msra.mxu0 %v10420_v24 }
 0x902   : > { %v6553_v54 = vpop.permute.xlu1 %6552  ;;  %v6548_v61 = vpop.permute.xlu0 %6547  ;;  %9906 = vmatprep.subr.bf16.mxu0 %v10421_v10 }
 0x903   : > { %v6602_v9 = vmul.f32 %v6553_v54, %v6490_v34  ;;  %v6601_v2 = vmul.f32 %v6548_v61, %v6489_v58  ;;  %9892 = vmatprep.mubr.bf16.mxu0 %v6647_v13 }
 0x905   : > { %v6648_v35 = vpack.c.bf16 %v6602_v9, %v6601_v2  ;;  %9907 = vmatpush3.bf16.msra.mxu0 %v10421_v10  ;;  %v10437_v2 = vld [vmem:[%s13003_s5 + $0x288] sm:$0xff]  }
 0x906   : > { %v6563_v44 = vpop.permute.xlu1 %6562  ;;  %v6558_v48 = vpop.permute.xlu0 %6557  ;;  %9908 = vmatprep.subr.bf16.mxu0 %v10422_v19 }
 0x907   : > { %v6604_v16 = vmul.f32 %v6563_v44, %v6492_v63  ;;  %v6603_v56 = vmul.f32 %v6558_v48, %v6491_v32 }
 0x908   : > { %9893 = vmatmul.mubr.bf16.gmra.mrb[4].mxu0 %v6648_v35 }
 0x909   : > { %v6649_v55 = vpack.c.bf16 %v6604_v16, %v6603_v56  ;;  %9909 = vmatpush3.bf16.msra.mxu0 %v10422_v19  ;;  %v10438_v56 = vld [vmem:[%s13003_s5 + $0x290] sm:$0xff]  }
 0x90a   : > { %v6573_v60 = vpop.permute.xlu1 %6572  ;;  %v6568_v41 = vpop.permute.xlu0 %6567  ;;  %9910 = vmatprep.subr.bf16.mxu0 %v10423_v26 }
 0x90b   : > { %v6606_v0 = vmul.f32 %v6573_v60, %v6494_v53  ;;  %v6605_v28 = vmul.f32 %v6568_v41, %v6493_v43  ;;  %9896 = vmatprep.mubr.bf16.mxu0 %v6649_v55 }
 0x90d   : > { %v6650_v6 = vpack.c.bf16 %v6606_v0, %v6605_v28  ;;  %9911 = vmatpush3.bf16.msra.mxu0 %v10423_v26  ;;  %v10439_v28 = vld [vmem:[%s13003_s5 + $0x298] sm:$0xff]  }
 0x90e   : > { %v6583_v8 = vpop.permute.xlu1 %6582  ;;  %v6578_v46 = vpop.permute.xlu0 %6577  ;;  %9912 = vmatprep.subr.bf16.mxu0 %v10424_v47 }
 0x90f   : > { %v6608_v37 = vmul.f32 %v6583_v8, %v6496_v3  ;;  %v6607_v24 = vmul.f32 %v6578_v46, %v6495_v12 }
 0x910   : > { %9897 = vmatmul.mubr.bf16.gmra.mrb[8].mxu0 %v6650_v6 }
 0x911   : > { %v6651_v31 = vpack.c.bf16 %v6608_v37, %v6607_v24  ;;  %9913 = vmatpush3.bf16.msra.mxu0 %v10424_v47  ;;  %v10440_v24 = vld [vmem:[%s13003_s5 + $0x2a0] sm:$0xff]  }
 0x912   : > { %v6593_v62 = vpop.permute.xlu1 %6592  ;;  %v6588_v50 = vpop.permute.xlu0 %6587  ;;  %9914 = vmatprep.subr.bf16.mxu0 %v10425_v20 }
 0x913   : > { %v6610_v17 = vmul.f32 %v6593_v62, %v6498_v25  ;;  %v6609_v51 = vmul.f32 %v6588_v50, %v6497_v39  ;;  %9900 = vmatprep.mubr.bf16.mxu0 %v6651_v31 }
 0x915   : > { %v6652_v27 = vpack.c.bf16 %v6610_v17, %v6609_v51  ;;  %9915 = vmatpush3.bf16.msra.mxu0 %v10425_v20  ;;  %v10441_v51 = vld [vmem:[%s13003_s5 + $0x2a8] sm:$0xff]  }
 0x916   : > { %9916 = vmatprep.subr.bf16.mxu0 %v10426_v23 }
 0x918   : > { %9901 = vmatmul.mubr.bf16.gmra.mrb[12].mxu0 %v6652_v27 }
 0x919   : > { %9917 = vmatpush3.bf16.msra.mxu0 %v10426_v23  ;;  %9920 = vmatprep.mubr.bf16.mxu0 %v10690_v14  ;;  %v10434_v14 = vld [vmem:[%s13003_s5 + $0x270] sm:$0xff]  }
 0x91a   : > { %9918 = vmatprep.subr.bf16.mxu0 %v10427_v42  ;;  %9948 = vmatprep.subr.bf16.mxu1 %v10434_v14 }
 0x91b   : > { %9949 = vmatpush3.bf16.msra.mxu1 %v10434_v14 }
 0x91d   : > { %9919 = vmatpush3.bf16.msra.mxu0 %v10427_v42 }
 0x920   : > { %9921 = vmatmul.mubr.bf16.vlgmr.msra.gmra.mrb[0].mxu0 %v10695_v15  ;;  %v10435_v15 = vld [vmem:[%s13003_s5 + $0x278] sm:$0xff]  }
 0x921   : > { %9924 = vmatprep.mubr.bf16.mxu0 %v10707_v18  ;;  %9950 = vmatprep.subr.bf16.mxu1 %v10435_v15  ;;  %v10436_v18 = vld [vmem:[%s13003_s5 + $0x280] sm:$0xff]  }
 0x922   : > { %9951 = vmatpush3.bf16.msra.mxu1 %v10435_v15 }
 0x923   : > { %9968 = vmatprep.subr.bf16.mxu1 %v10436_v18 }
 0x928   : > { %9925 = vmatmul.mubr.bf16.gmra.mrb[4].mxu0 %v13079_v5 }
 0x929   : > { %9928 = vmatprep.mubr.bf16.mxu0 %v13080_v52 }
 0x930   : > { %9929 = vmatmul.mubr.bf16.gmra.mrb[8].mxu0 %v13081_v40 }
 0x931   : > { %9932 = vmatprep.mubr.bf16.mxu0 %v13082_v7 }
 0x938   : > { %9933 = vmatmul.mubr.bf16.gmra.mrb[12].mxu0 %v13083_v59 }
 0x9f3   : > { %v9922_v36 = vpop.f32.mrb[0].mxu0 }
 0x9f4   : > { %v6949_v21 = vadd.f32 %v9922_v36, %v12791_v1  ;;  %v6880_v30 = vpop.f32.mrb[1].mxu0  ;;  %v10442_v36 = vld [vmem:[%s13003_s5 + $0x2b0] sm:$0xff]  }
 0x9f5   : > { %v6947_v38 = vadd.f32 %v12791_v1, %v6880_v30  ;;  %v9923_v11 = vpop.f32.mrb[2].mxu0  ;;  %v10445_v30 = vld [vmem:[%s13003_s5 + $0x2c8] sm:$0xff]  }
 0x9f6   : > { %v6950_v29 = vadd.f32 %v9923_v11, %v12791_v1  ;;  %v6883_v49 = vpop.f32.mrb[3].mxu0  ;;  %v6965_v45 = vmax.f32 %v6949_v21, 0.0  ;;  %v10444_v21 = vld [vmem:[%s13003_s5 + $0x2c0] sm:$0xff]   ;;  %v10447_v11 = vld [vmem:[%s13003_s5 + $0x2d8] sm:$0xff]  }
 0x9f7   : > { %v6948_v10 = vadd.f32 %v12791_v1, %v6883_v49  ;;  %v6963_v34 = vmax.f32 %v6947_v38, 0.0  ;;  %10000 = vmatprep.subr.bf16.mxu0 %v10444_v21  ;;  %v10446_v38 = vld [vmem:[%s13003_s5 + $0x2d0] sm:$0xff]   ;;  %v10449_v49 = vld [vmem:[%s13003_s5 + $0x2e8] sm:$0xff]  }
 0x9f8   : > { %v6966_v4 = vmax.f32 %v6950_v29, 0.0  ;;  %10001 = vmatpush3.bf16.msra.mxu0 %v10444_v21  ;;  %v10448_v29 = vld [vmem:[%s13003_s5 + $0x2e0] sm:$0xff]  }
 0x9f9   : > { %v6964_v58 = vmax.f32 %v6948_v10, 0.0  ;;  %10002 = vmatprep.subr.bf16.mxu0 %v10445_v30  ;;  %v7006_v10 = vsub.s32 5, %v11081_v57 }
 0x9fa   : > { %v6997_v13 = vpack.c.bf16 %v6966_v4, %v6965_v45 }
 0x9fb   : > { %v9926_v54 = vpop.f32.mrb[4].mxu0  ;;  %v6996_v61 = vpack.c.bf16 %v6964_v58, %v6963_v34  ;;  %v7007_v45 = vrot.slane %v11845_v22, %v7006_v10 }
 0x9fc   : > { %v6953_v19 = vadd.f32 %v9926_v54, %v12791_v1  ;;  %v6896_v9 = vpop.f32.mrb[5].mxu0  ;;  %10003 = vmatpush3.bf16.msra.mxu0 %v10445_v30 }
 0x9fd   : > { %v6951_v63 = vadd.f32 %v12791_v1, %v6896_v9  ;;  %v9927_v32 = vpop.f32.mrb[6].mxu0  ;;  %9952 = vmatprep.mubr.bf16.mxu1 %v6996_v61  ;;  %10004 = vmatprep.subr.bf16.mxu0 %v10446_v38 }
 0x9fe   : > { %v6954_v35 = vadd.f32 %v9927_v32, %v12791_v1  ;;  %v6899_v44 = vpop.f32.mrb[7].mxu0  ;;  %9953 = vmatmul.mubr.bf16.vlgmr.msra.gmra.mrb[0].mxu1 %v6997_v13  ;;  %v6969_v26 = vmax.f32 %v6953_v19, 0.0 }
 0x9ff   : > { %v6952_v48 = vadd.f32 %v12791_v1, %v6899_v44  ;;  %9969 = vmatpush3.bf16.msra.mxu1 %v10436_v18  ;;  %v6967_v53 = vmax.f32 %v6951_v63, 0.0 }
 0xa00   : > { %v6970_v16 = vmax.f32 %v6954_v35, 0.0  ;;  %9970 = vmatprep.subr.bf16.mxu1 %v10437_v2  ;;  %10005 = vmatpush3.bf16.msra.mxu0 %v10446_v38 }
 0xa01   : > { %v6968_v43 = vmax.f32 %v6952_v48, 0.0  ;;  %10006 = vmatprep.subr.bf16.mxu0 %v10447_v11 }
 0xa02   : > { %v6999_v55 = vpack.c.bf16 %v6970_v16, %v6969_v26 }
 0xa03   : > { %v6998_v60 = vpack.c.bf16 %v6968_v43, %v6967_v53  ;;  %v9930_v41 = vpop.f32.mrb[8].mxu0  ;;  %9971 = vmatpush3.bf16.msra.mxu1 %v10437_v2 }
 0xa04   : > { %v6957_v47 = vadd.f32 %v9930_v41, %v12791_v1  ;;  %v6912_v0 = vpop.f32.mrb[9].mxu0  ;;  %9972 = vmatprep.subr.bf16.mxu1 %v10438_v56  ;;  %10007 = vmatpush3.bf16.msra.mxu0 %v10447_v11 }
 0xa05   : > { %v6955_v3 = vadd.f32 %v12791_v1, %v6912_v0  ;;  %v9931_v12 = vpop.f32.mrb[10].mxu0  ;;  %9956 = vmatprep.mubr.bf16.mxu1 %v6998_v60  ;;  %10008 = vmatprep.subr.bf16.mxu0 %v10448_v29 }
 0xa06   : > { %v6958_v6 = vadd.f32 %v9931_v12, %v12791_v1  ;;  %v6915_v8 = vpop.f32.mrb[11].mxu0  ;;  %9957 = vmatmul.mubr.bf16.gmra.mrb[4].mxu1 %v6999_v55  ;;  %v6973_v20 = vmax.f32 %v6957_v47, 0.0 }
 0xa07   : > { %v6956_v46 = vadd.f32 %v12791_v1, %v6915_v8  ;;  %9973 = vmatpush3.bf16.msra.mxu1 %v10438_v56  ;;  %v6971_v25 = vmax.f32 %v6955_v3, 0.0 }
 0xa08   : > { %v6974_v37 = vmax.f32 %v6958_v6, 0.0  ;;  %9974 = vmatprep.subr.bf16.mxu1 %v10439_v28  ;;  %10009 = vmatpush3.bf16.msra.mxu0 %v10448_v29 }
 0xa09   : > { %v6972_v39 = vmax.f32 %v6956_v46, 0.0  ;;  %10010 = vmatprep.subr.bf16.mxu0 %v10449_v49 }
 0xa0a   : > { %v7001_v31 = vpack.c.bf16 %v6974_v37, %v6973_v20 }
 0xa0b   : > { %v7000_v62 = vpack.c.bf16 %v6972_v39, %v6971_v25  ;;  %v9934_v50 = vpop.f32.mrb[12].mxu0  ;;  %9975 = vmatpush3.bf16.msra.mxu1 %v10439_v28 }
 0xa0c   : > { %v6961_v23 = vadd.f32 %v9934_v50, %v12791_v1  ;;  %v6928_v17 = vpop.f32.mrb[13].mxu0  ;;  %9976 = vmatprep.subr.bf16.mxu1 %v10440_v24  ;;  %10011 = vmatpush3.bf16.msra.mxu0 %v10449_v49 }
 0xa0d   : > { %v6959_v27 = vadd.f32 %v12791_v1, %v6928_v17  ;;  %v9935_v42 = vpop.f32.mrb[14].mxu0  ;;  %9960 = vmatprep.mubr.bf16.mxu1 %v7000_v62 }
 0xa0e   : > { %v6962_v5 = vadd.f32 %v9935_v42, %v12791_v1  ;;  %v6931_v52 = vpop.f32.mrb[15].mxu0  ;;  %9961 = vmatmul.mubr.bf16.gmra.mrb[8].mxu1 %v7001_v31  ;;  %v6977_v7 = vmax.f32 %v6961_v23, 0.0  ;;  %v7180_v42 = vsub.s32 6, %v11081_v57 }
 0xa0f   : > { %v6960_v40 = vadd.f32 %v12791_v1, %v6931_v52  ;;  %9977 = vmatpush3.bf16.msra.mxu1 %v10440_v24  ;;  %v6975_v14 = vmax.f32 %v6959_v27, 0.0  ;;  %v10443_v1 = vld [vmem:[%s13003_s5 + $0x2b8] sm:$0xff]  }
 0xa10   : > { %v6978_v59 = vmax.f32 %v6962_v5, 0.0  ;;  %9978 = vmatprep.subr.bf16.mxu1 %v10441_v51  ;;  %v10451_v27 = vld [vmem:[%s13003_s5 + $0x2f8] sm:$0xff]   ;;  %v7181_v5 = vrot.slane %v11845_v22, %v7180_v42 }
 0xa11   : > { %v6976_v15 = vmax.f32 %v6960_v40, 0.0 }
 0xa12   : > { %v7003_v18 = vpack.c.bf16 %v6978_v59, %v6977_v7 }
 0xa13   : > { %v7002_v33 = vpack.c.bf16 %v6976_v15, %v6975_v14  ;;  %9979 = vmatpush3.bf16.msra.mxu1 %v10441_v51  ;;  %v10450_v51 = vld [vmem:[%s13003_s5 + $0x2f0] sm:$0xff]  }
 0xa14   : > { %9980 = vmatprep.subr.bf16.mxu1 %v10442_v36  ;;  %10012 = vmatprep.subr.bf16.mxu0 %v10450_v51 }
 0xa15   : > { %9964 = vmatprep.mubr.bf16.mxu1 %v7002_v33  ;;  %10013 = vmatpush3.bf16.msra.mxu0 %v10450_v51 }
 0xa16   : > { %9965 = vmatmul.mubr.bf16.gmra.mrb[12].mxu1 %v7003_v18  ;;  %10014 = vmatprep.subr.bf16.mxu0 %v10451_v27 }
 0xa17   : > { %9981 = vmatpush3.bf16.msra.mxu1 %v10442_v36 }
 0xa18   : > { %9982 = vmatprep.subr.bf16.mxu1 %v10443_v1 }
 0xa19   : > { %10015 = vmatpush3.bf16.msra.mxu0 %v10451_v27 }
 0xa1b   : > { %9983 = vmatpush3.bf16.msra.mxu1 %v10443_v1 }
 0xa1c   : > { %10224 = vmatprep.subr.bf16.mxu1 %v10444_v21 }
 0xad1   : > { %v9954_v4 = vpop.f32.mrb[0].mxu1 }
 0xad2   : > { %v7090_v34 = vpop.f32.mrb[1].mxu1  ;;  %v12856_v9 = vadd.f32 %v9954_v4, %v7007_v45 }
 0xad3   : > { %v9955_v58 = vpop.f32.mrb[2].mxu1  ;;  %v12852_v61 = vadd.f32 %v7090_v34, %v7007_v45 }
 0xad4   : > { %v12850_v13 = vadd.f32 %v9955_v58, %v7007_v45  ;;  %v7093_v54 = vpop.f32.mrb[3].mxu1 }
 0xad5   : > { %v12854_v19 = vadd.f32 %v7093_v54, %v7007_v45 }
 0xad6   : > { %v7171_v63 = vpack.c.bf16 %v12850_v13, %v12856_v9 }
 0xad7   : > { %v7170_v2 = vpack.c.bf16 %v12854_v19, %v12852_v61 }
 0xad9   : > { %v9958_v32 = vpop.f32.mrb[4].mxu1  ;;  %9984 = vmatprep.mubr.bf16.mxu1 %v7170_v2 }
 0xada   : > { %v7106_v35 = vpop.f32.mrb[5].mxu1  ;;  %9985 = vmatmul.mubr.bf16.vlgmr.msra.gmra.mrb[16].mxu1 %v7171_v63  ;;  %v12868_v53 = vadd.f32 %v9958_v32, %v7007_v45 }
 0xadb   : > { %v9959_v44 = vpop.f32.mrb[6].mxu1  ;;  %10232 = vmatpush3.bf16.msra.mxu1 %v10444_v21  ;;  %v12864_v16 = vadd.f32 %v7106_v35, %v7007_v45 }
 0xadc   : > { %v12862_v48 = vadd.f32 %v9959_v44, %v7007_v45  ;;  %v7109_v26 = vpop.f32.mrb[7].mxu1  ;;  %10225 = vmatprep.subr.bf16.mxu1 %v10445_v30 }
 0xadd   : > { %v12866_v56 = vadd.f32 %v7109_v26, %v7007_v45 }
 0xade   : > { %v7173_v55 = vpack.c.bf16 %v12862_v48, %v12868_v53 }
 0xadf   : > { %v7172_v43 = vpack.c.bf16 %v12866_v56, %v12864_v16  ;;  %10233 = vmatpush3.bf16.msra.mxu1 %v10445_v30 }
 0xae0   : > { %10226 = vmatprep.subr.bf16.mxu1 %v10446_v38 }
 0xae1   : > { %v9962_v60 = vpop.f32.mrb[8].mxu1  ;;  %9988 = vmatprep.mubr.bf16.mxu1 %v7172_v43 }
 0xae2   : > { %v7122_v41 = vpop.f32.mrb[9].mxu1  ;;  %9989 = vmatmul.mubr.bf16.gmra.mrb[20].mxu1 %v7173_v55  ;;  %v12880_v6 = vadd.f32 %v9962_v60, %v7007_v45 }
 0xae3   : > { %v9963_v47 = vpop.f32.mrb[10].mxu1  ;;  %10234 = vmatpush3.bf16.msra.mxu1 %v10446_v38  ;;  %v12876_v3 = vadd.f32 %v7122_v41, %v7007_v45 }
 0xae4   : > { %v12874_v0 = vadd.f32 %v9963_v47, %v7007_v45  ;;  %v7125_v28 = vpop.f32.mrb[11].mxu1  ;;  %10227 = vmatprep.subr.bf16.mxu1 %v10447_v11 }
 0xae5   : > { %v12878_v12 = vadd.f32 %v7125_v28, %v7007_v45 }
 0xae6   : > { %v7175_v46 = vpack.c.bf16 %v12874_v0, %v12880_v6 }
 0xae7   : > { %v7174_v8 = vpack.c.bf16 %v12878_v12, %v12876_v3  ;;  %10235 = vmatpush3.bf16.msra.mxu1 %v10447_v11 }
 0xae8   : > { %10228 = vmatprep.subr.bf16.mxu1 %v10448_v29 }
 0xae9   : > { %v9966_v20 = vpop.f32.mrb[12].mxu1  ;;  %9992 = vmatprep.mubr.bf16.mxu1 %v7174_v8 }
 0xaea   : > { %v7138_v37 = vpop.f32.mrb[13].mxu1  ;;  %9993 = vmatmul.mubr.bf16.gmra.mrb[24].mxu1 %v7175_v46  ;;  %v12892_v50 = vadd.f32 %v9966_v20, %v7007_v45 }
 0xaeb   : > { %v9967_v24 = vpop.f32.mrb[14].mxu1  ;;  %10236 = vmatpush3.bf16.msra.mxu1 %v10448_v29  ;;  %v12888_v31 = vadd.f32 %v7138_v37, %v7007_v45 }
 0xaec   : > { %v12886_v25 = vadd.f32 %v9967_v24, %v7007_v45  ;;  %v7141_v39 = vpop.f32.mrb[15].mxu1  ;;  %10229 = vmatprep.subr.bf16.mxu1 %v10449_v49 }
 0xaed   : > { %v12890_v62 = vadd.f32 %v7141_v39, %v7007_v45 }
 0xaee   : > { %v7177_v17 = vpack.c.bf16 %v12886_v25, %v12892_v50 }
 0xaef   : > { %v7176_v23 = vpack.c.bf16 %v12890_v62, %v12888_v31  ;;  %10237 = vmatpush3.bf16.msra.mxu1 %v10449_v49 }
 0xaf0   : > { %10230 = vmatprep.subr.bf16.mxu1 %v10450_v51 }
 0xaf1   : > { %9996 = vmatprep.mubr.bf16.mxu1 %v7176_v23 }
 0xaf2   : > { %9997 = vmatmul.mubr.bf16.gmra.mrb[28].mxu1 %v7177_v17 }
 0xaf3   : > { %10238 = vmatpush3.bf16.msra.mxu1 %v10450_v51 }
 0xaf4   : > { %10231 = vmatprep.subr.bf16.mxu1 %v10451_v27 }
 0xaf7   : > { %10239 = vmatpush3.bf16.msra.mxu1 %v10451_v27 }
 0xbad   : > { %v9986_v52 = vpop.f32.mrb[16].mxu1 }
 0xbae   : > { %v7273_v40 = vadd.f32 %v9986_v52, %v7181_v5  ;;  %v7264_v7 = vpop.f32.mrb[17].mxu1 }
 0xbaf   : > { %v7265_v59 = vadd.f32 %v7264_v7, %v7181_v5  ;;  %v9987_v14 = vpop.f32.mrb[18].mxu1 }
 0xbb0   : > { %v7276_v15 = vadd.f32 %v9987_v14, %v7181_v5  ;;  %v7267_v18 = vpop.f32.mrb[19].mxu1  ;;  %v7329_v36 = vmax.f32 %v7273_v40, 0.0 }
 0xbb1   : > { %v7268_v33 = vadd.f32 %v7267_v18, %v7181_v5  ;;  %v7327_v21 = vmax.f32 %v7265_v59, 0.0 }
 0xbb2   : > { %v7330_v1 = vmax.f32 %v7276_v15, 0.0 }
 0xbb3   : > { %v7328_v30 = vmax.f32 %v7268_v33, 0.0 }
 0xbb4   : > { %v7361_v38 = vpack.c.bf16 %v7330_v1, %v7329_v36 }
 0xbb5   : > { %v7360_v11 = vpack.c.bf16 %v7328_v30, %v7327_v21  ;;  %v9990_v29 = vpop.f32.mrb[20].mxu1  ;;  %v7370_v30 = vsub.s32 7, %v11081_v57 }
 0xbb6   : > { %v7289_v49 = vadd.f32 %v9990_v29, %v7181_v5  ;;  %v7280_v10 = vpop.f32.mrb[21].mxu1 }
 0xbb7   : > { %v7281_v45 = vadd.f32 %v7280_v10, %v7181_v5  ;;  %v9991_v4 = vpop.f32.mrb[22].mxu1  ;;  %10016 = vmatprep.mubr.bf16.mxu0 %v7360_v11 }
 0xbb8   : > { %v7292_v34 = vadd.f32 %v9991_v4, %v7181_v5  ;;  %v7283_v58 = vpop.f32.mrb[23].mxu1  ;;  %10017 = vmatmul.mubr.bf16.vlgmr.msra.gmra.mrb[16].mxu0 %v7361_v38  ;;  %v7333_v2 = vmax.f32 %v7289_v49, 0.0  ;;  %v7371_v38 = vrot.slane %v11845_v22, %v7370_v30 }
 0xbb9   : > { %v7284_v54 = vadd.f32 %v7283_v58, %v7181_v5  ;;  %v7331_v32 = vmax.f32 %v7281_v45, 0.0 }
 0xbba   : > { %v7334_v63 = vmax.f32 %v7292_v34, 0.0 }
 0xbbb   : > { %v7332_v35 = vmax.f32 %v7284_v54, 0.0 }
 0xbbc   : > { %v7363_v44 = vpack.c.bf16 %v7334_v63, %v7333_v2 }
 0xbbd   : > { %v7362_v26 = vpack.c.bf16 %v7332_v35, %v7331_v32  ;;  %v9994_v43 = vpop.f32.mrb[24].mxu1 }
 0xbbe   : > { %v7305_v55 = vadd.f32 %v9994_v43, %v7181_v5  ;;  %v7296_v60 = vpop.f32.mrb[25].mxu1 }
 0xbbf   : > { %v7297_v41 = vadd.f32 %v7296_v60, %v7181_v5  ;;  %v9995_v47 = vpop.f32.mrb[26].mxu1  ;;  %10020 = vmatprep.mubr.bf16.mxu0 %v7362_v26 }
 0xbc0   : > { %v7308_v28 = vadd.f32 %v9995_v47, %v7181_v5  ;;  %v7299_v8 = vpop.f32.mrb[27].mxu1  ;;  %10021 = vmatmul.mubr.bf16.gmra.mrb[20].mxu0 %v7363_v44  ;;  %v7337_v20 = vmax.f32 %v7305_v55, 0.0 }
 0xbc1   : > { %v7300_v46 = vadd.f32 %v7299_v8, %v7181_v5  ;;  %v7335_v24 = vmax.f32 %v7297_v41, 0.0 }
 0xbc2   : > { %v7338_v37 = vmax.f32 %v7308_v28, 0.0 }
 0xbc3   : > { %v7336_v39 = vmax.f32 %v7300_v46, 0.0 }
 0xbc4   : > { %v7365_v23 = vpack.c.bf16 %v7338_v37, %v7337_v20 }
 0xbc5   : > { %v7364_v17 = vpack.c.bf16 %v7336_v39, %v7335_v24  ;;  %v9998_v51 = vpop.f32.mrb[28].mxu1 }
 0xbc6   : > { %v7321_v27 = vadd.f32 %v9998_v51, %v7181_v5  ;;  %v7312_v42 = vpop.f32.mrb[29].mxu1 }
 0xbc7   : > { %v7313_v52 = vadd.f32 %v7312_v42, %v7181_v5  ;;  %v9999_v40 = vpop.f32.mrb[30].mxu1  ;;  %10024 = vmatprep.mubr.bf16.mxu1 %v7364_v17 }
 0xbc8   : > { %v7324_v7 = vadd.f32 %v9999_v40, %v7181_v5  ;;  %v7315_v59 = vpop.f32.mrb[31].mxu1  ;;  %10025 = vmatmul.mubr.bf16.vlgmr.msra.gmra.mrb[32].mxu1 %v7365_v23  ;;  %v7341_v15 = vmax.f32 %v7321_v27, 0.0 }
 0xbc9   : > { %v7316_v14 = vadd.f32 %v7315_v59, %v7181_v5  ;;  %v7339_v33 = vmax.f32 %v7313_v52, 0.0 }
 0xbca   : > { %v7342_v18 = vmax.f32 %v7324_v7, 0.0 }
 0xbcb   : > { %v7340_v36 = vmax.f32 %v7316_v14, 0.0 }
 0xbcc   : > { %v7367_v1 = vpack.c.bf16 %v7342_v18, %v7341_v15 }
 0xbcd   : > { %v7366_v21 = vpack.c.bf16 %v7340_v36, %v7339_v33 }
 0xbcf   : > { %10028 = vmatprep.mubr.bf16.mxu1 %v7366_v21 }
 0xbd0   : > { %10029 = vmatmul.mubr.bf16.gmra.mrb[36].mxu1 %v7367_v1 }
 0xc8b   : > { %v10018_v11 = vpop.f32.mrb[16].mxu0 }
 0xc8c   : > { %v7463_v29 = vadd.f32 %v10018_v11, %v7371_v38  ;;  %v7454_v49 = vpop.f32.mrb[17].mxu0 }
 0xc8d   : > { %v7455_v10 = vadd.f32 %v7454_v49, %v7371_v38  ;;  %v10019_v45 = vpop.f32.mrb[18].mxu0 }
 0xc8e   : > { %v7519_v4 = vadd.f32 %v7463_v29, %v12856_v9  ;;  %v7466_v5 = vadd.f32 %v10019_v45, %v7371_v38  ;;  %v7457_v34 = vpop.f32.mrb[19].mxu0 }
 0xc8f   : > { %v7517_v58 = vadd.f32 %v7455_v10, %v12852_v61  ;;  %v7458_v54 = vadd.f32 %v7457_v34, %v7371_v38 }
 0xc90   : > { %7535 = vst [vmem:[#allocation3 + $0x10] sm:$0xff] %v7519_v4  ;;  %v7520_v2 = vadd.f32 %v7466_v5, %v12850_v13 }
 0xc91   : > { %7533 = vst [vmem:[#allocation3] sm:$0xff] %v7517_v58  ;;  %v7518_v57 = vadd.f32 %v7458_v54, %v12854_v19 }
 0xc92   : > { %7536 = vst [vmem:[#allocation3 + $0x18] sm:$0xff] %v7520_v2 }
 0xc93   : > { %7534 = vst [vmem:[#allocation3 + $0x8] sm:$0xff] %v7518_v57  ;;  %v10022_v22 = vpop.f32.mrb[20].mxu0 }
 0xc94   : > { %v7479_v63 = vadd.f32 %v10022_v22, %v7371_v38  ;;  %v7470_v32 = vpop.f32.mrb[21].mxu0 }
 0xc95   : > { %v7471_v35 = vadd.f32 %v7470_v32, %v7371_v38  ;;  %v10023_v44 = vpop.f32.mrb[22].mxu0 }
 0xc96   : > { %v7523_v9 = vadd.f32 %v7479_v63, %v12868_v53  ;;  %v7482_v26 = vadd.f32 %v10023_v44, %v7371_v38  ;;  %v7473_v43 = vpop.f32.mrb[23].mxu0 }
 0xc97   : > { %v7521_v61 = vadd.f32 %v7471_v35, %v12864_v16  ;;  %v7474_v55 = vadd.f32 %v7473_v43, %v7371_v38 }
 0xc98   : > { %7539 = vst [vmem:[#allocation3 + $0x30] sm:$0xff] %v7523_v9  ;;  %v7524_v13 = vadd.f32 %v7482_v26, %v12862_v48 }
 0xc99   : > { %7537 = vst [vmem:[#allocation3 + $0x20] sm:$0xff] %v7521_v61  ;;  %v7522_v19 = vadd.f32 %v7474_v55, %v12866_v56 }
 0xc9a   : > { %7540 = vst [vmem:[#allocation3 + $0x38] sm:$0xff] %v7524_v13 }
 0xc9b   : > { %7538 = vst [vmem:[#allocation3 + $0x28] sm:$0xff] %v7522_v19  ;;  %v10026_v60 = vpop.f32.mrb[32].mxu1 }
 0xc9c   : > { %v7495_v41 = vadd.f32 %v10026_v60, %v7371_v38  ;;  %v7486_v47 = vpop.f32.mrb[33].mxu1 }
 0xc9d   : > { %v7487_v28 = vadd.f32 %v7486_v47, %v7371_v38  ;;  %v10027_v8 = vpop.f32.mrb[34].mxu1 }
 0xc9e   : > { %v7527_v53 = vadd.f32 %v7495_v41, %v12880_v6  ;;  %v7498_v46 = vadd.f32 %v10027_v8, %v7371_v38  ;;  %v7489_v20 = vpop.f32.mrb[35].mxu1 }
 0xc9f   : > { %v7525_v16 = vadd.f32 %v7487_v28, %v12876_v3  ;;  %v7490_v37 = vadd.f32 %v7489_v20, %v7371_v38 }
 0xca0   : > { %7543 = vst [vmem:[#allocation3 + $0x50] sm:$0xff] %v7527_v53  ;;  %v7528_v48 = vadd.f32 %v7498_v46, %v12874_v0 }
 0xca1   : > { %7541 = vst [vmem:[#allocation3 + $0x40] sm:$0xff] %v7525_v16  ;;  %v7526_v56 = vadd.f32 %v7490_v37, %v12878_v12 }
 0xca2   : > { %7544 = vst [vmem:[#allocation3 + $0x58] sm:$0xff] %v7528_v48 }
 0xca3   : > { %7542 = vst [vmem:[#allocation3 + $0x48] sm:$0xff] %v7526_v56  ;;  %v10030_v24 = vpop.f32.mrb[36].mxu1 }
 0xca4   : > { %v7511_v39 = vadd.f32 %v10030_v24, %v7371_v38  ;;  %v7502_v23 = vpop.f32.mrb[37].mxu1 }
 0xca5   : > { %v7503_v17 = vadd.f32 %v7502_v23, %v7371_v38  ;;  %v10031_v51 = vpop.f32.mrb[38].mxu1 }
 0xca6   : > { %v7531_v6 = vadd.f32 %v7511_v39, %v12892_v50  ;;  %v7514_v27 = vadd.f32 %v10031_v51, %v7371_v38  ;;  %v7505_v42 = vpop.f32.mrb[39].mxu1 }
 0xca7   : > { %v7529_v3 = vadd.f32 %v7503_v17, %v12888_v31  ;;  %v7506_v52 = vadd.f32 %v7505_v42, %v7371_v38 }
 0xca8   : > { %7547 = vst [vmem:[#allocation3 + $0x70] sm:$0xff] %v7531_v6  ;;  %v7532_v0 = vadd.f32 %v7514_v27, %v12886_v25 }
 0xca9   : > { %7545 = vst [vmem:[#allocation3 + $0x60] sm:$0xff] %v7529_v3  ;;  %v7530_v12 = vadd.f32 %v7506_v52, %v12890_v62 }
 0xcaa   : > { %7548 = vst [vmem:[#allocation3 + $0x78] sm:$0xff] %v7532_v0 }
 0xcab   : > { %7546 = vst [vmem:[#allocation3 + $0x68] sm:$0xff] %v7530_v12 }
 0xcac PF: > { %s10551_s22 = smov [#allocation3]  }
 0xcad   : > { %s7560_s23 = sshll.u32 %s10551_s22, 4  ;;  %s7561_s23 = int_to_ptr.vmem [resolvable:$true] %s7560_s23 }
 0xcae   : > { %s10452_s12 = scalar_lea.vmem %s7561_s23, 2048  ;;  %p10459_p4 = scmp.lt.s32.totalorder %s7561_s23, %s7561_s23 }
 0xcaf   : > { %p10453_p0 = scmp.ne.s32.totalorder %s7561_s23, %s10452_s12  ;;  %p10460_p7 = scmp.lt.s32.totalorder %s10452_s12, %s10452_s12 }
 0xcb1   : > { %p10454_p1 = pnand %p10453_p0, %p224_p2  ;;  %p10461_p8 = por %p10460_p7, %p10459_p4 }
 0xcb3   : > { %p10455_p3 = pneg %p10454_p1 }
 0xcb5   : > { %p10462_p9 = pnand %p10461_p8, %p10455_p3 }
 0xcb7   : > { %10465 = shalt.err (!%p10462_p9)
}
 0xcb8   : > { %s10466_s26 = scalar_lea.hbm %s13005_s7, 2048 }
 0xcb9   : > { %p10467_p10 = scmp.ne.s32.totalorder %s13005_s7, %s10466_s26  ;;  %p10472_p13 = scmp.lt.u32.totalorder %s10466_s26, %s13005_s7 }
 0xcbb   : > { %p10468_p11 = pnand %p10467_p10, %p224_p2 }
 0xcbd   : > { %p10469_p12 = pneg %p10468_p11 }
 0xcbf   : > { %p10474_p0 = pnand %p10472_p13, %p10469_p12 }
 0xcc1   : > { %10477 = shalt.err (!%p10474_p0)
}
 0xcc2   : > { %s10552_s14 = smov 128   ;;  %s10553_s18 = smov 8  }
 0xcc3   : > { %10257 = dma.vmem_to_hbm [thread:$0]  (%p224_p2), %s7561_s23, 2048, %s13005_s7, [#allocation4], %s10552_s14, %s10552_s14, %s10553_s18  }
 0xcc4   : > { %s8264_s22 = sshll.u32 %s10623_s9, 12  ;;  %s7576_s12 = sshll.u32 %s10672_s17, 4  ;;  %s12949_s12 = int_to_ptr.vmem [resolvable:$true] %s7576_s12 }
 0xcc5   : > { %s12947_s26 = scalar_lea.hbm %s13006_s8, %s8264_s22  ;;  %s13084_s29 = sand.u32 1, %s10536_s28  }
 0xcc6   : > { %s12953_s10 = scalar_lea.sflag [#allocation6], %s13084_s29  ;;  %s10478_s13 = scalar_lea.vmem %s12949_s12, 4096 }
 0xcc7   : > { %p10479_p1 = scmp.ne.s32.totalorder %s12949_s12, %s10478_s13  ;;  %s10554_s23 = smov [#allocation5]  }
 0xcc8   : > { %s10482_s17 = sshll.u32 %s10554_s23, 4  ;;  %s10483_s17 = int_to_ptr.vmem [resolvable:$false] %s10482_s17 }
 0xcc9   : > { %p10480_p3 = pnand %p10479_p1, %p10642_p5  ;;  %s10484_s20 = scalar_lea.vmem %s10483_s17, 8192 }
 0xcca   : > { %p10485_p7 = scmp.lt.s32.totalorder %s12949_s12, %s10483_s17  ;;  %p10486_p8 = scmp.lt.s32.totalorder %s10484_s20, %s10478_s13 }
 0xccb   : > { %p10481_p4 = pneg %p10480_p3 }
 0xccc   : > { %p10487_p9 = por %p10486_p8, %p10485_p7 }
 0xcce   : > { %p10488_p10 = pnand %p10487_p9, %p10481_p4 }
 0xcd0   : > { %10491 = shalt.err (!%p10488_p10)
}
 0xcd1   : > { %s10492_s14 = scalar_lea.hbm %s12947_s26, 4096  ;;  %s10496_s21 = scalar_lea.hbm %s13006_s8, 12288 }
 0xcd2   : > { %p10493_p11 = scmp.ne.s32.totalorder %s12947_s26, %s10492_s14  ;;  %p10497_p0 = scmp.lt.u32.totalorder %s12947_s26, %s13006_s8 }
 0xcd3   : > { %p10498_p1 = scmp.lt.u32.totalorder %s10496_s21, %s10492_s14  ;;  %p10500_p4 = scmp.lt.u32.totalorder %s10492_s14, %s12947_s26 }
 0xcd4   : > { %p10494_p12 = pnand %p10493_p11, %p10642_p5 }
 0xcd5   : > { %p10499_p3 = por %p10498_p1, %p10497_p0 }
 0xcd6   : > { %p10495_p13 = pneg %p10494_p12 }
 0xcd7   : > { %p10501_p7 = por %p10500_p4, %p10499_p3 }
 0xcd9   : > { %p10502_p8 = pnand %p10501_p7, %p10495_p13 }
 0xcdb   : > { %10505 = shalt.err (!%p10502_p8)
}
 0xcdc   : > { %s10555_s25 = smov 64   ;;  %s10556_s29 = smov 4  }
 0xcdd   : > { %10258 = dma.vmem_to_hbm [thread:$0]  (%p10642_p5), %s12949_s12, 4096, %s12947_s26, %s12953_s10, %s10555_s25, %s10555_s25, %s10556_s29  }
 0xcde   : > { %10523 = dma.done.wait (%p224_p2), [#allocation4], 2048  }
 0xcdf   : > { %10525 = vsyncadd (%p224_p2), [#allocation4], 4294965248 }
 0xce0 PF: > { %p10268_p9 = scmp.ge.s32.totalorder %s10544_s30, 2  ;;  %s7595_s13 = sand.u32 1, %s10532_s27  }
 0xce1   : > { %s7596_s23 = scalar_lea.sflag [#allocation6], %s7595_s13 }
 0xce2   : > { %p10263_p10 = pnand %p10268_p9, %p10646_p6 }
 0xce4   : > { %10527 = dma.done.wait (!%p10263_p10), %s7596_s23, 4096  }
 0xce5   : > { %10529 = vsyncadd (!%p10263_p10), %s7596_s23, 4294963200  ;;  %s13085_s15 = sld [smem:[#allocation9_spill]]  ;;  %s13086_s29 = sld [smem:[#allocation10_spill]] }
 0xce6   : > { %p20_p5 = scmp.ge.s32.totalorder %s10627_s11, 5   ;;  %s13087_s27 = smov %s10536_s28 }
 0xce7   : > { %s13089_s30 = smov %s10627_s11 }
 0xce8   :  { %22 = sbr.rel (!%p20_p5) target bundleno = 4 (0x4), region = 117 }
 0xceb   : > { %s13088_s28 = smov %s13085_s15 }
 0xcef   :  { %7601 = vsyncpa [#allocation4], 1 }
 0xcf0   :  { %7603 = vsyncpa [#allocation4 + $0x1], 1 }
 0xcf1   :  { %7604 = vsyncpa [#allocation6], 1 }
 0xcf2   :  { %7606 = vsyncpa [#allocation6 + $0x1], 1 }

</bundles_post_ra>
